<compile_context>
chip_gen: v6e
topology: v6e:2x2x1
jax: 0.10.0
libtpu: 0.0.40
codegen_flags: <defaults>
</compile_context>

<pallas_src>
import jax
import jax.numpy as jnp
from jax.experimental import pallas as pl
from jax.experimental.pallas import tpu as pltpu


IMAGE_SIZE = 28 * 28   # 784
HIDDEN_SIZE = 256
LANE = 128


def _round_up(x, m):
    return (x + m - 1) // m * m


def d_forward_kernel(x_ref, w1_ref, b1_ref, w2_ref, b2_ref, w3r_ref, b3_ref,
                     y_ref):
    """One batch tile of the discriminator forward pass."""
    x = x_ref[...]                                           # (TB, Kp) bf16

    # layer1 + LeakyReLU(0.2)   (bf16 x bf16 -> f32 accumulate on the MXU)
    h1 = jnp.dot(x, w1_ref[...],
                 preferred_element_type=jnp.float32) + b1_ref[...]
    h1 = jnp.where(h1 > 0, h1, 0.2 * h1)

    # layer2 + LeakyReLU(0.2)
    h2 = jnp.dot(h1.astype(jnp.bfloat16), w2_ref[...],
                 preferred_element_type=jnp.float32) + b2_ref[...]
    h2 = jnp.where(h2 > 0, h2, 0.2 * h2)

    # layer3 (256 -> 1) as a VPU multiply + cross-lane reduction: a 1-wide
    # MXU matmul would waste the whole systolic array.
    logits = jnp.sum(h2 * w3r_ref[...], axis=-1, keepdims=True) + b3_ref[...]

    # Sigmoid (exp goes to the EUP slot).
    y_ref[...] = jax.nn.sigmoid(logits)                      # (TB, 1) f32


def d_forward(x, w1, b1, w2, b2, w3, b3, *, tb=None):
    """Batch-tiled pallas_call wrapper. x:(B,784) f32, weights stored (in,out)."""
    B, K = x.shape
    H = w1.shape[1]

    # Lane-dense K: 784 -> 896 (7*128). Zero padding keeps math exact.
    Kp = _round_up(K, LANE)

    # Batch tile: multiple of 256 (MXU-friendly on every generation), capped
    # at 1024 so 2x bf16 input buffers + intermediates stay well under even
    # the v5e 16 MiB scoped-VMEM default.
    if tb is None:
        tb = min(1024, _round_up(B, 256))
    Bp = _round_up(B, tb)
    grid = (Bp // tb,)

    # Wrapper-side padding + dtype casts (bf16 streams, f32 biases).
    x_p = jnp.pad(x, ((0, Bp - B), (0, Kp - K))).astype(jnp.bfloat16)
    w1_p = jnp.pad(w1, ((0, Kp - K), (0, 0))).astype(jnp.bfloat16)
    w2_b = w2.astype(jnp.bfloat16)
    w3_row = w3.reshape(1, H).astype(jnp.float32)            # (1, 256)
    b1_f = b1.astype(jnp.float32)
    b2_f = b2.astype(jnp.float32)
    b3_f = b3.astype(jnp.float32)                            # (1, 1)

    y = pl.pallas_call(
        d_forward_kernel,
        out_shape=jax.ShapeDtypeStruct((Bp, 1), jnp.float32),
        grid=grid,
        in_specs=[
            pl.BlockSpec((tb, Kp), lambda i: (i, 0)),        # x tile (pipelined)
            pl.BlockSpec((Kp, H), lambda i: (0, 0)),         # w1 (resident)
            pl.BlockSpec((1, H), lambda i: (0, 0)),          # b1
            pl.BlockSpec((H, H), lambda i: (0, 0)),          # w2
            pl.BlockSpec((1, H), lambda i: (0, 0)),          # b2
            pl.BlockSpec((1, H), lambda i: (0, 0)),          # w3 row
            pl.BlockSpec((1, 1), lambda i: (0, 0)),          # b3
        ],
        out_specs=pl.BlockSpec((tb, 1), lambda i: (i, 0)),
        compiler_params=pltpu.CompilerParams(
            dimension_semantics=("parallel",)),
    )(x_p, w1_p, b1_f, w2_b, b2_f, w3_row, b3_f)

    return y[:B]


def init_params(key, image_size=IMAGE_SIZE, hidden_size=HIDDEN_SIZE):
    """Deterministic init mimicking nn.Linear default (U[-1/sqrt(fan_in), +])."""
    ks = jax.random.split(key, 6)

    def linear(kw, kb, fan_in, fan_out):
        bound = 1.0 / jnp.sqrt(jnp.float32(fan_in))
        # stored as (in, out) == PyTorch weight (out, in) transposed
        w = jax.random.uniform(kw, (fan_in, fan_out), jnp.float32, -bound, bound)
        b = jax.random.uniform(kb, (1, fan_out), jnp.float32, -bound, bound)
        return w, b

    w1, b1 = linear(ks[0], ks[1], image_size, hidden_size)
    w2, b2 = linear(ks[2], ks[3], hidden_size, hidden_size)
    w3, b3 = linear(ks[4], ks[5], hidden_size, 1)
    return w1, b1, w2, b2, w3, b3


def d_forward_ref_bf16(x, w1, b1, w2, b2, w3, b3):
    """Pure-JAX reference matching the kernel's bf16-in / f32-accumulate path."""
    h1 = jnp.dot(x.astype(jnp.bfloat16), w1.astype(jnp.bfloat16),
                 preferred_element_type=jnp.float32) + b1
    h1 = jnp.where(h1 > 0, h1, 0.2 * h1)
    h2 = jnp.dot(h1.astype(jnp.bfloat16), w2.astype(jnp.bfloat16),
                 preferred_element_type=jnp.float32) + b2
    h2 = jnp.where(h2 > 0, h2, 0.2 * h2)
    return jax.nn.sigmoid(h2 @ w3 + b3)


def d_forward_ref_f32(x, w1, b1, w2, b2, w3, b3):
    """Full-precision reference matching the PyTorch module semantics."""
    h1 = x @ w1 + b1
    h1 = jnp.where(h1 > 0, h1, 0.2 * h1)
    h2 = h1 @ w2 + b2
    h2 = jnp.where(h2 > 0, h2, 0.2 * h2)
    return jax.nn.sigmoid(h2 @ w3 + b3)


if __name__ == "__main__":
    key = jax.random.PRNGKey(0)
    k_params, k_x = jax.random.split(key)

    batch = 8
    params = init_params(k_params)
    # flattened images, same as what the PyTorch module's forward expects
    x = jax.random.normal(k_x, (batch, IMAGE_SIZE), dtype=jnp.float32)

    y = d_forward(x, *params)
    y = jax.block_until_ready(y)

    assert y.shape == (batch, 1)

    # Tight check against a bf16-matched reference (same compute path).
    y_ref = d_forward_ref_bf16(x, *params)
    assert jnp.allclose(y, y_ref, atol=2e-3, rtol=2e-3), (
        float(jnp.max(jnp.abs(y - y_ref))))

    # Looser sanity check against the exact f32 PyTorch-equivalent math.
    y_f32 = d_forward_ref_f32(x, *params)
    assert jnp.allclose(y, y_f32, atol=3e-2, rtol=3e-2), (
        float(jnp.max(jnp.abs(y - y_f32))))

    print("KERNEL_OK")
</pallas_src>

<mosaic_0001>
module attributes {stable_mosaic.version = 11 : i64} {
  func.func @d_forward_kernel(%arg0: i32, %arg1: memref<256x896xbf16, #tpu.memory_space<vmem>>, %arg2: memref<896x256xbf16, #tpu.memory_space<vmem>>, %arg3: memref<1x256xf32, #tpu.memory_space<vmem>>, %arg4: memref<256x256xbf16, #tpu.memory_space<vmem>>, %arg5: memref<1x256xf32, #tpu.memory_space<vmem>>, %arg6: memref<1x256xf32, #tpu.memory_space<vmem>>, %arg7: memref<1x1xf32, #tpu.memory_space<vmem>>, %arg8: memref<256x1xf32, #tpu.memory_space<vmem>>) attributes {dimension_semantics = [#tpu.dimension_semantics<parallel>], iteration_bounds = array<i64: 1>, scalar_prefetch = 0 : i64, scratch_operands = 0 : i64, tpu.core_type = #tpu.core_type<tc>, window_params = [{transform_indices = @transform_0, window_bounds = array<i64: 256, 896>}, {pipeline_mode = #tpu.pipeline_mode<synchronous>, transform_indices = @transform_1, window_bounds = array<i64: 896, 256>}, {pipeline_mode = #tpu.pipeline_mode<synchronous>, transform_indices = @transform_2, window_bounds = array<i64: 1, 256>}, {pipeline_mode = #tpu.pipeline_mode<synchronous>, transform_indices = @transform_3, window_bounds = array<i64: 256, 256>}, {pipeline_mode = #tpu.pipeline_mode<synchronous>, transform_indices = @transform_4, window_bounds = array<i64: 1, 256>}, {pipeline_mode = #tpu.pipeline_mode<synchronous>, transform_indices = @transform_5, window_bounds = array<i64: 1, 256>}, {pipeline_mode = #tpu.pipeline_mode<synchronous>, transform_indices = @transform_6, window_bounds = array<i64: 1, 1>}, {transform_indices = @transform_7, window_bounds = array<i64: 256, 1>}]} {
    %c0 = arith.constant 0 : index
    %c0_0 = arith.constant 0 : index
    %0 = vector.load %arg1[%c0, %c0_0] : memref<256x896xbf16, #tpu.memory_space<vmem>>, vector<256x896xbf16>
    %c0_1 = arith.constant 0 : index
    %c0_2 = arith.constant 0 : index
    %1 = vector.load %arg2[%c0_1, %c0_2] : memref<896x256xbf16, #tpu.memory_space<vmem>>, vector<896x256xbf16>
    %cst = arith.constant dense<0.000000e+00> : vector<256x256xf32>
    %2 = tpu.matmul %0, %1, %cst {dimension_numbers = #tpu.dot_dimension_numbers<[1], [0], [0], [1], [0, 0, 1, 1], [], []>} : vector<256x896xbf16>, vector<896x256xbf16>, vector<256x256xf32> -> vector<256x256xf32>
    %c0_3 = arith.constant 0 : index
    %c0_4 = arith.constant 0 : index
    %3 = vector.load %arg3[%c0_3, %c0_4] : memref<1x256xf32, #tpu.memory_space<vmem>>, vector<1x256xf32>
    %4 = vector.broadcast %3 : vector<1x256xf32> to vector<256x256xf32>
    %5 = arith.addf %2, %4 : vector<256x256xf32>
    %cst_5 = arith.constant 0.000000e+00 : f32
    %6 = vector.broadcast %cst_5 : f32 to vector<256x256xf32>
    %7 = arith.cmpf ogt, %5, %6 : vector<256x256xf32>
    %cst_6 = arith.constant 2.000000e-01 : f32
    %8 = vector.broadcast %cst_6 : f32 to vector<256x256xf32>
    %9 = arith.mulf %8, %5 : vector<256x256xf32>
    %10 = arith.select %7, %5, %9 : vector<256x256xi1>, vector<256x256xf32>
    %11 = arith.truncf %10 : vector<256x256xf32> to vector<256x256xbf16>
    %c0_7 = arith.constant 0 : index
    %c0_8 = arith.constant 0 : index
    %12 = vector.load %arg4[%c0_7, %c0_8] : memref<256x256xbf16, #tpu.memory_space<vmem>>, vector<256x256xbf16>
    %cst_9 = arith.constant dense<0.000000e+00> : vector<256x256xf32>
    %13 = tpu.matmul %11, %12, %cst_9 {dimension_numbers = #tpu.dot_dimension_numbers<[1], [0], [0], [1], [0, 0, 1, 1], [], []>} : vector<256x256xbf16>, vector<256x256xbf16>, vector<256x256xf32> -> vector<256x256xf32>
    %c0_10 = arith.constant 0 : index
    %c0_11 = arith.constant 0 : index
    %14 = vector.load %arg5[%c0_10, %c0_11] : memref<1x256xf32, #tpu.memory_space<vmem>>, vector<1x256xf32>
    %15 = vector.broadcast %14 : vector<1x256xf32> to vector<256x256xf32>
    %16 = arith.addf %13, %15 : vector<256x256xf32>
    %cst_12 = arith.constant 0.000000e+00 : f32
    %17 = vector.broadcast %cst_12 : f32 to vector<256x256xf32>
    %18 = arith.cmpf ogt, %16, %17 : vector<256x256xf32>
    %cst_13 = arith.constant 2.000000e-01 : f32
    %19 = vector.broadcast %cst_13 : f32 to vector<256x256xf32>
    %20 = arith.mulf %19, %16 : vector<256x256xf32>
    %21 = arith.select %18, %16, %20 : vector<256x256xi1>, vector<256x256xf32>
    %c0_14 = arith.constant 0 : index
    %c0_15 = arith.constant 0 : index
    %22 = vector.load %arg6[%c0_14, %c0_15] : memref<1x256xf32, #tpu.memory_space<vmem>>, vector<1x256xf32>
    %23 = vector.broadcast %22 : vector<1x256xf32> to vector<256x256xf32>
    %24 = arith.mulf %21, %23 : vector<256x256xf32>
    %cst_16 = arith.constant dense<0.000000e+00> : vector<256xf32>
    %25 = vector.multi_reduction <add>, %24, %cst_16 [1] : vector<256x256xf32> to vector<256xf32>
    %26 = vector.shape_cast %25 : vector<256xf32> to vector<256x1xf32>
    %c0_17 = arith.constant 0 : index
    %c0_18 = arith.constant 0 : index
    %27 = vector.load %arg7[%c0_17, %c0_18] : memref<1x1xf32, #tpu.memory_space<vmem>>, vector<1x1xf32>
    %28 = vector.broadcast %27 : vector<1x1xf32> to vector<256x1xf32>
    %29 = arith.addf %26, %28 : vector<256x1xf32>
    %30 = arith.negf %29 : vector<256x1xf32>
    %31 = math.exp %30 : vector<256x1xf32>
    %cst_19 = arith.constant 1.000000e+00 : f32
    %32 = vector.broadcast %cst_19 : f32 to vector<256x1xf32>
    %33 = arith.addf %32, %31 : vector<256x1xf32>
    %34 = arith.divf %32, %33 : vector<256x1xf32>
    %c0_20 = arith.constant 0 : index
    %c0_21 = arith.constant 0 : index
    %35 = vector.load %arg8[%c0_20, %c0_21] : memref<256x1xf32, #tpu.memory_space<vmem>>, vector<256x1xf32>
    tpu.vector_store %arg8[%c0_20, %c0_21], %34 {strides = array<i32>} : memref<256x1xf32, #tpu.memory_space<vmem>>, vector<256x1xf32>,
    return
  }
  func.func @transform_0(%arg0: i32) -> (i32, i32) {
    %c0_i32 = arith.constant 0 : i32
    %c0_i32_0 = arith.constant 0 : i32
    return %arg0, %c0_i32 : i32, i32
  }
  func.func @transform_1(%arg0: i32) -> (i32, i32) {
    %c0_i32 = arith.constant 0 : i32
    %c0_i32_0 = arith.constant 0 : i32
    %c0_i32_1 = arith.constant 0 : i32
    return %c0_i32, %c0_i32_0 : i32, i32
  }
  func.func @transform_2(%arg0: i32) -> (i32, i32) {
    %c0_i32 = arith.constant 0 : i32
    %c0_i32_0 = arith.constant 0 : i32
    %c0_i32_1 = arith.constant 0 : i32
    return %c0_i32, %c0_i32_0 : i32, i32
  }
  func.func @transform_3(%arg0: i32) -> (i32, i32) {
    %c0_i32 = arith.constant 0 : i32
    %c0_i32_0 = arith.constant 0 : i32
    %c0_i32_1 = arith.constant 0 : i32
    return %c0_i32, %c0_i32_0 : i32, i32
  }
  func.func @transform_4(%arg0: i32) -> (i32, i32) {
    %c0_i32 = arith.constant 0 : i32
    %c0_i32_0 = arith.constant 0 : i32
    %c0_i32_1 = arith.constant 0 : i32
    return %c0_i32, %c0_i32_0 : i32, i32
  }
  func.func @transform_5(%arg0: i32) -> (i32, i32) {
    %c0_i32 = arith.constant 0 : i32
    %c0_i32_0 = arith.constant 0 : i32
    %c0_i32_1 = arith.constant 0 : i32
    return %c0_i32, %c0_i32_0 : i32, i32
  }
  func.func @transform_6(%arg0: i32) -> (i32, i32) {
    %c0_i32 = arith.constant 0 : i32
    %c0_i32_0 = arith.constant 0 : i32
    %c0_i32_1 = arith.constant 0 : i32
    return %c0_i32, %c0_i32_0 : i32, i32
  }
  func.func @transform_7(%arg0: i32) -> (i32, i32) {
    %c0_i32 = arith.constant 0 : i32
    %c0_i32_0 = arith.constant 0 : i32
    return %arg0, %c0_i32 : i32, i32
  }
}

</mosaic_0001>

<bundles_post_ra>
// kernel: tpu_custom_call.1
= control target key start
LH: loop header
LB: loop body
LE: loop exit
PB: predicated region body
PF: predicated region fallthrough
CT: control target
= control target key end

     0   :  { %s5398_s0 = inlined_call_operand.hbm [shape: bf16[256,896], index: 0, kind: input, shape index: {}]   ;;  %s5399_s1 = inlined_call_operand.hbm [shape: bf16[896,256], index: 1, kind: input, shape index: {}]   ;;  %s5400_s2 = inlined_call_operand.vmem [shape: f32[1,256], index: 2, kind: input, shape index: {}]   ;;  %s5401_s3 = inlined_call_operand.hbm [shape: bf16[256,256], index: 3, kind: input, shape index: {}]   ;;  %s5402_s4 = inlined_call_operand.vmem [shape: f32[1,256], index: 4, kind: input, shape index: {}]   ;;  %s5403_s5 = inlined_call_operand.vmem [shape: f32[1,256], index: 5, kind: input, shape index: {}]   ;;  %s5404_s6 = inlined_call_operand.<no memory space> [shape: f32[1,1], index: 6, kind: input, shape index: {}]   ;;  %s5405_s7 = inlined_call_operand.vmem [shape: f32[256,1], index: 7, kind: output, shape index: {}]  }
   0x1   :  { %v12_v0 = vstv %s5404_s6 }
   0x2   :  { %13 = vst [vmem:[#allocation2] sm:$0x1] %v12_v0 }
   0x3   :  { %14 = vsyncpa [#allocation4], 0 }
   0x4   :  { %15 = vsyncpa [#allocation6], 0  ;;  %s4382_s26 = smov [#allocation5]  }
   0x5   :  { %s33_s27 = sshll.u32 %s4382_s26, 4  ;;  %s34_s27 = int_to_ptr.vmem [resolvable:$true] %s33_s27 }
   0x6   :  { %s4326_s28 = scalar_lea.vmem %s34_s27, 14336  ;;  %p4331_p1 = scmp.lt.s32.totalorder %s34_s27, %s34_s27 }
   0x7   :  { %p4327_p0 = scmp.ne.s32.totalorder %s34_s27, %s4326_s28  ;;  %p4332_p2 = scmp.lt.s32.totalorder %s4326_s28, %s4326_s28 }
   0x9   :  { %p4333_p3 = por %p4332_p2, %p4331_p1 }
   0xb   :  { %p4334_p4 = pnand %p4333_p3, %p4327_p0 }
   0xd   :  { %4337 = shalt.err (!%p4334_p4)
}
   0xe   :  { %s4383_s29 = smov 128   ;;  %s4384_s30 = smov 8  }
   0xf   :  { %39 = dma.hbm_to_vmem [thread:$0]  %s5399_s1, 14336, %s34_s27, [#allocation6], %s4383_s29, %s4383_s29, %s4384_s30  }
  0x10   :  { %s4385_s6 = smov [#allocation3]  }
  0x11   :  { %s21_s10 = sshll.u32 %s4385_s6, 4  ;;  %s22_s10 = int_to_ptr.vmem [resolvable:$true] %s21_s10 }
  0x12   :  { %s4346_s11 = scalar_lea.vmem %s22_s10, 14336  ;;  %p4351_p6 = scmp.lt.s32.totalorder %s22_s10, %s22_s10 }
  0x13   :  { %p4347_p5 = scmp.ne.s32.totalorder %s22_s10, %s4346_s11  ;;  %p4352_p7 = scmp.lt.s32.totalorder %s4346_s11, %s4346_s11 }
  0x15   :  { %p4353_p8 = por %p4352_p7, %p4351_p6 }
  0x17   :  { %p4354_p9 = pnand %p4353_p8, %p4347_p5 }
  0x19   :  { %4357 = shalt.err (!%p4354_p9)
}
  0x1a   :  { %s4386_s12 = smov 448   ;;  %s4387_s13 = smov 28  }
  0x1b   :  { %27 = dma.hbm_to_vmem [thread:$0]  %s5398_s0, 14336, %s22_s10, [#allocation4], %s4386_s12, %s4386_s12, %s4387_s13  }
  0x1c   :  { %s4388_s16 = smov [#allocation7]  }
  0x1d   :  { %s47_s17 = sshll.u32 %s4388_s16, 4  ;;  %s48_s17 = int_to_ptr.vmem [resolvable:$true] %s47_s17 }
  0x1e   :  { %s4366_s1 = scalar_lea.vmem %s48_s17, 4096  ;;  %p4371_p11 = scmp.lt.s32.totalorder %s48_s17, %s48_s17 }
  0x1f   :  { %p4367_p10 = scmp.ne.s32.totalorder %s48_s17, %s4366_s1  ;;  %p4372_p12 = scmp.lt.s32.totalorder %s4366_s1, %s4366_s1 }
  0x21   :  { %p4373_p13 = por %p4372_p12, %p4371_p11 }
  0x23   :  { %p4374_p0 = pnand %p4373_p13, %p4367_p10 }
  0x25   :  { %4377 = shalt.err (!%p4374_p0)
}
  0x26   :  { %53 = dma.hbm_to_vmem [thread:$0]  %s5401_s3, 4096, %s48_s17, [#allocation6], %s4383_s29, %s4383_s29, %s4384_s30  }
  0x27   :  { %4378 = dma.done.wait [#allocation4], 14336  }
  0x28   :  { %4379 = vsyncadd [#allocation4], 4294952960 }
  0x29   :  { %4380 = dma.done.wait [#allocation6], 18432  }
  0x2a   :  { %4381 = vsyncadd [#allocation6], 4294948864  ;;  %v3814_v1 = vld [vmem:[#allocation5 + $0x74] ss:$8 sps:$4 sm:$0xff]   ;;  %v3816_v2 = vld [vmem:[#allocation5 + $0x70] ss:$8 sps:$4 sm:$0xff]  }
  0x2b   :  { %3774 = vmatprep.subr.bf16.mxu1 %v3814_v1  ;;  %1458 = vmatprep.subr.bf16.mxu0 %v3814_v1  ;;  %v3817_v3 = vld [vmem:[#allocation5 + $0x64] ss:$8 sps:$4 sm:$0xff]   ;;  %v3819_v4 = vld [vmem:[#allocation5 + $0x60] ss:$8 sps:$4 sm:$0xff]   ;;  %v3820_v5 = vld [vmem:[#allocation5 + $0x54] ss:$8 sps:$4 sm:$0xff]  }
  0x2c   :  { %3790 = vmatpush1.bf16.msra.mxu1 %v3816_v2  ;;  %1459 = vmatpush1.bf16.msra.mxu0 %v3816_v2  ;;  %v3822_v6 = vld [vmem:[#allocation5 + $0x50] ss:$8 sps:$4 sm:$0xff]   ;;  %v3823_v7 = vld [vmem:[#allocation5 + $0x44] ss:$8 sps:$4 sm:$0xff]   ;;  %v3825_v8 = vld [vmem:[#allocation5 + $0x40] ss:$8 sps:$4 sm:$0xff]  }
  0x2d   :  { %3775 = vmatprep.subr.bf16.mxu1 %v3817_v3  ;;  %1460 = vmatprep.subr.bf16.mxu0 %v3817_v3  ;;  %v3826_v9 = vld [vmem:[#allocation5 + $0x34] ss:$8 sps:$4 sm:$0xff]   ;;  %v3828_v10 = vld [vmem:[#allocation5 + $0x30] ss:$8 sps:$4 sm:$0xff]   ;;  %v3829_v11 = vld [vmem:[#allocation5 + $0x24] ss:$8 sps:$4 sm:$0xff]  }
  0x2e   :  { %v3831_v12 = vld [vmem:[#allocation5 + $0x20] ss:$8 sps:$4 sm:$0xff]   ;;  %v3832_v13 = vld [vmem:[#allocation5 + $0x14] ss:$8 sps:$4 sm:$0xff]   ;;  %v3834_v15 = vld [vmem:[#allocation5 + $0x10] ss:$8 sps:$4 sm:$0xff]  }
  0x2f   :  { %v3864_v14 = vld [vmem:[#allocation3 + $0x1c4] ss:$28 sps:$4 sm:$0xff]   ;;  %v3838_v19 = vld [vmem:[#allocation5 + $0xf4] ss:$8 sps:$4 sm:$0xff]   ;;  %v3840_v20 = vld [vmem:[#allocation5 + $0xf0] ss:$8 sps:$4 sm:$0xff]  }
  0x30   :  { %3791 = vmatpush1.bf16.msra.mxu1 %v3819_v4  ;;  %1461 = vmatpush1.bf16.msra.mxu0 %v3819_v4  ;;  %v3835_v16 = vld [vmem:[#allocation5 + $0x4] ss:$8 sps:$4 sm:$0xff]   ;;  %v3837_v18 = vld [vmem:[#allocation5] ss:$8 sps:$4 sm:$0xff]   ;;  %v3844_v23 = vld [vmem:[#allocation5 + $0xd4] ss:$8 sps:$4 sm:$0xff]  }
  0x31   :  { %3776 = vmatprep.subr.bf16.mxu1 %v3820_v5  ;;  %1462 = vmatprep.subr.bf16.mxu0 %v3820_v5  ;;  %v3870_v17 = vld [vmem:[#allocation3 + $0x4] ss:$28 sps:$4 sm:$0xff]   ;;  %v3846_v24 = vld [vmem:[#allocation5 + $0xd0] ss:$8 sps:$4 sm:$0xff]   ;;  %v3850_v27 = vld [vmem:[#allocation5 + $0xb4] ss:$8 sps:$4 sm:$0xff]  }
  0x32   :  { %1570 = vmatprep.mubr.bf16.mxu1 %v3864_v14  ;;  %1490 = vmatprep.mubr.bf16.mxu0 %v3870_v17  ;;  %v3841_v21 = vld [vmem:[#allocation5 + $0xe4] ss:$8 sps:$4 sm:$0xff]   ;;  %v3843_v22 = vld [vmem:[#allocation5 + $0xe0] ss:$8 sps:$4 sm:$0xff]   ;;  %v3852_v28 = vld [vmem:[#allocation5 + $0xb0] ss:$8 sps:$4 sm:$0xff]  }
  0x33   :  { %v3847_v25 = vld [vmem:[#allocation5 + $0xc4] ss:$8 sps:$4 sm:$0xff]   ;;  %v3849_v26 = vld [vmem:[#allocation5 + $0xc0] ss:$8 sps:$4 sm:$0xff]   ;;  %v3856_v31 = vld [vmem:[#allocation5 + $0x94] ss:$8 sps:$4 sm:$0xff]  }
  0x34   :  { %3792 = vmatpush1.bf16.msra.mxu1 %v3822_v6  ;;  %1463 = vmatpush1.bf16.msra.mxu0 %v3822_v6  ;;  %v3853_v29 = vld [vmem:[#allocation5 + $0xa4] ss:$8 sps:$4 sm:$0xff]   ;;  %v3855_v30 = vld [vmem:[#allocation5 + $0xa0] ss:$8 sps:$4 sm:$0xff]   ;;  %v3858_v32 = vld [vmem:[#allocation5 + $0x90] ss:$8 sps:$4 sm:$0xff]  }
  0x35   :  { %3777 = vmatprep.subr.bf16.mxu1 %v3823_v7  ;;  %1464 = vmatprep.subr.bf16.mxu0 %v3823_v7  ;;  %v3859_v33 = vld [vmem:[#allocation5 + $0x84] ss:$8 sps:$4 sm:$0xff]   ;;  %v3861_v34 = vld [vmem:[#allocation5 + $0x80] ss:$8 sps:$4 sm:$0xff]   ;;  %v3867_v35 = vld [vmem:[#allocation5 + $0x174] ss:$8 sps:$4 sm:$0xff]  }
  0x36   :  { %v3862_v36 = vld [vmem:[#allocation3 + $0x1c0] ss:$28 sps:$4 sm:$0xff]   ;;  %v3865_v38 = vld [vmem:[#allocation5 + $0x170] ss:$8 sps:$4 sm:$0xff]   ;;  %v3876_v41 = vld [vmem:[#allocation5 + $0x164] ss:$8 sps:$4 sm:$0xff]  }
  0x37   :  { %v3873_v37 = vld [vmem:[#allocation5 + $0x274] ss:$8 sps:$4 sm:$0xff]   ;;  %v3871_v40 = vld [vmem:[#allocation5 + $0x270] ss:$8 sps:$4 sm:$0xff]   ;;  %v3879_v42 = vld [vmem:[#allocation5 + $0x264] ss:$8 sps:$4 sm:$0xff]  }
  0x38   :  { %3793 = vmatpush1.bf16.msra.mxu1 %v3825_v8  ;;  %1465 = vmatpush1.bf16.msra.mxu0 %v3825_v8  ;;  %v3868_v39 = vld [vmem:[#allocation3] ss:$28 sps:$4 sm:$0xff]   ;;  %v3882_v48 = vld [vmem:[#allocation3 + $0x1f8] ss:$28 sps:$4 sm:$0xff]   ;;  %v3894_v53 = vld [vmem:[#allocation5 + $0x144] ss:$8 sps:$4 sm:$0xff]  }
  0x39   :  { %3778 = vmatprep.subr.bf16.mxu1 %v3826_v9  ;;  %1466 = vmatprep.subr.bf16.mxu0 %v3826_v9  ;;  %v3880_v43 = vld [vmem:[#allocation3 + $0x1fc] ss:$28 sps:$4 sm:$0xff]   ;;  %v3874_v45 = vld [vmem:[#allocation5 + $0x160] ss:$8 sps:$4 sm:$0xff]   ;;  %v3897_v54 = vld [vmem:[#allocation5 + $0x244] ss:$8 sps:$4 sm:$0xff]  }
  0x3a   :  { %v3886_v44 = vld [vmem:[#allocation3 + $0x3c] ss:$28 sps:$4 sm:$0xff]   ;;  %v3877_v46 = vld [vmem:[#allocation5 + $0x260] ss:$8 sps:$4 sm:$0xff]   ;;  %v3898_v55 = vld [vmem:[#allocation3 + $0x234] ss:$28 sps:$4 sm:$0xff]  }
  0x3b   :  { %v3885_v47 = vld [vmem:[#allocation5 + $0x154] ss:$8 sps:$4 sm:$0xff]   ;;  %v3883_v50 = vld [vmem:[#allocation5 + $0x150] ss:$8 sps:$4 sm:$0xff]   ;;  %v3892_v57 = vld [vmem:[#allocation5 + $0x140] ss:$8 sps:$4 sm:$0xff]  }
  0x3c   :  { %3794 = vmatpush1.bf16.msra.mxu1 %v3828_v10  ;;  %1467 = vmatpush1.bf16.msra.mxu0 %v3828_v10  ;;  %v3891_v49 = vld [vmem:[#allocation5 + $0x254] ss:$8 sps:$4 sm:$0xff]   ;;  %v3889_v52 = vld [vmem:[#allocation5 + $0x250] ss:$8 sps:$4 sm:$0xff]   ;;  %v3895_v58 = vld [vmem:[#allocation5 + $0x240] ss:$8 sps:$4 sm:$0xff]  }
  0x3d   :  { %3779 = vmatprep.subr.bf16.mxu1 %v3829_v11  ;;  %1468 = vmatprep.subr.bf16.mxu0 %v3829_v11  ;;  %v3888_v51 = vld [vmem:[#allocation3 + $0x38] ss:$28 sps:$4 sm:$0xff]   ;;  %v3900_v60 = vld [vmem:[#allocation3 + $0x230] ss:$28 sps:$4 sm:$0xff]   ;;  %v3910_v5 = vld [vmem:[#allocation5 + $0x120] ss:$8 sps:$4 sm:$0xff]  }
  0x3e   :  { %v3904_v56 = vld [vmem:[#allocation3 + $0x74] ss:$28 sps:$4 sm:$0xff]   ;;  %v3912_v1 = vld [vmem:[#allocation5 + $0x124] ss:$8 sps:$4 sm:$0xff]   ;;  %v3913_v6 = vld [vmem:[#allocation5 + $0x220] ss:$8 sps:$4 sm:$0xff]  }
  0x3f   :  { %v3903_v59 = vld [vmem:[#allocation5 + $0x134] ss:$8 sps:$4 sm:$0xff]   ;;  %v3901_v62 = vld [vmem:[#allocation5 + $0x130] ss:$8 sps:$4 sm:$0xff]   ;;  %v3915_v2 = vld [vmem:[#allocation5 + $0x224] ss:$8 sps:$4 sm:$0xff]  }
  0x40   :  { %3795 = vmatpush1.bf16.msra.mxu1 %v3831_v12  ;;  %1469 = vmatpush1.bf16.msra.mxu0 %v3831_v12  ;;  %v3909_v61 = vld [vmem:[#allocation5 + $0x234] ss:$8 sps:$4 sm:$0xff]   ;;  %v3906_v63 = vld [vmem:[#allocation3 + $0x70] ss:$28 sps:$4 sm:$0xff]   ;;  %v3918_v8 = vld [vmem:[#allocation3 + $0x268] ss:$28 sps:$4 sm:$0xff]  }
  0x41   :  { %3780 = vmatprep.subr.bf16.mxu1 %v3832_v13  ;;  %1470 = vmatprep.subr.bf16.mxu0 %v3832_v13  ;;  %v3907_v0 = vld [vmem:[#allocation5 + $0x230] ss:$8 sps:$4 sm:$0xff]   ;;  %v3916_v3 = vld [vmem:[#allocation3 + $0x26c] ss:$28 sps:$4 sm:$0xff]   ;;  %v3921_v7 = vld [vmem:[#allocation5 + $0x114] ss:$8 sps:$4 sm:$0xff]  }
  0x42   :  { %v3922_v4 = vld [vmem:[#allocation3 + $0xac] ss:$28 sps:$4 sm:$0xff]   ;;  %v3927_v9 = vld [vmem:[#allocation5 + $0x214] ss:$8 sps:$4 sm:$0xff]   ;;  %v3919_v10 = vld [vmem:[#allocation5 + $0x110] ss:$8 sps:$4 sm:$0xff]  }
  0x43   :  { %v3924_v11 = vld [vmem:[#allocation3 + $0xa8] ss:$28 sps:$4 sm:$0xff]   ;;  %v3925_v12 = vld [vmem:[#allocation5 + $0x210] ss:$8 sps:$4 sm:$0xff]  }
  0x44   :  { %3796 = vmatpush1.bf16.msra.mxu1 %v3834_v15  ;;  %1471 = vmatpush1.bf16.msra.mxu0 %v3834_v15  ;;  %v3930_v13 = vld [vmem:[#allocation5 + $0x104] ss:$8 sps:$4 sm:$0xff]   ;;  %v3928_v17 = vld [vmem:[#allocation5 + $0x100] ss:$8 sps:$4 sm:$0xff]  }
  0x45   :  { %3781 = vmatprep.subr.bf16.mxu1 %v3835_v16  ;;  %1472 = vmatprep.subr.bf16.mxu0 %v3835_v16  ;;  %v3933_v14 = vld [vmem:[#allocation5 + $0x204] ss:$8 sps:$4 sm:$0xff]  }
  0x46   :  { %v3934_v15 = vld [vmem:[#allocation3 + $0x2a4] ss:$28 sps:$4 sm:$0xff]  }
  0x47   :  { %v3940_v16 = vld [vmem:[#allocation3 + $0xe4] ss:$28 sps:$4 sm:$0xff]  }
  0x48   :  { %3797 = vmatpush1.bf16.msra.mxu1 %v3837_v18  ;;  %1473 = vmatpush1.bf16.msra.mxu0 %v3837_v18  ;;  %v3931_v18 = vld [vmem:[#allocation5 + $0x200] ss:$8 sps:$4 sm:$0xff]  }
  0x49   :  { %3782 = vmatprep.subr.bf16.mxu1 %v3838_v19  ;;  %1474 = vmatprep.subr.bf16.mxu0 %v3838_v19  ;;  %v3939_v19 = vld [vmem:[#allocation5 + $0x1f4] ss:$8 sps:$4 sm:$0xff]  }
  0x4c   :  { %3798 = vmatpush2.bf16.msra.mxu1 %v3840_v20  ;;  %1475 = vmatpush2.bf16.msra.mxu0 %v3840_v20  ;;  %v3936_v20 = vld [vmem:[#allocation3 + $0x2a0] ss:$28 sps:$4 sm:$0xff]  }
  0x4d   :  { %3783 = vmatprep.subr.bf16.mxu1 %v3841_v21  ;;  %1476 = vmatprep.subr.bf16.mxu0 %v3841_v21  ;;  %v3945_v21 = vld [vmem:[#allocation5 + $0x2f4] ss:$8 sps:$4 sm:$0xff]  }
  0x50   :  { %3799 = vmatpush2.bf16.msra.mxu1 %v3843_v22  ;;  %1477 = vmatpush2.bf16.msra.mxu0 %v3843_v22  ;;  %v3937_v22 = vld [vmem:[#allocation5 + $0x1f0] ss:$8 sps:$4 sm:$0xff]  }
  0x51   :  { %3784 = vmatprep.subr.bf16.mxu1 %v3844_v23  ;;  %1478 = vmatprep.subr.bf16.mxu0 %v3844_v23  ;;  %v3942_v23 = vld [vmem:[#allocation3 + $0xe0] ss:$28 sps:$4 sm:$0xff]  }
  0x54   :  { %3800 = vmatpush2.bf16.msra.mxu1 %v3846_v24  ;;  %1479 = vmatpush2.bf16.msra.mxu0 %v3846_v24  ;;  %v3943_v24 = vld [vmem:[#allocation5 + $0x2f0] ss:$8 sps:$4 sm:$0xff]  }
  0x55   :  { %3785 = vmatprep.subr.bf16.mxu1 %v3847_v25  ;;  %1480 = vmatprep.subr.bf16.mxu0 %v3847_v25  ;;  %v3948_v25 = vld [vmem:[#allocation5 + $0x1e4] ss:$8 sps:$4 sm:$0xff]  }
  0x58   :  { %3801 = vmatpush2.bf16.msra.mxu1 %v3849_v26  ;;  %1481 = vmatpush2.bf16.msra.mxu0 %v3849_v26  ;;  %v3951_v26 = vld [vmem:[#allocation5 + $0x2e4] ss:$8 sps:$4 sm:$0xff]  }
  0x59   :  { %3786 = vmatprep.subr.bf16.mxu1 %v3850_v27  ;;  %1482 = vmatprep.subr.bf16.mxu0 %v3850_v27  ;;  %v3952_v27 = vld [vmem:[#allocation3 + $0x2dc] ss:$28 sps:$4 sm:$0xff]  }
  0x5c   :  { %3802 = vmatpush2.bf16.msra.mxu1 %v3852_v28  ;;  %1483 = vmatpush2.bf16.msra.mxu0 %v3852_v28  ;;  %v3958_v28 = vld [vmem:[#allocation3 + $0x11c] ss:$28 sps:$4 sm:$0xff]  }
  0x5d   :  { %3787 = vmatprep.subr.bf16.mxu1 %v3853_v29  ;;  %1484 = vmatprep.subr.bf16.mxu0 %v3853_v29  ;;  %v3946_v29 = vld [vmem:[#allocation5 + $0x1e0] ss:$8 sps:$4 sm:$0xff]  }
  0x60   :  { %3803 = vmatpush2.bf16.msra.mxu1 %v3855_v30  ;;  %1485 = vmatpush2.bf16.msra.mxu0 %v3855_v30  ;;  %v3949_v30 = vld [vmem:[#allocation5 + $0x2e0] ss:$8 sps:$4 sm:$0xff]  }
  0x61   :  { %3788 = vmatprep.subr.bf16.mxu1 %v3856_v31  ;;  %1486 = vmatprep.subr.bf16.mxu0 %v3856_v31  ;;  %v3957_v31 = vld [vmem:[#allocation5 + $0x1d4] ss:$8 sps:$4 sm:$0xff]  }
  0x64   :  { %3804 = vmatpush2.bf16.msra.mxu1 %v3858_v32  ;;  %1487 = vmatpush2.bf16.msra.mxu0 %v3858_v32  ;;  %v3954_v32 = vld [vmem:[#allocation3 + $0x2d8] ss:$28 sps:$4 sm:$0xff]  }
  0x65   :  { %3789 = vmatprep.subr.bf16.mxu1 %v3859_v33  ;;  %1488 = vmatprep.subr.bf16.mxu0 %v3859_v33  ;;  %v3963_v33 = vld [vmem:[#allocation5 + $0x2d4] ss:$8 sps:$4 sm:$0xff]  }
  0x68   :  { %3805 = vmatpush2.bf16.msra.mxu1 %v3861_v34  ;;  %1489 = vmatpush2.bf16.msra.mxu0 %v3861_v34  ;;  %v3955_v34 = vld [vmem:[#allocation5 + $0x1d0] ss:$8 sps:$4 sm:$0xff]  }
  0x69   :  { %1651 = vmatprep.subr.bf16.mxu1 %v3867_v35  ;;  %1844 = vmatprep.subr.bf16.mxu0 %v3873_v37  ;;  %v3960_v35 = vld [vmem:[#allocation3 + $0x118] ss:$28 sps:$4 sm:$0xff]   ;;  %v3966_v37 = vld [vmem:[#allocation5 + $0x1c4] ss:$8 sps:$4 sm:$0xff]  }
  0x6b   :  { %1571 = vmatmul.mubr.bf16.vlgmr.msra.gmra.mxu1 %v3862_v36  ;;  %1491 = vmatmul.mubr.bf16.vlgmr.msra.gmra.mxu0 %v3868_v39  ;;  %v3961_v36 = vld [vmem:[#allocation5 + $0x2d0] ss:$8 sps:$4 sm:$0xff]  }
  0x6c   :  { %1652 = vmatpush1.bf16.msra.mxu1 %v3865_v38  ;;  %1845 = vmatpush1.bf16.msra.mxu0 %v3871_v40  ;;  %v3969_v38 = vld [vmem:[#allocation5 + $0x2c4] ss:$8 sps:$4 sm:$0xff]   ;;  %v3970_v39 = vld [vmem:[#allocation3 + $0x314] ss:$28 sps:$4 sm:$0xff]  }
  0x6d   :  { %1653 = vmatprep.subr.bf16.mxu1 %v3876_v41  ;;  %1846 = vmatprep.subr.bf16.mxu0 %v3879_v42  ;;  %v3976_v40 = vld [vmem:[#allocation3 + $0x154] ss:$28 sps:$4 sm:$0xff]   ;;  %v3964_v41 = vld [vmem:[#allocation5 + $0x1c0] ss:$8 sps:$4 sm:$0xff]  }
  0x6e   :  { %1580 = vmatprep.mubr.bf16.mxu1 %v3880_v43  ;;  %1500 = vmatprep.mubr.bf16.mxu0 %v3886_v44  ;;  %v3967_v42 = vld [vmem:[#allocation5 + $0x2c0] ss:$8 sps:$4 sm:$0xff]   ;;  %v3975_v43 = vld [vmem:[#allocation5 + $0x1b4] ss:$8 sps:$4 sm:$0xff]   ;;  %v3972_v44 = vld [vmem:[#allocation3 + $0x310] ss:$28 sps:$4 sm:$0xff]  }
  0x70   :  { %1654 = vmatpush1.bf16.msra.mxu1 %v3874_v45  ;;  %1847 = vmatpush1.bf16.msra.mxu0 %v3877_v46  ;;  %v3981_v45 = vld [vmem:[#allocation5 + $0x2b4] ss:$8 sps:$4 sm:$0xff]   ;;  %v3973_v46 = vld [vmem:[#allocation5 + $0x1b0] ss:$8 sps:$4 sm:$0xff]  }
  0x71   :  { %1655 = vmatprep.subr.bf16.mxu1 %v3885_v47  ;;  %1848 = vmatprep.subr.bf16.mxu0 %v3891_v49  ;;  %v3978_v47 = vld [vmem:[#allocation3 + $0x150] ss:$28 sps:$4 sm:$0xff]  }
  0x72   :  { %v3984_v49 = vld [vmem:[#allocation5 + $0x1a4] ss:$8 sps:$4 sm:$0xff]  }
  0x73   :  { %1581 = vmatmul.mubr.bf16.gmra.mxu1 %v3882_v48  ;;  %1501 = vmatmul.mubr.bf16.gmra.mxu0 %v3888_v51  ;;  %v3979_v48 = vld [vmem:[#allocation5 + $0x2b0] ss:$8 sps:$4 sm:$0xff]   ;;  %v3988_v51 = vld [vmem:[#allocation3 + $0x34c] ss:$28 sps:$4 sm:$0xff]  }
  0x74   :  { %1656 = vmatpush1.bf16.msra.mxu1 %v3883_v50  ;;  %1849 = vmatpush1.bf16.msra.mxu0 %v3889_v52  ;;  %v3987_v50 = vld [vmem:[#allocation5 + $0x2a4] ss:$8 sps:$4 sm:$0xff]  }
  0x75   :  { %1657 = vmatprep.subr.bf16.mxu1 %v3894_v53  ;;  %1850 = vmatprep.subr.bf16.mxu0 %v3897_v54  ;;  %v3994_v52 = vld [vmem:[#allocation3 + $0x18c] ss:$28 sps:$4 sm:$0xff]  }
  0x76   :  { %1590 = vmatprep.mubr.bf16.mxu1 %v3898_v55  ;;  %1510 = vmatprep.mubr.bf16.mxu0 %v3904_v56  ;;  %v3982_v53 = vld [vmem:[#allocation5 + $0x1a0] ss:$8 sps:$4 sm:$0xff]   ;;  %v3993_v55 = vld [vmem:[#allocation5 + $0x194] ss:$8 sps:$4 sm:$0xff]  }
  0x77   :  { %v3985_v54 = vld [vmem:[#allocation5 + $0x2a0] ss:$8 sps:$4 sm:$0xff]  }
  0x78   :  { %1658 = vmatpush1.bf16.msra.mxu1 %v3892_v57  ;;  %1851 = vmatpush1.bf16.msra.mxu0 %v3895_v58  ;;  %v3990_v56 = vld [vmem:[#allocation3 + $0x348] ss:$28 sps:$4 sm:$0xff]   ;;  %v3999_v57 = vld [vmem:[#allocation5 + $0x294] ss:$8 sps:$4 sm:$0xff]   ;;  %v3991_v58 = vld [vmem:[#allocation5 + $0x190] ss:$8 sps:$4 sm:$0xff]  }
  0x79   :  { %1659 = vmatprep.subr.bf16.mxu1 %v3903_v59  ;;  %1852 = vmatprep.subr.bf16.mxu0 %v3909_v61  ;;  %v3996_v59 = vld [vmem:[#allocation3 + $0x188] ss:$28 sps:$4 sm:$0xff]  }
  0x7a   :  { %v4002_v61 = vld [vmem:[#allocation5 + $0x184] ss:$8 sps:$4 sm:$0xff]  }
  0x7b   :  { %1591 = vmatmul.mubr.bf16.gmra.mxu1 %v3900_v60  ;;  %1511 = vmatmul.mubr.bf16.gmra.mxu0 %v3906_v63  ;;  %v3997_v60 = vld [vmem:[#allocation5 + $0x290] ss:$8 sps:$4 sm:$0xff]   ;;  %v4008_v63 = vld [vmem:[#allocation3 + $0xc] ss:$28 sps:$4 sm:$0xff]  }
  0x7c   :  { %1660 = vmatpush1.bf16.msra.mxu1 %v3901_v62  ;;  %1853 = vmatpush1.bf16.msra.mxu0 %v3907_v0  ;;  %v4005_v62 = vld [vmem:[#allocation5 + $0x284] ss:$8 sps:$4 sm:$0xff]   ;;  %v4014_v0 = vld [vmem:[#allocation3 + $0x14] ss:$28 sps:$4 sm:$0xff]  }
  0x7d   :  { %1661 = vmatprep.subr.bf16.mxu1 %v3912_v1  ;;  %1854 = vmatprep.subr.bf16.mxu0 %v3915_v2  ;;  %v4000_v1 = vld [vmem:[#allocation5 + $0x180] ss:$8 sps:$4 sm:$0xff]  }
  0x7e   :  { %1600 = vmatprep.mubr.bf16.mxu1 %v3916_v3  ;;  %1520 = vmatprep.mubr.bf16.mxu0 %v3922_v4  ;;  %v4003_v2 = vld [vmem:[#allocation5 + $0x280] ss:$8 sps:$4 sm:$0xff]   ;;  %v4011_v3 = vld [vmem:[#allocation5 + $0x374] ss:$8 sps:$4 sm:$0xff]  }
  0x7f   :  { %v4006_v4 = vld [vmem:[#allocation3 + $0x8] ss:$28 sps:$4 sm:$0xff]  }
  0x80   :  { %1662 = vmatpush1.bf16.msra.mxu1 %v3910_v5  ;;  %1855 = vmatpush1.bf16.msra.mxu0 %v3913_v6  ;;  %v4009_v5 = vld [vmem:[#allocation5 + $0x370] ss:$8 sps:$4 sm:$0xff]  }
  0x81   :  { %1663 = vmatprep.subr.bf16.mxu1 %v3921_v7  ;;  %1856 = vmatprep.subr.bf16.mxu0 %v3927_v9  ;;  %v4012_v6 = vld [vmem:[#allocation3 + $0x10] ss:$28 sps:$4 sm:$0xff]   ;;  %v4015_v7 = vld [vmem:[#allocation3 + $0x44] ss:$28 sps:$4 sm:$0xff]  }
  0x82   :  { %v4026_v9 = vld [vmem:[#allocation5 + $0x364] ss:$8 sps:$4 sm:$0xff]  }
  0x83   :  { %1601 = vmatmul.mubr.bf16.gmra.mxu1 %v3918_v8  ;;  %1521 = vmatmul.mubr.bf16.gmra.mxu0 %v3924_v11  ;;  %v4018_v8 = vld [vmem:[#allocation3 + $0x4c] ss:$28 sps:$4 sm:$0xff]   ;;  %v4041_v11 = vld [vmem:[#allocation5 + $0x354] ss:$8 sps:$4 sm:$0xff]  }
  0x84   :  { %1664 = vmatpush1.bf16.msra.mxu1 %v3919_v10  ;;  %1857 = vmatpush1.bf16.msra.mxu0 %v3925_v12  ;;  %v4024_v10 = vld [vmem:[#allocation5 + $0x360] ss:$8 sps:$4 sm:$0xff]  }
  0x85   :  { %1665 = vmatprep.subr.bf16.mxu1 %v3930_v13  ;;  %1858 = vmatprep.subr.bf16.mxu0 %v3933_v14  ;;  %v4017_v12 = vld [vmem:[#allocation3 + $0x40] ss:$28 sps:$4 sm:$0xff]   ;;  %v4020_v13 = vld [vmem:[#allocation3 + $0x48] ss:$28 sps:$4 sm:$0xff]  }
  0x86   :  { %1610 = vmatprep.mubr.bf16.mxu1 %v3934_v15  ;;  %1530 = vmatprep.mubr.bf16.mxu0 %v3940_v16  ;;  %v4021_v14 = vld [vmem:[#allocation3 + $0x7c] ss:$28 sps:$4 sm:$0xff]   ;;  %v4027_v15 = vld [vmem:[#allocation3 + $0x84] ss:$28 sps:$4 sm:$0xff]  }
  0x87   :  { %v4039_v16 = vld [vmem:[#allocation5 + $0x350] ss:$8 sps:$4 sm:$0xff]  }
  0x88   :  { %1666 = vmatpush1.bf16.msra.mxu1 %v3928_v17  ;;  %1859 = vmatpush1.bf16.msra.mxu0 %v3931_v18  ;;  %v4056_v17 = vld [vmem:[#allocation5 + $0x344] ss:$8 sps:$4 sm:$0xff]   ;;  %v4054_v18 = vld [vmem:[#allocation5 + $0x340] ss:$8 sps:$4 sm:$0xff]  }
  0x89   :  { %1667 = vmatprep.subr.bf16.mxu1 %v3939_v19  ;;  %1860 = vmatprep.subr.bf16.mxu0 %v3945_v21  ;;  %v4023_v19 = vld [vmem:[#allocation3 + $0x78] ss:$28 sps:$4 sm:$0xff]  }
  0x8a   :  { %v4071_v21 = vld [vmem:[#allocation5 + $0x334] ss:$8 sps:$4 sm:$0xff]  }
  0x8b   :  { %1611 = vmatmul.mubr.bf16.gmra.mxu1 %v3936_v20  ;;  %1531 = vmatmul.mubr.bf16.gmra.mxu0 %v3942_v23  ;;  %v4029_v20 = vld [vmem:[#allocation3 + $0x80] ss:$28 sps:$4 sm:$0xff]  }
  0x8c   :  { %1668 = vmatpush2.bf16.msra.mxu1 %v3937_v22  ;;  %1861 = vmatpush2.bf16.msra.mxu0 %v3943_v24  ;;  %v4030_v22 = vld [vmem:[#allocation3 + $0xb4] ss:$28 sps:$4 sm:$0xff]   ;;  %v4033_v23 = vld [vmem:[#allocation3 + $0xbc] ss:$28 sps:$4 sm:$0xff]  }
  0x8d   :  { %1669 = vmatprep.subr.bf16.mxu1 %v3948_v25  ;;  %1862 = vmatprep.subr.bf16.mxu0 %v3951_v26  ;;  %v4069_v24 = vld [vmem:[#allocation5 + $0x330] ss:$8 sps:$4 sm:$0xff]   ;;  %v4086_v25 = vld [vmem:[#allocation5 + $0x324] ss:$8 sps:$4 sm:$0xff]   ;;  %v4084_v26 = vld [vmem:[#allocation5 + $0x320] ss:$8 sps:$4 sm:$0xff]  }
  0x8e   :  { %1620 = vmatprep.mubr.bf16.mxu1 %v3952_v27  ;;  %1540 = vmatprep.mubr.bf16.mxu0 %v3958_v28  ;;  %v4101_v27 = vld [vmem:[#allocation5 + $0x314] ss:$8 sps:$4 sm:$0xff]   ;;  %v4032_v28 = vld [vmem:[#allocation3 + $0xb0] ss:$28 sps:$4 sm:$0xff]  }
  0x90   :  { %1670 = vmatpush2.bf16.msra.mxu1 %v3946_v29  ;;  %1863 = vmatpush2.bf16.msra.mxu0 %v3949_v30  ;;  %v4035_v29 = vld [vmem:[#allocation3 + $0xb8] ss:$28 sps:$4 sm:$0xff]   ;;  %v4036_v30 = vld [vmem:[#allocation3 + $0xec] ss:$28 sps:$4 sm:$0xff]  }
  0x91   :  { %1671 = vmatprep.subr.bf16.mxu1 %v3957_v31  ;;  %1864 = vmatprep.subr.bf16.mxu0 %v3963_v33  ;;  %v4042_v31 = vld [vmem:[#allocation3 + $0xf4] ss:$28 sps:$4 sm:$0xff]   ;;  %v4116_v33 = vld [vmem:[#allocation5 + $0x304] ss:$8 sps:$4 sm:$0xff]  }
  0x93   :  { %1621 = vmatmul.mubr.bf16.gmra.mxu1 %v3954_v32  ;;  %1541 = vmatmul.mubr.bf16.gmra.mxu0 %v3960_v35  ;;  %v4099_v32 = vld [vmem:[#allocation5 + $0x310] ss:$8 sps:$4 sm:$0xff]   ;;  %v4038_v35 = vld [vmem:[#allocation3 + $0xe8] ss:$28 sps:$4 sm:$0xff]  }
  0x94   :  { %1672 = vmatpush2.bf16.msra.mxu1 %v3955_v34  ;;  %1865 = vmatpush2.bf16.msra.mxu0 %v3961_v36  ;;  %v4114_v34 = vld [vmem:[#allocation5 + $0x300] ss:$8 sps:$4 sm:$0xff]   ;;  %v4044_v36 = vld [vmem:[#allocation3 + $0xf0] ss:$28 sps:$4 sm:$0xff]  }
  0x95   :  { %1673 = vmatprep.subr.bf16.mxu1 %v3966_v37  ;;  %1866 = vmatprep.subr.bf16.mxu0 %v3969_v38  ;;  %v4045_v37 = vld [vmem:[#allocation3 + $0x124] ss:$28 sps:$4 sm:$0xff]   ;;  %v4048_v38 = vld [vmem:[#allocation3 + $0x12c] ss:$28 sps:$4 sm:$0xff]  }
  0x96   :  { %1630 = vmatprep.mubr.bf16.mxu1 %v3970_v39  ;;  %1550 = vmatprep.mubr.bf16.mxu0 %v3976_v40  ;;  %v4047_v39 = vld [vmem:[#allocation3 + $0x120] ss:$28 sps:$4 sm:$0xff]   ;;  %v4050_v40 = vld [vmem:[#allocation3 + $0x128] ss:$28 sps:$4 sm:$0xff]  }
  0x98   :  { %1674 = vmatpush2.bf16.msra.mxu1 %v3964_v41  ;;  %1867 = vmatpush2.bf16.msra.mxu0 %v3967_v42  ;;  %v4051_v41 = vld [vmem:[#allocation3 + $0x15c] ss:$28 sps:$4 sm:$0xff]   ;;  %v4057_v42 = vld [vmem:[#allocation3 + $0x164] ss:$28 sps:$4 sm:$0xff]  }
  0x99   :  { %1675 = vmatprep.subr.bf16.mxu1 %v3975_v43  ;;  %1868 = vmatprep.subr.bf16.mxu0 %v3981_v45  ;;  %v4053_v43 = vld [vmem:[#allocation3 + $0x158] ss:$28 sps:$4 sm:$0xff]  }
  0x9a   :  { %v4060_v45 = vld [vmem:[#allocation3 + $0x194] ss:$28 sps:$4 sm:$0xff]  }
  0x9b   :  { %1631 = vmatmul.mubr.bf16.gmra.mxu1 %v3972_v44  ;;  %1551 = vmatmul.mubr.bf16.gmra.mxu0 %v3978_v47  ;;  %v4059_v44 = vld [vmem:[#allocation3 + $0x160] ss:$28 sps:$4 sm:$0xff]   ;;  %v4062_v47 = vld [vmem:[#allocation3 + $0x190] ss:$28 sps:$4 sm:$0xff]  }
  0x9c   :  { %1676 = vmatpush2.bf16.msra.mxu1 %v3973_v46  ;;  %1869 = vmatpush2.bf16.msra.mxu0 %v3979_v48  ;;  %v4063_v46 = vld [vmem:[#allocation3 + $0x19c] ss:$28 sps:$4 sm:$0xff]  }
  0x9d   :  { %1677 = vmatprep.subr.bf16.mxu1 %v3984_v49  ;;  %1870 = vmatprep.subr.bf16.mxu0 %v3987_v50  ;;  %v4065_v48 = vld [vmem:[#allocation3 + $0x198] ss:$28 sps:$4 sm:$0xff]   ;;  %v4066_v49 = vld [vmem:[#allocation3 + $0x1cc] ss:$28 sps:$4 sm:$0xff]  }
  0x9e   :  { %1640 = vmatprep.mubr.bf16.mxu1 %v3988_v51  ;;  %1560 = vmatprep.mubr.bf16.mxu0 %v3994_v52  ;;  %v4072_v50 = vld [vmem:[#allocation3 + $0x1d4] ss:$28 sps:$4 sm:$0xff]   ;;  %v4068_v51 = vld [vmem:[#allocation3 + $0x1c8] ss:$28 sps:$4 sm:$0xff]  }
  0x9f   :  { %v4074_v52 = vld [vmem:[#allocation3 + $0x1d0] ss:$28 sps:$4 sm:$0xff]  }
  0xa0   :  { %1678 = vmatpush2.bf16.msra.mxu1 %v3982_v53  ;;  %1871 = vmatpush2.bf16.msra.mxu0 %v3985_v54  ;;  %v4075_v53 = vld [vmem:[#allocation3 + $0x204] ss:$28 sps:$4 sm:$0xff]   ;;  %v4078_v54 = vld [vmem:[#allocation3 + $0x20c] ss:$28 sps:$4 sm:$0xff]  }
  0xa1   :  { %1679 = vmatprep.subr.bf16.mxu1 %v3993_v55  ;;  %1872 = vmatprep.subr.bf16.mxu0 %v3999_v57  ;;  %v4077_v55 = vld [vmem:[#allocation3 + $0x200] ss:$28 sps:$4 sm:$0xff]  }
  0xa2   :  { %v4081_v57 = vld [vmem:[#allocation3 + $0x23c] ss:$28 sps:$4 sm:$0xff]  }
  0xa3   :  { %1641 = vmatmul.mubr.bf16.gmra.mxu1 %v3990_v56  ;;  %1561 = vmatmul.mubr.bf16.gmra.mxu0 %v3996_v59  ;;  %v4080_v56 = vld [vmem:[#allocation3 + $0x208] ss:$28 sps:$4 sm:$0xff]   ;;  %v4083_v59 = vld [vmem:[#allocation3 + $0x238] ss:$28 sps:$4 sm:$0xff]  }
  0xa4   :  { %1680 = vmatpush2.bf16.msra.mxu1 %v3991_v58  ;;  %1873 = vmatpush2.bf16.msra.mxu0 %v3997_v60  ;;  %v4087_v58 = vld [vmem:[#allocation3 + $0x244] ss:$28 sps:$4 sm:$0xff]  }
  0xa5   :  { %1681 = vmatprep.subr.bf16.mxu1 %v4002_v61  ;;  %1874 = vmatprep.subr.bf16.mxu0 %v4005_v62  ;;  %v4089_v60 = vld [vmem:[#allocation3 + $0x240] ss:$28 sps:$4 sm:$0xff]   ;;  %v4090_v61 = vld [vmem:[#allocation3 + $0x274] ss:$28 sps:$4 sm:$0xff]  }
  0xa6   :  { %1683 = vmatprep.mubr.bf16.mxu1 %v4008_v63  ;;  %1876 = vmatprep.mubr.bf16.mxu0 %v4014_v0  ;;  %v4093_v62 = vld [vmem:[#allocation3 + $0x27c] ss:$28 sps:$4 sm:$0xff]  }
  0xa7   :  { %v4136_v63 = vld [vmem:[#allocation7 + $0x70] ss:$8 sps:$4 sm:$0xff]   ;;  %v4138_v0 = vld [vmem:[#allocation7 + $0x74] ss:$8 sps:$4 sm:$0xff]  }
  0xa8   :  { %1682 = vmatpush2.bf16.msra.mxu1 %v4000_v1  ;;  %1875 = vmatpush2.bf16.msra.mxu0 %v4003_v2  ;;  %v4092_v1 = vld [vmem:[#allocation3 + $0x270] ss:$28 sps:$4 sm:$0xff]   ;;  %v4095_v2 = vld [vmem:[#allocation3 + $0x278] ss:$28 sps:$4 sm:$0xff]  }
  0xa9   :  { %2037 = vmatprep.subr.bf16.mxu1 %v4011_v3  ;;  %2658 = vmatprep.subr.bf16.mxu0 %v4138_v0  ;;  %v4096_v3 = vld [vmem:[#allocation3 + $0x2ac] ss:$28 sps:$4 sm:$0xff]  }
  0xab   :  { %1684 = vmatmul.mubr.bf16.vlgmr.msra.gmra.mxu1 %v4006_v4  ;;  %1877 = vmatmul.mubr.bf16.vlgmr.msra.gmra.mxu0 %v4012_v6  ;;  %v4102_v4 = vld [vmem:[#allocation3 + $0x2b4] ss:$28 sps:$4 sm:$0xff]   ;;  %v4142_v6 = vld [vmem:[#allocation7 + $0x64] ss:$8 sps:$4 sm:$0xff]  }
  0xac   :  { %2038 = vmatpush1.bf16.msra.mxu1 %v4009_v5  ;;  %1693 = vmatprep.mubr.bf16.mxu1 %v4015_v7  ;;  %v4140_v5 = vld [vmem:[#allocation7 + $0x60] ss:$8 sps:$4 sm:$0xff]  }
  0xad   :  { %1886 = vmatprep.mubr.bf16.mxu0 %v4018_v8  ;;  %2039 = vmatprep.subr.bf16.mxu1 %v4026_v9  ;;  %v4098_v7 = vld [vmem:[#allocation3 + $0x2a8] ss:$28 sps:$4 sm:$0xff]   ;;  %v4104_v8 = vld [vmem:[#allocation3 + $0x2b0] ss:$28 sps:$4 sm:$0xff]  }
  0xae   :  { %2659 = vmatpush1.bf16.msra.mxu0 %v4136_v63  ;;  %v4105_v9 = vld [vmem:[#allocation3 + $0x2e4] ss:$28 sps:$4 sm:$0xff]  }
  0xaf   :  { %2660 = vmatprep.subr.bf16.mxu0 %v4142_v6  ;;  %v4128_v63 = vld [vmem:[#allocation3 + $0x88] ss:$28 sps:$4 sm:$0xff]  }
  0xb0   :  { %2040 = vmatpush1.bf16.msra.mxu1 %v4024_v10  ;;  %v4108_v10 = vld [vmem:[#allocation3 + $0x2ec] ss:$28 sps:$4 sm:$0xff]  }
  0xb1   :  { %2041 = vmatprep.subr.bf16.mxu1 %v4041_v11  ;;  %v4144_v11 = vld [vmem:[#allocation7 + $0x50] ss:$8 sps:$4 sm:$0xff]  }
  0xb2   :  { %2661 = vmatpush1.bf16.msra.mxu0 %v4140_v5  ;;  %v4168_v5 = vld [vmem:[#allocation7 + $0xf4] ss:$8 sps:$4 sm:$0xff]  }
  0xb3   :  { %1694 = vmatmul.mubr.bf16.gmra.mxu1 %v4017_v12  ;;  %1887 = vmatmul.mubr.bf16.gmra.mxu0 %v4020_v13  ;;  %v4146_v12 = vld [vmem:[#allocation7 + $0x54] ss:$8 sps:$4 sm:$0xff]  }
  0xb4   :  { %1703 = vmatprep.mubr.bf16.mxu1 %v4021_v14  ;;  %1896 = vmatprep.mubr.bf16.mxu0 %v4027_v15  ;;  %v4107_v13 = vld [vmem:[#allocation3 + $0x2e0] ss:$28 sps:$4 sm:$0xff]   ;;  %v4110_v14 = vld [vmem:[#allocation3 + $0x2e8] ss:$28 sps:$4 sm:$0xff]  }
  0xb5   :  { %2042 = vmatpush1.bf16.msra.mxu1 %v4039_v16  ;;  %2662 = vmatprep.subr.bf16.mxu0 %v4146_v12  ;;  %v4111_v15 = vld [vmem:[#allocation3 + $0x31c] ss:$28 sps:$4 sm:$0xff]   ;;  %v4117_v16 = vld [vmem:[#allocation3 + $0x324] ss:$28 sps:$4 sm:$0xff]  }
  0xb6   :  { %2043 = vmatprep.subr.bf16.mxu1 %v4056_v17  ;;  %2663 = vmatpush1.bf16.msra.mxu0 %v4144_v11  ;;  %v4148_v17 = vld [vmem:[#allocation7 + $0x40] ss:$8 sps:$4 sm:$0xff]  }
  0xb9   :  { %2044 = vmatpush1.bf16.msra.mxu1 %v4054_v18  ;;  %v4150_v18 = vld [vmem:[#allocation7 + $0x44] ss:$8 sps:$4 sm:$0xff]  }
  0xba   :  { %2045 = vmatprep.subr.bf16.mxu1 %v4071_v21  ;;  %2664 = vmatprep.subr.bf16.mxu0 %v4150_v18  ;;  %v4120_v21 = vld [vmem:[#allocation3 + $0x354] ss:$28 sps:$4 sm:$0xff]  }
  0xbb   :  { %1704 = vmatmul.mubr.bf16.gmra.mxu1 %v4023_v19  ;;  %1897 = vmatmul.mubr.bf16.gmra.mxu0 %v4029_v20  ;;  %v4113_v19 = vld [vmem:[#allocation3 + $0x318] ss:$28 sps:$4 sm:$0xff]   ;;  %v4119_v20 = vld [vmem:[#allocation3 + $0x320] ss:$28 sps:$4 sm:$0xff]  }
  0xbc   :  { %1713 = vmatprep.mubr.bf16.mxu1 %v4030_v22  ;;  %1906 = vmatprep.mubr.bf16.mxu0 %v4033_v23  ;;  %v4123_v22 = vld [vmem:[#allocation3 + $0x35c] ss:$28 sps:$4 sm:$0xff]  }
  0xbd   :  { %2046 = vmatpush1.bf16.msra.mxu1 %v4069_v24  ;;  %2665 = vmatpush1.bf16.msra.mxu0 %v4148_v17  ;;  %v4152_v23 = vld [vmem:[#allocation7 + $0x30] ss:$8 sps:$4 sm:$0xff]   ;;  %v4154_v24 = vld [vmem:[#allocation7 + $0x34] ss:$8 sps:$4 sm:$0xff]  }
  0xbe   :  { %2047 = vmatprep.subr.bf16.mxu1 %v4086_v25  ;;  %v312_v25 = vlaneseq  ;;  %2666 = vmatprep.subr.bf16.mxu0 %v4154_v24 }
  0xc1   :  { %2048 = vmatpush1.bf16.msra.mxu1 %v4084_v26  ;;  %2667 = vmatpush1.bf16.msra.mxu0 %v4152_v23  ;;  %v4122_v26 = vld [vmem:[#allocation3 + $0x350] ss:$28 sps:$4 sm:$0xff]  }
  0xc2   :  { %2049 = vmatprep.subr.bf16.mxu1 %v4101_v27  ;;  %v4125_v27 = vld [vmem:[#allocation3 + $0x358] ss:$28 sps:$4 sm:$0xff]  }
  0xc3   :  { %1714 = vmatmul.mubr.bf16.gmra.mxu1 %v4032_v28  ;;  %1907 = vmatmul.mubr.bf16.gmra.mxu0 %v4035_v29  ;;  %v313_v28 = vshrl.u32 %v312_v25, 7  ;;  %v4156_v29 = vld [vmem:[#allocation7 + $0x20] ss:$8 sps:$4 sm:$0xff]  }
  0xc4   :  { %1723 = vmatprep.mubr.bf16.mxu1 %v4036_v30  ;;  %1916 = vmatprep.mubr.bf16.mxu0 %v4042_v31  ;;  %v4158_v30 = vld [vmem:[#allocation7 + $0x24] ss:$8 sps:$4 sm:$0xff]   ;;  %v5410_v31 = vmov 0  }
  0xc5   :  { %2050 = vmatpush1.bf16.msra.mxu1 %v4099_v32  ;;  %v4443_v32 = vsub.s32 0, %v313_v28  ;;  %2668 = vmatprep.subr.bf16.mxu0 %v4158_v30 }
  0xc6   :  { %2051 = vmatprep.subr.bf16.mxu1 %v4116_v33  ;;  %v310_v33 = vld [vmem:[%s5400_s2] sm:$0x3]  ;;  %2669 = vmatpush1.bf16.msra.mxu0 %v4156_v29  ;;  %v4130_v29 = vld [vmem:[#allocation3 + $0xf8] ss:$28 sps:$4 sm:$0xff]  }
  0xc7   :  { %5412 = vst [vmem:[#allocation10_spill] sm:$0xff] %v4443_v32 }
  0xc9   :  { %2052 = vmatpush1.bf16.msra.mxu1 %v4114_v34  ;;  %v4448_v34 = vsub.s32 1, %v313_v28 }
  0xcb   :  { %1724 = vmatmul.mubr.bf16.gmra.mxu1 %v4038_v35  ;;  %1917 = vmatmul.mubr.bf16.gmra.mxu0 %v4044_v36  ;;  %5413 = vst [vmem:[#allocation11_spill] sm:$0xff] %v4448_v34  ;;  %v4126_v35 = vld [vmem:[#allocation3 + $0x18] ss:$28 sps:$4 sm:$0xff]   ;;  %v4451_v36 = vrot.slane %v310_v33, %v4443_v32 }
  0xcc   :  { %1733 = vmatprep.mubr.bf16.mxu1 %v4045_v37  ;;  %1926 = vmatprep.mubr.bf16.mxu0 %v4048_v38  ;;  %v4454_v37 = vrot.slane %v310_v33, %v4448_v34  ;;  %v4160_v38 = vld [vmem:[#allocation7 + $0x10] ss:$8 sps:$4 sm:$0xff]   ;;  %v4133_v34 = vld [vmem:[#allocation3 + $0x1a0] ss:$28 sps:$4 sm:$0xff]  }
  0xd3   :  { %1734 = vmatmul.mubr.bf16.gmra.mxu1 %v4047_v39  ;;  %1927 = vmatmul.mubr.bf16.gmra.mxu0 %v4050_v40  ;;  %v4162_v39 = vld [vmem:[#allocation7 + $0x14] ss:$8 sps:$4 sm:$0xff]  }
  0xd4   :  { %1743 = vmatprep.mubr.bf16.mxu1 %v4051_v41  ;;  %1936 = vmatprep.mubr.bf16.mxu0 %v4057_v42 }
  0xd5   :  { %2670 = vmatprep.subr.bf16.mxu0 %v4162_v39  ;;  %v4172_v39 = vld [vmem:[#allocation7 + $0xd0] ss:$8 sps:$4 sm:$0xff]  }
  0xd6   :  { %2671 = vmatpush1.bf16.msra.mxu0 %v4160_v38 }
  0xdb   :  { %1744 = vmatmul.mubr.bf16.gmra.mxu1 %v4053_v43  ;;  %1937 = vmatmul.mubr.bf16.gmra.mxu0 %v4059_v44 }
  0xdc   :  { %1753 = vmatprep.mubr.bf16.mxu1 %v4060_v45  ;;  %1946 = vmatprep.mubr.bf16.mxu0 %v4063_v46 }
  0xe3   :  { %1754 = vmatmul.mubr.bf16.gmra.mxu1 %v4062_v47  ;;  %1947 = vmatmul.mubr.bf16.gmra.mxu0 %v4065_v48  ;;  %v4127_v48 = vld [vmem:[#allocation3 + $0x50] ss:$28 sps:$4 sm:$0xff]  }
  0xe4   :  { %1763 = vmatprep.mubr.bf16.mxu1 %v4066_v49  ;;  %1956 = vmatprep.mubr.bf16.mxu0 %v4072_v50 }
  0xeb   :  { %1764 = vmatmul.mubr.bf16.gmra.mxu1 %v4068_v51  ;;  %1957 = vmatmul.mubr.bf16.gmra.mxu0 %v4074_v52 }
  0xec   :  { %1773 = vmatprep.mubr.bf16.mxu1 %v4075_v53  ;;  %1966 = vmatprep.mubr.bf16.mxu0 %v4078_v54  ;;  %v4163_v53 = vld [vmem:[#allocation7] ss:$8 sps:$4 sm:$0xff]   ;;  %v4165_v54 = vld [vmem:[#allocation7 + $0x4] ss:$8 sps:$4 sm:$0xff]  }
  0xed   :  { %2672 = vmatprep.subr.bf16.mxu0 %v4165_v54 }
  0xee   :  { %2673 = vmatpush1.bf16.msra.mxu0 %v4163_v53 }
  0xef   :  { %2674 = vmatprep.subr.bf16.mxu0 %v4168_v5 }
  0xf3   :  { %1774 = vmatmul.mubr.bf16.gmra.mxu1 %v4077_v55  ;;  %1967 = vmatmul.mubr.bf16.gmra.mxu0 %v4080_v56 }
  0xf4   :  { %1783 = vmatprep.mubr.bf16.mxu1 %v4081_v57  ;;  %1976 = vmatprep.mubr.bf16.mxu0 %v4087_v58 }
  0xfb   :  { %1784 = vmatmul.mubr.bf16.gmra.mxu1 %v4083_v59  ;;  %1977 = vmatmul.mubr.bf16.gmra.mxu0 %v4089_v60 }
  0xfc   :  { %1793 = vmatprep.mubr.bf16.mxu1 %v4090_v61  ;;  %1986 = vmatprep.mubr.bf16.mxu0 %v4093_v62 }
 0x103   :  { %1794 = vmatmul.mubr.bf16.gmra.mxu1 %v4092_v1  ;;  %1987 = vmatmul.mubr.bf16.gmra.mxu0 %v4095_v2 }
 0x104   :  { %1803 = vmatprep.mubr.bf16.mxu1 %v4096_v3  ;;  %1996 = vmatprep.mubr.bf16.mxu0 %v4102_v4  ;;  %v4166_v4 = vld [vmem:[#allocation7 + $0xf0] ss:$8 sps:$4 sm:$0xff]  }
 0x105   :  { %2675 = vmatpush2.bf16.msra.mxu0 %v4166_v4 }
 0x10b   :  { %1804 = vmatmul.mubr.bf16.gmra.mxu1 %v4098_v7  ;;  %1997 = vmatmul.mubr.bf16.gmra.mxu0 %v4104_v8 }
 0x10c   :  { %1813 = vmatprep.mubr.bf16.mxu1 %v4105_v9  ;;  %2006 = vmatprep.mubr.bf16.mxu0 %v4108_v10 }
 0x113   :  { %1814 = vmatmul.mubr.bf16.gmra.mxu1 %v4107_v13  ;;  %2007 = vmatmul.mubr.bf16.gmra.mxu0 %v4110_v14  ;;  %v4129_v14 = vld [vmem:[#allocation3 + $0xc0] ss:$28 sps:$4 sm:$0xff]  }
 0x114   :  { %1823 = vmatprep.mubr.bf16.mxu1 %v4111_v15  ;;  %2016 = vmatprep.mubr.bf16.mxu0 %v4117_v16 }
 0x11b   :  { %1824 = vmatmul.mubr.bf16.gmra.mxu1 %v4113_v19  ;;  %2017 = vmatmul.mubr.bf16.gmra.mxu0 %v4119_v20  ;;  %v4169_v19 = vld [vmem:[#allocation7 + $0xe0] ss:$8 sps:$4 sm:$0xff]   ;;  %v4171_v20 = vld [vmem:[#allocation7 + $0xe4] ss:$8 sps:$4 sm:$0xff]  }
 0x11c   :  { %1833 = vmatprep.mubr.bf16.mxu1 %v4120_v21  ;;  %2026 = vmatprep.mubr.bf16.mxu0 %v4123_v22 }
 0x11d   :  { %2676 = vmatprep.subr.bf16.mxu0 %v4171_v20 }
 0x11e   :  { %2677 = vmatpush2.bf16.msra.mxu0 %v4169_v19 }
 0x123   :  { %1834 = vmatmul.mubr.bf16.gmra.mxu1 %v4122_v26  ;;  %2027 = vmatmul.mubr.bf16.gmra.mxu0 %v4125_v27 }
 0x124   :  { %2069 = vmatprep.mubr.bf16.mxu1 %v5410_v31 }
 0x12b   :  { %v1572_v40 = vpop.f32.mrf.mxu1  ;;  %2070 = vmatmul.mubr.bf16.vlgmr.msra.gmra.mxu1 %v4126_v35  ;;  %v4456_v41 = vpop.f32.mrf.mxu0 }
 0x12c   :  { %v4459_v42 = vadd.f32 %v1572_v40, %v4451_v36  ;;  %2079 = vmatprep.mubr.bf16.mxu1 %v5410_v31  ;;  %v4174_v40 = vld [vmem:[#allocation7 + $0xd4] ss:$8 sps:$4 sm:$0xff]  }
 0x12d   :  { %v1574_v43 = vpop.f32.mrf.mxu1  ;;  %v4462_v44 = vpop.f32.mrf.mxu0  ;;  %2678 = vmatprep.subr.bf16.mxu0 %v4174_v40 }
 0x12e   :  { %v4465_v45 = vadd.f32 %v1574_v43, %v4454_v37  ;;  %2679 = vmatpush2.bf16.msra.mxu0 %v4172_v39 }
 0x12f   :  { %v1576_v46 = vpop.f32.mrf.mxu1  ;;  %v4467_v47 = vpop.f32.mrf.mxu0 }
 0x130   :  { %v4470_v49 = vadd.f32 %v1576_v46, %v4451_v36 }
 0x131   :  { %v1578_v50 = vpop.f32.mrf.mxu1  ;;  %v4472_v51 = vpop.f32.mrf.mxu0 }
 0x132   :  { %v4475_v52 = vadd.f32 %v1578_v50, %v4454_v37 }
 0x133   :  { %v1582_v55 = vpop.f32.mrf.mxu1  ;;  %2080 = vmatmul.mubr.bf16.gmra.mxu1 %v4127_v48  ;;  %v4477_v56 = vpop.f32.mrf.mxu0 }
 0x134   :  { %v4480_v57 = vadd.f32 %v1582_v55, %v4451_v36  ;;  %2089 = vmatprep.mubr.bf16.mxu1 %v5410_v31 }
 0x135   :  { %v1584_v58 = vpop.f32.mrf.mxu1  ;;  %v4483_v59 = vpop.f32.mrf.mxu0 }
 0x136   :  { %v4486_v60 = vadd.f32 %v1584_v58, %v4454_v37 }
 0x137   :  { %v1586_v61 = vpop.f32.mrf.mxu1  ;;  %v4488_v62 = vpop.f32.mrf.mxu0 }
 0x138   :  { %5414 = vst [vmem:[#allocation12_spill] sm:$0xff] %v4488_v62  ;;  %v4491_v0 = vadd.f32 %v1586_v61, %v4451_v36  ;;  %v4131_v61 = vld [vmem:[#allocation3 + $0x130] ss:$28 sps:$4 sm:$0xff]  }
 0x139   :  { %v1588_v1 = vpop.f32.mrf.mxu1  ;;  %v4493_v2 = vpop.f32.mrf.mxu0 }
 0x13a   :  { %5415 = vst [vmem:[#allocation13_spill] sm:$0xff] %v4493_v2  ;;  %v4496_v3 = vadd.f32 %v1588_v1, %v4454_v37 }
 0x13b   :  { %v1592_v6 = vpop.f32.mrf.mxu1  ;;  %2090 = vmatmul.mubr.bf16.gmra.mxu1 %v4128_v63  ;;  %v4498_v7 = vpop.f32.mrf.mxu0 }
 0x13c   :  { %v4501_v8 = vadd.f32 %v1592_v6, %v4451_v36  ;;  %2099 = vmatprep.mubr.bf16.mxu1 %v5410_v31  ;;  %v4175_v6 = vld [vmem:[#allocation7 + $0xc0] ss:$8 sps:$4 sm:$0xff]  }
 0x13d   :  { %v1594_v9 = vpop.f32.mrf.mxu1  ;;  %v4504_v10 = vpop.f32.mrf.mxu0 }
 0x13e   :  { %v4507_v11 = vadd.f32 %v1594_v9, %v4454_v37  ;;  %v4177_v9 = vld [vmem:[#allocation7 + $0xc4] ss:$8 sps:$4 sm:$0xff]  }
 0x13f   :  { %v1596_v12 = vpop.f32.mrf.mxu1  ;;  %v4509_v13 = vpop.f32.mrf.mxu0  ;;  %2680 = vmatprep.subr.bf16.mxu0 %v4177_v9 }
 0x140   :  { %5416 = vst [vmem:[#allocation14_spill] sm:$0xff] %v4509_v13  ;;  %v4512_v15 = vadd.f32 %v1596_v12, %v4451_v36  ;;  %2681 = vmatpush2.bf16.msra.mxu0 %v4175_v6  ;;  %v4186_v13 = vld [vmem:[#allocation7 + $0x94] ss:$8 sps:$4 sm:$0xff]  }
 0x141   :  { %v1598_v16 = vpop.f32.mrf.mxu1  ;;  %v4514_v17 = vpop.f32.mrf.mxu0 }
 0x142   :  { %5417 = vst [vmem:[#allocation15_spill] sm:$0xff] %v4514_v17  ;;  %v4517_v18 = vadd.f32 %v1598_v16, %v4454_v37 }
 0x143   :  { %v1602_v21 = vpop.f32.mrf.mxu1  ;;  %2100 = vmatmul.mubr.bf16.gmra.mxu1 %v4129_v14  ;;  %v4519_v22 = vpop.f32.mrf.mxu0 }
 0x144   :  { %v4522_v23 = vadd.f32 %v1602_v21, %v4451_v36  ;;  %2109 = vmatprep.mubr.bf16.mxu1 %v5410_v31 }
 0x145   :  { %v1604_v24 = vpop.f32.mrf.mxu1  ;;  %v4525_v25 = vpop.f32.mrf.mxu0 }
 0x146   :  { %v4528_v26 = vadd.f32 %v1604_v24, %v4454_v37 }
 0x147   :  { %v1606_v27 = vpop.f32.mrf.mxu1  ;;  %v4530_v28 = vpop.f32.mrf.mxu0 }
 0x148   :  { %5418 = vst [vmem:[#allocation16_spill] sm:$0xff] %v4530_v28  ;;  %v4533_v30 = vadd.f32 %v1606_v27, %v4451_v36 }
 0x149   :  { %v1608_v33 = vpop.f32.mrf.mxu1  ;;  %v4535_v35 = vpop.f32.mrf.mxu0 }
 0x14a   :  { %5419 = vst [vmem:[#allocation17_spill] sm:$0xff] %v4535_v35  ;;  %v4538_v38 = vadd.f32 %v1608_v33, %v4454_v37  ;;  %v4134_v35 = vld [vmem:[#allocation3 + $0x1d8] ss:$28 sps:$4 sm:$0xff]  }
 0x14b   :  { %v1612_v43 = vpop.f32.mrf.mxu1  ;;  %2110 = vmatmul.mubr.bf16.gmra.mxu1 %v4130_v29  ;;  %v4540_v46 = vpop.f32.mrf.mxu0  ;;  %v4132_v29 = vld [vmem:[#allocation3 + $0x168] ss:$28 sps:$4 sm:$0xff]  }
 0x14c   :  { %v4543_v48 = vadd.f32 %v1612_v43, %v4451_v36  ;;  %2119 = vmatprep.mubr.bf16.mxu1 %v5410_v31 }
 0x14d   :  { %v1614_v50 = vpop.f32.mrf.mxu1  ;;  %v4546_v53 = vpop.f32.mrf.mxu0 }
 0x14e   :  { %v4549_v54 = vadd.f32 %v1614_v50, %v4454_v37  ;;  %v4178_v50 = vld [vmem:[#allocation7 + $0xb0] ss:$8 sps:$4 sm:$0xff]  }
 0x14f   :  { %v1616_v55 = vpop.f32.mrf.mxu1  ;;  %v4551_v58 = vpop.f32.mrf.mxu0 }
 0x150   :  { %5420 = vst [vmem:[#allocation18_spill] sm:$0xff] %v4551_v58  ;;  %v4554_v63 = vadd.f32 %v1616_v55, %v4451_v36  ;;  %v4180_v55 = vld [vmem:[#allocation7 + $0xb4] ss:$8 sps:$4 sm:$0xff]  }
 0x151   :  { %v1618_v1 = vpop.f32.mrf.mxu1  ;;  %v4556_v4 = vpop.f32.mrf.mxu0  ;;  %2682 = vmatprep.subr.bf16.mxu0 %v4180_v55  ;;  %v4181_v55 = vld [vmem:[#allocation7 + $0xa0] ss:$8 sps:$4 sm:$0xff]  }
 0x152   :  { %5421 = vst [vmem:[#allocation19_spill] sm:$0xff] %v4556_v4  ;;  %v4559_v5 = vadd.f32 %v1618_v1, %v4454_v37  ;;  %2683 = vmatpush2.bf16.msra.mxu0 %v4178_v50 }
 0x153   :  { %v1622_v12 = vpop.f32.mrf.mxu1  ;;  %2120 = vmatmul.mubr.bf16.gmra.mxu1 %v4131_v61  ;;  %v4561_v14 = vpop.f32.mrf.mxu0 }
 0x154   :  { %v4564_v16 = vadd.f32 %v1622_v12, %v4451_v36  ;;  %2129 = vmatprep.mubr.bf16.mxu1 %v5410_v31 }
 0x155   :  { %v1624_v19 = vpop.f32.mrf.mxu1  ;;  %v4567_v20 = vpop.f32.mrf.mxu0 }
 0x156   :  { %v4570_v21 = vadd.f32 %v1624_v19, %v4454_v37 }
 0x157   :  { %v1626_v24 = vpop.f32.mrf.mxu1  ;;  %v4572_v27 = vpop.f32.mrf.mxu0 }
 0x158   :  { %5422 = vst [vmem:[#allocation20_spill] sm:$0xff] %v4572_v27  ;;  %v4575_v33 = vadd.f32 %v1626_v24, %v4451_v36 }
 0x159   :  { %v1628_v39 = vpop.f32.mrf.mxu1  ;;  %v4577_v40 = vpop.f32.mrf.mxu0 }
 0x15a   :  { %5423 = vst [vmem:[#allocation21_spill] sm:$0xff] %v4577_v40  ;;  %v4580_v43 = vadd.f32 %v1628_v39, %v4454_v37  ;;  %v4183_v40 = vld [vmem:[#allocation7 + $0xa4] ss:$8 sps:$4 sm:$0xff]  }
 0x15b   :  { %v1632_v61 = vpop.f32.mrf.mxu1  ;;  %2130 = vmatmul.mubr.bf16.gmra.mxu1 %v4132_v29  ;;  %v4582_v1 = vpop.f32.mrf.mxu0  ;;  %2684 = vmatprep.subr.bf16.mxu0 %v4183_v40  ;;  %v1495_v40 = vadd.f32 %v4462_v44, %v4454_v37 }
 0x15c   :  { %v4585_v6 = vadd.f32 %v1632_v61, %v4451_v36  ;;  %2139 = vmatprep.mubr.bf16.mxu1 %v5410_v31  ;;  %2685 = vmatpush2.bf16.msra.mxu0 %v4181_v55 }
 0x15d   :  { %v1634_v9 = vpop.f32.mrf.mxu1  ;;  %v4588_v12 = vpop.f32.mrf.mxu0  ;;  %2686 = vmatprep.subr.bf16.mxu0 %v4186_v13 }
 0x15e   :  { %v4591_v19 = vadd.f32 %v1634_v9, %v4454_v37 }
 0x15f   :  { %v1636_v24 = vpop.f32.mrf.mxu1  ;;  %v4593_v39 = vpop.f32.mrf.mxu0 }
 0x160   :  { %5424 = vst [vmem:[#allocation22_spill] sm:$0xff] %v4593_v39  ;;  %v4596_v29 = vadd.f32 %v1636_v24, %v4451_v36  ;;  %v5426_v39 = vmov 0  }
 0x161   :  { %v1638_v32 = vpop.f32.mrf.mxu1  ;;  %v4598_v61 = vpop.f32.mrf.mxu0 }
 0x162   :  { %5425 = vst [vmem:[#allocation23_spill] sm:$0xff] %v4598_v61  ;;  %v4601_v31 = vadd.f32 %v1638_v32, %v4454_v37 }
 0x163   :  { %v1642_v27 = vpop.f32.mrf.mxu1  ;;  %2140 = vmatmul.mubr.bf16.gmra.mxu1 %v4133_v34  ;;  %v4603_v50 = vpop.f32.mrf.mxu0  ;;  %v1493_v34 = vadd.f32 %v4456_v41, %v4451_v36 }
 0x164   :  { %v4606_v9 = vadd.f32 %v1642_v27, %v4451_v36  ;;  %2149 = vmatprep.mubr.bf16.mxu1 %v5426_v39 }
 0x165   :  { %v1644_v24 = vpop.f32.mrf.mxu1  ;;  %v4609_v4 = vpop.f32.mrf.mxu0 }
 0x166   :  { %v4612_v61 = vadd.f32 %v1644_v24, %v4454_v37  ;;  %v4184_v24 = vld [vmem:[#allocation7 + $0x90] ss:$8 sps:$4 sm:$0xff]  }
 0x167   :  { %v1646_v32 = vpop.f32.mrf.mxu1  ;;  %v4614_v58 = vpop.f32.mrf.mxu0  ;;  %2687 = vmatpush2.bf16.msra.mxu0 %v4184_v24 }
 0x168   :  { %5427 = vst [vmem:[#allocation24_spill] sm:$0xff] %v4614_v58  ;;  %v4619_v27 = vadd.f32 %v1646_v32, %v4451_v36 }
 0x169   :  { %v1648_v28 = vpop.f32.mrf.mxu1  ;;  %v4621_v17 = vpop.f32.mrf.mxu0 }
 0x16a   :  { %5428 = vst [vmem:[#allocation25_spill] sm:$0xff] %v4621_v17  ;;  %v4626_v55 = vadd.f32 %v1648_v28, %v4454_v37  ;;  %v4135_v28 = vld [vmem:[#allocation3 + $0x210] ss:$28 sps:$4 sm:$0xff]  }
 0x16b   :  { %v1685_v2 = vpop.f32.mrf.mxu1  ;;  %2150 = vmatmul.mubr.bf16.gmra.mxu1 %v4134_v35  ;;  %v4628_v58 = vpop.f32.mrf.mxu0 }
 0x16c   :  { %5429 = vst [vmem:[#allocation26_spill] sm:$0xff] %v4626_v55  ;;  %5430 = vst [vmem:[#allocation27_spill] sm:$0xff] %v4628_v58  ;;  %v4630_v62 = vadd.f32 %v1685_v2, %v1493_v34  ;;  %2159 = vmatprep.mubr.bf16.mxu1 %v5426_v39  ;;  %v1503_v55 = vadd.f32 %v4477_v56, %v4451_v36  ;;  %v1505_v2 = vadd.f32 %v4483_v59, %v4454_v37 }
 0x16d   :  { %v1687_v41 = vpop.f32.mrf.mxu1  ;;  %v4633_v32 = vpop.f32.mrf.mxu0  ;;  %v1513_v59 = vadd.f32 %v4498_v7, %v4451_v36  ;;  %v4143_v7 = vld [vmem:[#allocation3 + $0x280] ss:$28 sps:$4 sm:$0xff]  }
 0x16e   :  { %5431 = vst [vmem:[#allocation28_spill] sm:$0xff] %v4633_v32  ;;  %v4635_v17 = vadd.f32 %v1687_v41, %v1495_v40  ;;  %v4189_v40 = vld [vmem:[#allocation7 + $0x84] ss:$8 sps:$4 sm:$0xff]   ;;  %v4187_v32 = vld [vmem:[#allocation7 + $0x80] ss:$8 sps:$4 sm:$0xff]  }
 0x16f   :  { %v4637_v44 = vpop.f32.mrf.mxu1  ;;  %v4643_v58 = vpop.f32.mrf.mxu0  ;;  %2688 = vmatprep.subr.bf16.mxu0 %v4189_v40 }
 0x170   :  { %5432 = vst [vmem:[#allocation29_spill] sm:$0xff] %v4635_v17  ;;  %5433 = vst [vmem:[#allocation30_spill] sm:$0xff] %v4643_v58  ;;  %v4139_v58 = vld [vmem:[#allocation3 + $0x248] ss:$28 sps:$4 sm:$0xff]   ;;  %2689 = vmatpush2.bf16.msra.mxu0 %v4187_v32 }
 0x171   :  { %v4641_v35 = vpop.f32.mrf.mxu1  ;;  %v4650_v24 = vpop.f32.mrf.mxu0 }
 0x172   :  { %5435 = vst [vmem:[#allocation32_spill] sm:$0xff] %v4650_v24 }
 0x173   :  { %v1695_v13 = vpop.f32.mrf.mxu1  ;;  %2160 = vmatmul.mubr.bf16.gmra.mxu1 %v4135_v28  ;;  %v4658_v28 = vpop.f32.mrf.mxu0 }
 0x174   :  { %v4647_v34 = vadd.f32 %v1695_v13, %v1503_v55  ;;  %2169 = vmatprep.mubr.bf16.mxu1 %v5426_v39  ;;  %v1515_v13 = vadd.f32 %v4504_v10, %v4454_v37 }
 0x175   :  { %v1697_v41 = vpop.f32.mrf.mxu1 }
 0x176   :  { %5434 = vst [vmem:[#allocation31_spill] sm:$0xff] %v4647_v34  ;;  %v4652_v17 = vadd.f32 %v1697_v41, %v1505_v2  ;;  %v4667_v2 = vpop.f32.mrf.mxu0 }
 0x177   :  { %v4654_v56 = vpop.f32.mrf.mxu1 }
 0x178   :  { %5436 = vst [vmem:[#allocation33_spill] sm:$0xff] %v4652_v17  ;;  %v4675_v17 = vpop.f32.mrf.mxu0 }
 0x179   :  { %v4660_v55 = vpop.f32.mrf.mxu1 }
 0x17a   :  { %5437 = vst [vmem:[#allocation34_spill] sm:$0xff] %v4660_v55  ;;  %v1523_v55 = vadd.f32 %v4519_v22, %v4451_v36  ;;  %v4147_v22 = vld [vmem:[#allocation3 + $0x2b8] ss:$28 sps:$4 sm:$0xff]  }
 0x17b   :  { %v1705_v34 = vpop.f32.mrf.mxu1  ;;  %2170 = vmatmul.mubr.bf16.gmra.mxu1 %v4139_v58  ;;  %v1525_v58 = vadd.f32 %v4525_v25, %v4454_v37 }
 0x17c   :  { %v4664_v24 = vadd.f32 %v1705_v34, %v1513_v59  ;;  %2179 = vmatprep.mubr.bf16.mxu1 %v5426_v39 }
 0x17d   :  { %v1707_v40 = vpop.f32.mrf.mxu1 }
 0x17e   :  { %5438 = vst [vmem:[#allocation35_spill] sm:$0xff] %v4664_v24  ;;  %v4669_v32 = vadd.f32 %v1707_v40, %v1515_v13  ;;  %v4684_v13 = vpop.f32.mrf.mxu0 }
 0x17f   :  { %v4671_v41 = vpop.f32.mrf.mxu1 }
 0x180   :  { %5439 = vst [vmem:[#allocation36_spill] sm:$0xff] %v4669_v32  ;;  %5440 = vst [vmem:[#allocation37_spill] sm:$0xff] %v4671_v41  ;;  %v4692_v24 = vpop.f32.mrf.mxu0 }
 0x181   :  { %v4677_v10 = vpop.f32.mrf.mxu1 }
 0x182   :  { %5441 = vst [vmem:[#allocation38_spill] sm:$0xff] %v4677_v10  ;;  %v1533_v10 = vadd.f32 %v4540_v46, %v4451_v36  ;;  %v4151_v46 = vld [vmem:[#allocation3 + $0x2f0] ss:$28 sps:$4 sm:$0xff]  }
 0x183   :  { %v1715_v34 = vpop.f32.mrf.mxu1  ;;  %2180 = vmatmul.mubr.bf16.gmra.mxu1 %v4143_v7 }
 0x184   :  { %v4681_v59 = vadd.f32 %v1715_v34, %v1523_v55  ;;  %2189 = vmatprep.mubr.bf16.mxu1 %v5426_v39  ;;  %v1535_v55 = vadd.f32 %v4546_v53, %v4454_v37 }
 0x185   :  { %v1717_v40 = vpop.f32.mrf.mxu1 }
 0x186   :  { %5442 = vst [vmem:[#allocation39_spill] sm:$0xff] %v4681_v59  ;;  %v4686_v32 = vadd.f32 %v1717_v40, %v1525_v58  ;;  %v4701_v58 = vpop.f32.mrf.mxu0 }
 0x187   :  { %v4688_v41 = vpop.f32.mrf.mxu1 }
 0x188   :  { %5443 = vst [vmem:[#allocation40_spill] sm:$0xff] %v4686_v32  ;;  %5444 = vst [vmem:[#allocation41_spill] sm:$0xff] %v4688_v41  ;;  %v4709_v59 = vpop.f32.mrf.mxu0 }
 0x189   :  { %v4694_v25 = vpop.f32.mrf.mxu1 }
 0x18a   :  { %5445 = vst [vmem:[#allocation42_spill] sm:$0xff] %v4694_v25  ;;  %v1543_v25 = vadd.f32 %v4561_v14, %v4451_v36  ;;  %v4155_v14 = vld [vmem:[#allocation3 + $0x328] ss:$28 sps:$4 sm:$0xff]  }
 0x18b   :  { %v1725_v7 = vpop.f32.mrf.mxu1  ;;  %2190 = vmatmul.mubr.bf16.gmra.mxu1 %v4147_v22 }
 0x18c   :  { %v4698_v34 = vadd.f32 %v1725_v7, %v1533_v10  ;;  %2199 = vmatprep.mubr.bf16.mxu1 %v5426_v39  ;;  %v1545_v10 = vadd.f32 %v4567_v20, %v4454_v37 }
 0x18d   :  { %v1727_v40 = vpop.f32.mrf.mxu1 }
 0x18e   :  { %5446 = vst [vmem:[#allocation43_spill] sm:$0xff] %v4698_v34  ;;  %v4703_v32 = vadd.f32 %v1727_v40, %v1535_v55  ;;  %v4718_v55 = vpop.f32.mrf.mxu0 }
 0x18f   :  { %v4705_v41 = vpop.f32.mrf.mxu1 }
 0x190   :  { %5447 = vst [vmem:[#allocation44_spill] sm:$0xff] %v4703_v32  ;;  %5448 = vst [vmem:[#allocation45_spill] sm:$0xff] %v4705_v41  ;;  %v4726_v34 = vpop.f32.mrf.mxu0 }
 0x191   :  { %v4711_v53 = vpop.f32.mrf.mxu1 }
 0x192   :  { %5449 = vst [vmem:[#allocation46_spill] sm:$0xff] %v4711_v53  ;;  %v1553_v53 = vadd.f32 %v4582_v1, %v4451_v36  ;;  %v4159_v1 = vld [vmem:[#allocation3 + $0x360] ss:$28 sps:$4 sm:$0xff]  }
 0x193   :  { %v1735_v22 = vpop.f32.mrf.mxu1  ;;  %2200 = vmatmul.mubr.bf16.gmra.mxu1 %v4151_v46 }
 0x194   :  { %v4715_v7 = vadd.f32 %v1735_v22, %v1543_v25  ;;  %2209 = vmatprep.mubr.bf16.mxu1 %v5426_v39  ;;  %v1555_v25 = vadd.f32 %v4588_v12, %v4454_v37 }
 0x195   :  { %v1737_v40 = vpop.f32.mrf.mxu1 }
 0x196   :  { %5450 = vst [vmem:[#allocation47_spill] sm:$0xff] %v4715_v7  ;;  %v4720_v32 = vadd.f32 %v1737_v40, %v1545_v10  ;;  %v4735_v10 = vpop.f32.mrf.mxu0 }
 0x197   :  { %v4722_v41 = vpop.f32.mrf.mxu1 }
 0x198   :  { %5451 = vst [vmem:[#allocation48_spill] sm:$0xff] %v4720_v32  ;;  %5452 = vst [vmem:[#allocation49_spill] sm:$0xff] %v4722_v41  ;;  %v4743_v7 = vpop.f32.mrf.mxu0 }
 0x199   :  { %v4728_v20 = vpop.f32.mrf.mxu1 }
 0x19a   :  { %5453 = vst [vmem:[#allocation50_spill] sm:$0xff] %v4728_v20  ;;  %v1563_v20 = vadd.f32 %v4603_v50, %v4451_v36 }
 0x19b   :  { %v1745_v46 = vpop.f32.mrf.mxu1  ;;  %2210 = vmatmul.mubr.bf16.gmra.mxu1 %v4155_v14 }
 0x19c   :  { %v4732_v22 = vadd.f32 %v1745_v46, %v1553_v53  ;;  %2219 = vmatprep.mubr.bf16.mxu1 %v5426_v39  ;;  %v1565_v53 = vadd.f32 %v4609_v4, %v4454_v37  ;;  %v4751_v46 = vpop.f32.mrf.mxu0 }
 0x19d   :  { %v1747_v40 = vpop.f32.mrf.mxu1 }
 0x19e   :  { %5454 = vst [vmem:[#allocation51_spill] sm:$0xff] %v4732_v22  ;;  %v4737_v32 = vadd.f32 %v1747_v40, %v1555_v25 }
 0x19f   :  { %v4739_v41 = vpop.f32.mrf.mxu1 }
 0x1a0   :  { %5455 = vst [vmem:[#allocation52_spill] sm:$0xff] %v4737_v32  ;;  %5456 = vst [vmem:[#allocation53_spill] sm:$0xff] %v4739_v41  ;;  %v4757_v41 = vpop.f32.mrf.mxu0 }
 0x1a1   :  { %v4745_v12 = vpop.f32.mrf.mxu1 }
 0x1a2   :  { %5457 = vst [vmem:[#allocation54_spill] sm:$0xff] %v4745_v12  ;;  %v4764_v4 = vpop.f32.mrf.mxu0 }
 0x1a3   :  { %v1755_v14 = vpop.f32.mrf.mxu1  ;;  %2220 = vmatmul.mubr.bf16.gmra.mxu1 %v4159_v1 }
 0x1a4   :  { %v4749_v39 = vadd.f32 %v1755_v14, %v1563_v20 }
 0x1a5   :  { %v1757_v25 = vpop.f32.mrf.mxu1 }
 0x1a6   :  { %v4753_v40 = vadd.f32 %v1757_v25, %v1565_v53  ;;  %v4772_v25 = vpop.f32.mrf.mxu0 }
 0x1a7   :  { %v4755_v32 = vpop.f32.mrf.mxu1 }
 0x1a8   :  { %5458 = vst [vmem:[#allocation55_spill] sm:$0xff] %v4753_v40  ;;  %5459 = vst [vmem:[#allocation56_spill] sm:$0xff] %v4755_v32 }
 0x1a9   :  { %v4759_v50 = vpop.f32.mrf.mxu1 }
 0x1aa   :  { %5460 = vst [vmem:[#allocation57_spill] sm:$0xff] %v4759_v50 }
 0x1ab   :  { %v1765_v22 = vpop.f32.mrf.mxu1 }
 0x1ac   :  { %v4762_v12 = vadd.f32 %v1765_v22, %v4459_v42  ;;  %v4780_v22 = vpop.f32.mrf.mxu0 }
 0x1ad   :  { %v1767_v1 = vpop.f32.mrf.mxu1 }
 0x1ae   :  { %5461 = vst [vmem:[#allocation58_spill] sm:$0xff] %v4762_v12  ;;  %v4767_v20 = vadd.f32 %v1767_v1, %v4465_v45 }
 0x1af   :  { %v1769_v14 = vpop.f32.mrf.mxu1 }
 0x1b0   :  { %v4770_v53 = vadd.f32 %v1769_v14, %v4470_v49  ;;  %v4788_v14 = vpop.f32.mrf.mxu0 }
 0x1b1   :  { %v1771_v40 = vpop.f32.mrf.mxu1 }
 0x1b2   :  { %5462 = vst [vmem:[#allocation59_spill] sm:$0xff] %v4770_v53  ;;  %v4775_v32 = vadd.f32 %v1771_v40, %v4475_v52 }
 0x1b3   :  { %v1775_v50 = vpop.f32.mrf.mxu1 }
 0x1b4   :  { %v4778_v42 = vadd.f32 %v1775_v50, %v4480_v57  ;;  %v4796_v50 = vpop.f32.mrf.mxu0 }
 0x1b5   :  { %v1777_v12 = vpop.f32.mrf.mxu1 }
 0x1b6   :  { %5463 = vst [vmem:[#allocation60_spill] sm:$0xff] %v4778_v42  ;;  %v4783_v45 = vadd.f32 %v1777_v12, %v4486_v60 }
 0x1b7   :  { %v1779_v1 = vpop.f32.mrf.mxu1 }
 0x1b8   :  { %v4786_v49 = vadd.f32 %v1779_v1, %v4491_v0  ;;  %v4804_v1 = vpop.f32.mrf.mxu0 }
 0x1b9   :  { %v1781_v53 = vpop.f32.mrf.mxu1 }
 0x1ba   :  { %5464 = vst [vmem:[#allocation61_spill] sm:$0xff] %v4786_v49  ;;  %v4791_v52 = vadd.f32 %v1781_v53, %v4496_v3 }
 0x1bb   :  { %v1785_v40 = vpop.f32.mrf.mxu1 }
 0x1bc   :  { %v4794_v57 = vadd.f32 %v1785_v40, %v4501_v8  ;;  %v4812_v40 = vpop.f32.mrf.mxu0 }
 0x1bd   :  { %v1787_v42 = vpop.f32.mrf.mxu1 }
 0x1be   :  { %5465 = vst [vmem:[#allocation62_spill] sm:$0xff] %v4794_v57  ;;  %v4799_v60 = vadd.f32 %v1787_v42, %v4507_v11 }
 0x1bf   :  { %v1789_v12 = vpop.f32.mrf.mxu1 }
 0x1c0   :  { %5466 = vst [vmem:[#allocation63_spill] sm:$0xff] %v4799_v60  ;;  %v4802_v0 = vadd.f32 %v1789_v12, %v4512_v15  ;;  %v4820_v12 = vpop.f32.mrf.mxu0 }
 0x1c1   :  { %v1791_v49 = vpop.f32.mrf.mxu1 }
 0x1c2   :  { %5467 = vst [vmem:[#allocation64_spill] sm:$0xff] %v4802_v0  ;;  %v4807_v3 = vadd.f32 %v1791_v49, %v4517_v18 }
 0x1c3   :  { %v1795_v53 = vpop.f32.mrf.mxu1 }
 0x1c4   :  { %5468 = vst [vmem:[#allocation65_spill] sm:$0xff] %v4807_v3  ;;  %v4810_v8 = vadd.f32 %v1795_v53, %v4522_v23  ;;  %v4828_v53 = vpop.f32.mrf.mxu0 }
 0x1c5   :  { %v1797_v57 = vpop.f32.mrf.mxu1 }
 0x1c6   :  { %5469 = vst [vmem:[#allocation66_spill] sm:$0xff] %v4810_v8  ;;  %v4815_v11 = vadd.f32 %v1797_v57, %v4528_v26 }
 0x1c7   :  { %v1799_v42 = vpop.f32.mrf.mxu1 }
 0x1c8   :  { %5470 = vst [vmem:[#allocation67_spill] sm:$0xff] %v4815_v11  ;;  %v4818_v15 = vadd.f32 %v1799_v42, %v4533_v30  ;;  %v4836_v42 = vpop.f32.mrf.mxu0 }
 0x1c9   :  { %v1801_v0 = vpop.f32.mrf.mxu1 }
 0x1ca   :  { %5471 = vst [vmem:[#allocation68_spill] sm:$0xff] %v4818_v15  ;;  %v4823_v18 = vadd.f32 %v1801_v0, %v4538_v38 }
 0x1cb   :  { %v1805_v49 = vpop.f32.mrf.mxu1 }
 0x1cc   :  { %5472 = vst [vmem:[#allocation69_spill] sm:$0xff] %v4823_v18  ;;  %v4826_v23 = vadd.f32 %v1805_v49, %v4543_v48  ;;  %v4844_v49 = vpop.f32.mrf.mxu0 }
 0x1cd   :  { %v1807_v8 = vpop.f32.mrf.mxu1 }
 0x1ce   :  { %5473 = vst [vmem:[#allocation70_spill] sm:$0xff] %v4826_v23  ;;  %v4831_v26 = vadd.f32 %v1807_v8, %v4549_v54 }
 0x1cf   :  { %v1809_v57 = vpop.f32.mrf.mxu1 }
 0x1d0   :  { %5474 = vst [vmem:[#allocation71_spill] sm:$0xff] %v4831_v26  ;;  %v4834_v30 = vadd.f32 %v1809_v57, %v4554_v63  ;;  %v4852_v57 = vpop.f32.mrf.mxu0 }
 0x1d1   :  { %v1811_v15 = vpop.f32.mrf.mxu1 }
 0x1d2   :  { %5475 = vst [vmem:[#allocation72_spill] sm:$0xff] %v4834_v30  ;;  %v4839_v38 = vadd.f32 %v1811_v15, %v4559_v5 }
 0x1d3   :  { %v1815_v0 = vpop.f32.mrf.mxu1 }
 0x1d4   :  { %5476 = vst [vmem:[#allocation73_spill] sm:$0xff] %v4839_v38  ;;  %v4842_v48 = vadd.f32 %v1815_v0, %v4564_v16  ;;  %v4860_v0 = vpop.f32.mrf.mxu0  ;;  %v5494_v38 = vld [vmem:[#allocation30_spill] sm:$0xff] }
 0x1d5   :  { %v1817_v23 = vpop.f32.mrf.mxu1 }
 0x1d6   :  { %5477 = vst [vmem:[#allocation74_spill] sm:$0xff] %v4842_v48  ;;  %v4847_v54 = vadd.f32 %v1817_v23, %v4570_v21 }
 0x1d7   :  { %v1819_v8 = vpop.f32.mrf.mxu1 }
 0x1d8   :  { %5478 = vst [vmem:[#allocation75_spill] sm:$0xff] %v4847_v54  ;;  %v4850_v63 = vadd.f32 %v1819_v8, %v4575_v33  ;;  %v4868_v8 = vpop.f32.mrf.mxu0 }
 0x1d9   :  { %v1821_v30 = vpop.f32.mrf.mxu1 }
 0x1da   :  { %5479 = vst [vmem:[#allocation76_spill] sm:$0xff] %v4850_v63  ;;  %v4855_v5 = vadd.f32 %v1821_v30, %v4580_v43 }
 0x1db   :  { %v1825_v15 = vpop.f32.mrf.mxu1 }
 0x1dc   :  { %5480 = vst [vmem:[#allocation77_spill] sm:$0xff] %v4855_v5  ;;  %v4858_v16 = vadd.f32 %v1825_v15, %v4585_v6  ;;  %v4876_v15 = vpop.f32.mrf.mxu0 }
 0x1dd   :  { %v1827_v48 = vpop.f32.mrf.mxu1 }
 0x1de   :  { %5481 = vst [vmem:[#allocation78_spill] sm:$0xff] %v4858_v16  ;;  %v4863_v21 = vadd.f32 %v1827_v48, %v4591_v19  ;;  %v1497_v19 = vadd.f32 %v4467_v47, %v4451_v36 }
 0x1df   :  { %v1829_v23 = vpop.f32.mrf.mxu1 }
 0x1e0   :  { %5482 = vst [vmem:[#allocation79_spill] sm:$0xff] %v4863_v21  ;;  %v4866_v33 = vadd.f32 %v1829_v23, %v4596_v29  ;;  %v1499_v23 = vadd.f32 %v4472_v51, %v4454_v37 }
 0x1e1   :  { %v1831_v63 = vpop.f32.mrf.mxu1 }
 0x1e2   :  { %5483 = vst [vmem:[#allocation80_spill] sm:$0xff] %v4866_v33  ;;  %v4871_v43 = vadd.f32 %v1831_v63, %v4601_v31  ;;  %v4888_v63 = vpop.f32.mrf.mxu0  ;;  %v5489_v33 = vld [vmem:[#allocation26_spill] sm:$0xff]  ;;  %v1692_v51 = vadd.f32 %v4641_v35, %v1499_v23  ;;  %v5497_v35 = vld [vmem:[#allocation31_spill] sm:$0xff] }
 0x1e3   :  { %v1835_v30 = vpop.f32.mrf.mxu1 }
 0x1e4   :  { %5484 = vst [vmem:[#allocation81_spill] sm:$0xff] %v4871_v43  ;;  %v4874_v6 = vadd.f32 %v1835_v30, %v4606_v9  ;;  %v5488_v30 = vld [vmem:[#allocation27_spill] sm:$0xff]  ;;  %v1690_v43 = vadd.f32 %v4637_v44, %v1497_v19  ;;  %v5495_v44 = vld [vmem:[#allocation13_spill] sm:$0xff] }
 0x1e5   :  { %v1837_v16 = vpop.f32.mrf.mxu1 }
 0x1e6   :  { %5485 = vst [vmem:[#allocation82_spill] sm:$0xff] %v4874_v6  ;;  %v4881_v48 = vadd.f32 %v1837_v16, %v4612_v61  ;;  %v1879_v6 = vadd.f32 %v5488_v30, %v4630_v62  ;;  %v5491_v16 = vld [vmem:[#allocation29_spill] sm:$0xff]  ;;  %v1883_v62 = vadd.f32 %v5494_v38, %v1690_v43 }
 0x1e7   :  { %v1839_v29 = vpop.f32.mrf.mxu1 }
 0x1e8   :  { %5486 = vst [vmem:[#allocation83_spill] sm:$0xff] %v4881_v48  ;;  %v4886_v31 = vadd.f32 %v1839_v29, %v4619_v27  ;;  %v5492_v48 = vld [vmem:[#allocation28_spill] sm:$0xff] }
 0x1e9   :  { %v1841_v9 = vpop.f32.mrf.mxu1  ;;  %v1881_v21 = vadd.f32 %v5492_v48, %v5491_v16  ;;  %v5493_v27 = vld [vmem:[#allocation12_spill] sm:$0xff] }
 0x1ea   :  { %5487 = vst [vmem:[#allocation84_spill] sm:$0xff] %v4886_v31  ;;  %v4894_v47 = vadd.f32 %v1841_v9, %v5489_v33  ;;  %v1507_v29 = vadd.f32 %v5493_v27, %v4451_v36  ;;  %v4901_v31 = vpop.f32.mrf.mxu0  ;;  %v1509_v33 = vadd.f32 %v5495_v44, %v4454_v37  ;;  %v5499_v44 = vld [vmem:[#allocation34_spill] sm:$0xff] }
 0x1eb   :  { %v2071_v61 = vpop.f32.mrf.mxu1 }
 0x1ec   :  { %5490 = vst [vmem:[#allocation27_spill] sm:$0xff] %v4894_v47  ;;  %v2072_v5 = vadd.f32 %v2071_v61, %v1879_v6  ;;  %v5496_v47 = vld [vmem:[#allocation32_spill] sm:$0xff]  ;;  %v1889_v6 = vadd.f32 %v4658_v28, %v5497_v35  ;;  %v1700_v23 = vadd.f32 %v4654_v56, %v1507_v29  ;;  %v4910_v61 = vpop.f32.mrf.mxu0  ;;  %v1702_v18 = vadd.f32 %v5499_v44, %v1509_v33  ;;  %v5500_v56 = vld [vmem:[#allocation14_spill] sm:$0xff] }
 0x1ed   :  { %v2073_v54 = vpop.f32.mrf.mxu1  ;;  %v1885_v26 = vadd.f32 %v5496_v47, %v1692_v51  ;;  %v1517_v29 = vadd.f32 %v5500_v56, %v4451_v36 }
 0x1ee   :  { %v2074_v30 = vadd.f32 %v2073_v54, %v1881_v21  ;;  %v2294_v19 = vmul.f32 0.2, %v2072_v5  ;;  %vm2230_vm0 = vcmp.gt.f32.partialorder %v2072_v5, 0.0  ;;  %v5498_v21 = vld [vmem:[#allocation33_spill] sm:$0xff]  ;;  %v4917_v35 = vpop.f32.mrf.mxu0 }
 0x1ef   :  { %v2075_v9 = vpop.f32.mrf.mxu1  ;;  %v1891_v43 = vadd.f32 %v4667_v2, %v5498_v21 }
 0x1f0   :  { %v2076_v48 = vadd.f32 %v2075_v9, %v1883_v62  ;;  %v2295_v27 = vmul.f32 0.2, %v2074_v30  ;;  %v2358_v47 = vsel %vm2230_vm0, %v2072_v5, %v2294_v19  ;;  %vm2231_vm2 = vcmp.gt.f32.partialorder %v2074_v30, 0.0  ;;  %v5501_v5 = vld [vmem:[#allocation15_spill] sm:$0xff]  ;;  %v4926_v60 = vpop.f32.mrf.mxu0 }
 0x1f1   :  { %v2077_v16 = vpop.f32.mrf.mxu1  ;;  %v1519_v33 = vadd.f32 %v5501_v5, %v4454_v37 }
 0x1f2   :  { %vm2232_vm1 = vcmp.gt.f32.partialorder %v2076_v48, 0.0  ;;  %v2296_v38 = vmul.f32 0.2, %v2076_v48  ;;  %v2078_v54 = vadd.f32 %v2077_v16, %v1885_v26  ;;  %v1893_v26 = vadd.f32 %v4675_v17, %v1700_v23  ;;  %v4934_v5 = vpop.f32.mrf.mxu0 }
 0x1f3   :  { %v2081_v51 = vpop.f32.mrf.mxu1  ;;  %v2359_v2 = vsel %vm2231_vm2, %v2074_v30, %v2295_v27  ;;  %v5504_v27 = vld [vmem:[#allocation36_spill] sm:$0xff] }
 0x1f4   :  { %v2360_v62 = vsel %vm2232_vm1, %v2076_v48, %v2296_v38  ;;  %vm2233_vm3 = vcmp.gt.f32.partialorder %v2078_v54, 0.0  ;;  %v2297_v28 = vmul.f32 0.2, %v2078_v54  ;;  %v2082_v9 = vadd.f32 %v2081_v51, %v1889_v6  ;;  %v5502_v51 = vld [vmem:[#allocation35_spill] sm:$0xff] }
 0x1f5   :  { %v2422_v11 = vpack.c.bf16 %v2360_v62, %v2358_v47  ;;  %v2083_v3 = vpop.f32.mrf.mxu1  ;;  %v1895_v6 = vadd.f32 %v4684_v13, %v1702_v18  ;;  %v1899_v56 = vadd.f32 %v4692_v24, %v5502_v51  ;;  %v5503_v47 = vld [vmem:[#allocation37_spill] sm:$0xff]  ;;  %v5505_v13 = vld [vmem:[#allocation38_spill] sm:$0xff] }
 0x1f6   :  { %v2084_v16 = vadd.f32 %v2083_v3, %v1891_v43  ;;  %v2361_v21 = vsel %vm2233_vm3, %v2078_v54, %v2297_v28  ;;  %v2298_v19 = vmul.f32 0.2, %v2082_v9  ;;  %vm2234_vm4 = vcmp.gt.f32.partialorder %v2082_v9, 0.0  ;;  %v5507_v51 = vld [vmem:[#allocation17_spill] sm:$0xff] }
 0x1f7   :  { %v2085_v48 = vpop.f32.mrf.mxu1  ;;  %v2423_v38 = vpack.c.bf16 %v2361_v21, %v2359_v2  ;;  %v1710_v62 = vadd.f32 %v5503_v47, %v1517_v29  ;;  %v1901_v54 = vadd.f32 %v4701_v58, %v5504_v27  ;;  %v1712_v18 = vadd.f32 %v5505_v13, %v1519_v33  ;;  %v5506_v2 = vld [vmem:[#allocation16_spill] sm:$0xff]  ;;  %v5509_v13 = vld [vmem:[#allocation41_spill] sm:$0xff] }
 0x1f8   :  { %v2086_v44 = vadd.f32 %v2085_v48, %v1893_v26  ;;  %v2299_v3 = vmul.f32 0.2, %v2084_v16  ;;  %vm2235_vm6 = vcmp.gt.f32.partialorder %v2084_v16, 0.0  ;;  %v2362_v24 = vsel %vm2234_vm4, %v2082_v9, %v2298_v19 }
 0x1f9   :  { %v2087_v17 = vpop.f32.mrf.mxu1  ;;  %2690 = vmatprep.mubr.bf16.mxu0 %v2423_v38  ;;  %v1527_v21 = vadd.f32 %v5506_v2, %v4451_v36  ;;  %v1903_v38 = vadd.f32 %v4709_v59, %v1710_v62  ;;  %v1529_v47 = vadd.f32 %v5507_v51, %v4454_v37 }
 0x1fa   :  { %vm2236_vm5 = vcmp.gt.f32.partialorder %v2086_v44, 0.0  ;;  %v2300_v30 = vmul.f32 0.2, %v2086_v44  ;;  %v2088_v23 = vadd.f32 %v2087_v17, %v1895_v6  ;;  %2691 = vmatmul.mubr.bf16.vlgmr.msra.gmra.mxu0 %v2422_v11  ;;  %v2363_v6 = vsel %vm2235_vm6, %v2084_v16, %v2299_v3 }
 0x1fb   :  { %v2091_v43 = vpop.f32.mrf.mxu1 }
 0x1fc   :  { %vm2237_vm7 = vcmp.gt.f32.partialorder %v2088_v23, 0.0  ;;  %v2301_v28 = vmul.f32 0.2, %v2088_v23  ;;  %v2092_v29 = vadd.f32 %v2091_v43, %v1899_v56  ;;  %v2364_v26 = vsel %vm2236_vm5, %v2086_v44, %v2300_v30  ;;  %v5508_v30 = vld [vmem:[#allocation39_spill] sm:$0xff] }
 0x1fd   :  { %v2093_v48 = vpop.f32.mrf.mxu1  ;;  %v2424_v11 = vpack.c.bf16 %v2364_v26, %v2362_v24  ;;  %v1905_v44 = vadd.f32 %v4718_v55, %v1712_v18  ;;  %v1909_v27 = vadd.f32 %v4726_v34, %v5508_v30  ;;  %v1720_v43 = vadd.f32 %v5509_v13, %v1527_v21  ;;  %v4943_v24 = vpop.f32.mrf.mxu0  ;;  %v5511_v55 = vld [vmem:[#allocation42_spill] sm:$0xff]  ;;  %v5514_v13 = vld [vmem:[#allocation43_spill] sm:$0xff] }
 0x1fe   :  { %v2094_v58 = vadd.f32 %v2093_v48, %v1901_v54  ;;  %v2365_v33 = vsel %vm2237_vm7, %v2088_v23, %v2301_v28  ;;  %v2302_v9 = vmul.f32 0.2, %v2092_v29  ;;  %vm2238_vm8 = vcmp.gt.f32.partialorder %v2092_v29, 0.0  ;;  %v5510_v23 = vld [vmem:[#allocation40_spill] sm:$0xff]  ;;  %v5512_v48 = vld [vmem:[#allocation18_spill] sm:$0xff] }
 0x1ff   :  { %v2095_v19 = vpop.f32.mrf.mxu1  ;;  %v2425_v17 = vpack.c.bf16 %v2365_v33, %v2363_v6  ;;  %v1911_v54 = vadd.f32 %v4735_v10, %v5510_v23  ;;  %v1722_v18 = vadd.f32 %v5511_v55, %v1529_v47  ;;  %v4951_v6 = vpop.f32.mrf.mxu0  ;;  %v1913_v51 = vadd.f32 %v4743_v7, %v1720_v43 }
 0x200   :  { %v2096_v56 = vadd.f32 %v2095_v19, %v1903_v38  ;;  %v2303_v16 = vmul.f32 0.2, %v2094_v58  ;;  %vm2239_vm10 = vcmp.gt.f32.partialorder %v2094_v58, 0.0  ;;  %v2366_v34 = vsel %vm2238_vm8, %v2092_v29, %v2302_v9 }
 0x201   :  { %v2097_v59 = vpop.f32.mrf.mxu1  ;;  %2700 = vmatprep.mubr.bf16.mxu0 %v2425_v17  ;;  %v1537_v38 = vadd.f32 %v5512_v48, %v4451_v36  ;;  %v5513_v17 = vld [vmem:[#allocation19_spill] sm:$0xff]  ;;  %v4960_v55 = vpop.f32.mrf.mxu0  ;;  %v5518_v48 = vld [vmem:[#allocation20_spill] sm:$0xff] }
 0x202   :  { %vm2240_vm9 = vcmp.gt.f32.partialorder %v2096_v56, 0.0  ;;  %v2304_v62 = vmul.f32 0.2, %v2096_v56  ;;  %v2098_v3 = vadd.f32 %v2097_v59, %v1905_v44  ;;  %2701 = vmatmul.mubr.bf16.gmra.mxu0 %v2424_v11  ;;  %v2367_v19 = vsel %vm2239_vm10, %v2094_v58, %v2303_v16 }
 0x203   :  { %v2101_v28 = vpop.f32.mrf.mxu1  ;;  %v1539_v44 = vadd.f32 %v5513_v17, %v4454_v37  ;;  %v1919_v59 = vadd.f32 %v4757_v41, %v5514_v13  ;;  %v5520_v13 = vld [vmem:[#allocation47_spill] sm:$0xff] }
 0x204   :  { %vm2241_vm11 = vcmp.gt.f32.partialorder %v2098_v3, 0.0  ;;  %v2305_v26 = vmul.f32 0.2, %v2098_v3  ;;  %v2102_v2 = vadd.f32 %v2101_v28, %v1909_v27  ;;  %v2368_v21 = vsel %vm2240_vm9, %v2096_v56, %v2304_v62  ;;  %v5515_v62 = vld [vmem:[#allocation45_spill] sm:$0xff] }
 0x205   :  { %v2103_v33 = vpop.f32.mrf.mxu1  ;;  %v2426_v11 = vpack.c.bf16 %v2368_v21, %v2366_v34  ;;  %v1915_v56 = vadd.f32 %v4751_v46, %v1722_v18  ;;  %v1730_v23 = vadd.f32 %v5515_v62, %v1537_v38  ;;  %v5517_v46 = vld [vmem:[#allocation46_spill] sm:$0xff]  ;;  %v1547_v38 = vadd.f32 %v5518_v48, %v4451_v36  ;;  %v5521_v62 = vld [vmem:[#allocation49_spill] sm:$0xff] }
 0x206   :  { %v2104_v10 = vadd.f32 %v2103_v33, %v1911_v54  ;;  %v2369_v47 = vsel %vm2241_vm11, %v2098_v3, %v2305_v26  ;;  %v2306_v29 = vmul.f32 0.2, %v2102_v2  ;;  %vm2242_vm12 = vcmp.gt.f32.partialorder %v2102_v2, 0.0  ;;  %v5516_v3 = vld [vmem:[#allocation44_spill] sm:$0xff]  ;;  %v4968_v33 = vpop.f32.mrf.mxu0 }
 0x207   :  { %v2105_v9 = vpop.f32.mrf.mxu1  ;;  %v2427_v30 = vpack.c.bf16 %v2369_v47, %v2367_v19  ;;  %v1921_v54 = vadd.f32 %v4764_v4, %v5516_v3  ;;  %v1732_v18 = vadd.f32 %v5517_v46, %v1539_v44  ;;  %v1923_v19 = vadd.f32 %v4772_v25, %v1730_v23  ;;  %v5519_v44 = vld [vmem:[#allocation21_spill] sm:$0xff] }
 0x208   :  { %v2106_v27 = vadd.f32 %v2105_v9, %v1913_v51  ;;  %v2307_v58 = vmul.f32 0.2, %v2104_v10  ;;  %vm2243_vm14 = vcmp.gt.f32.partialorder %v2104_v10, 0.0  ;;  %v2370_v41 = vsel %vm2242_vm12, %v2102_v2, %v2306_v29 }
 0x209   :  { %v2107_v7 = vpop.f32.mrf.mxu1  ;;  %2710 = vmatprep.mubr.bf16.mxu0 %v2427_v30  ;;  %v1549_v9 = vadd.f32 %v5519_v44, %v4454_v37 }
 0x20a   :  { %vm2244_vm13 = vcmp.gt.f32.partialorder %v2106_v27, 0.0  ;;  %v2308_v43 = vmul.f32 0.2, %v2106_v27  ;;  %v2108_v16 = vadd.f32 %v2107_v7, %v1915_v56  ;;  %2711 = vmatmul.mubr.bf16.gmra.mxu0 %v2426_v11  ;;  %v2371_v47 = vsel %vm2243_vm14, %v2104_v10, %v2307_v58 }
 0x20b   :  { %v2111_v28 = vpop.f32.mrf.mxu1  ;;  %v1925_v56 = vadd.f32 %v4780_v22, %v1732_v18  ;;  %v1740_v7 = vadd.f32 %v5521_v62, %v1547_v38  ;;  %v5523_v22 = vld [vmem:[#allocation50_spill] sm:$0xff] }
 0x20c   :  { %vm2245_vm15 = vcmp.gt.f32.partialorder %v2108_v16, 0.0  ;;  %v2309_v34 = vmul.f32 0.2, %v2108_v16  ;;  %v2112_v26 = vadd.f32 %v2111_v28, %v1919_v59  ;;  %v2372_v21 = vsel %vm2244_vm13, %v2106_v27, %v2308_v43  ;;  %v4977_v43 = vpop.f32.mrf.mxu0 }
 0x20d   :  { %v2113_v51 = vpop.f32.mrf.mxu1  ;;  %v2428_v11 = vpack.c.bf16 %v2372_v21, %v2370_v41  ;;  %v1929_v59 = vadd.f32 %v4788_v14, %v5520_v13  ;;  %v5527_v13 = vld [vmem:[#allocation53_spill] sm:$0xff] }
 0x20e   :  { %v2114_v4 = vadd.f32 %v2113_v51, %v1921_v54  ;;  %v2373_v17 = vsel %vm2245_vm15, %v2108_v16, %v2309_v34  ;;  %v2310_v2 = vmul.f32 0.2, %v2112_v26  ;;  %vm2246_vm0 = vcmp.gt.f32.partialorder %v2112_v26, 0.0  ;;  %v5522_v16 = vld [vmem:[#allocation48_spill] sm:$0xff]  ;;  %v5524_v34 = vld [vmem:[#allocation22_spill] sm:$0xff]  ;;  %v4984_v48 = vpop.f32.mrf.mxu0 }
 0x20f   :  { %v2115_v29 = vpop.f32.mrf.mxu1  ;;  %v2429_v30 = vpack.c.bf16 %v2373_v17, %v2371_v47  ;;  %v1931_v3 = vadd.f32 %v4796_v50, %v5522_v16  ;;  %v1742_v54 = vadd.f32 %v5523_v22, %v1549_v9  ;;  %v1557_v21 = vadd.f32 %v5524_v34, %v4451_v36 }
 0x210   :  { %v2116_v27 = vadd.f32 %v2115_v29, %v1923_v19  ;;  %v2311_v10 = vmul.f32 0.2, %v2114_v4  ;;  %v2374_v46 = vsel %vm2246_vm0, %v2112_v26, %v2310_v2  ;;  %vm2247_vm2 = vcmp.gt.f32.partialorder %v2114_v4, 0.0  ;;  %v5525_v26 = vld [vmem:[#allocation23_spill] sm:$0xff]  ;;  %v4993_v62 = vpop.f32.mrf.mxu0 }
 0x211   :  { %v2117_v25 = vpop.f32.mrf.mxu1  ;;  %2720 = vmatprep.mubr.bf16.mxu0 %v2429_v30  ;;  %v1559_v17 = vadd.f32 %v5525_v26, %v4454_v37  ;;  %v1935_v29 = vadd.f32 %v4812_v40, %v1742_v54  ;;  %v5529_v40 = vld [vmem:[#allocation54_spill] sm:$0xff] }
 0x212   :  { %vm2248_vm1 = vcmp.gt.f32.partialorder %v2116_v27, 0.0  ;;  %v2312_v23 = vmul.f32 0.2, %v2116_v27  ;;  %v2118_v58 = vadd.f32 %v2117_v25, %v1925_v56  ;;  %2721 = vmatmul.mubr.bf16.gmra.mxu0 %v2428_v11  ;;  %v1933_v11 = vadd.f32 %v4804_v1, %v1740_v7  ;;  %v5526_v56 = vld [vmem:[#allocation51_spill] sm:$0xff] }
 0x213   :  { %v2121_v18 = vpop.f32.mrf.mxu1  ;;  %v2375_v50 = vsel %vm2247_vm2, %v2114_v4, %v2311_v10  ;;  %v5528_v10 = vld [vmem:[#allocation52_spill] sm:$0xff] }
 0x214   :  { %v2376_v14 = vsel %vm2248_vm1, %v2116_v27, %v2312_v23  ;;  %vm2249_vm3 = vcmp.gt.f32.partialorder %v2118_v58, 0.0  ;;  %v2313_v28 = vmul.f32 0.2, %v2118_v58  ;;  %v2122_v41 = vadd.f32 %v2121_v18, %v1929_v59 }
 0x215   :  { %v2430_v38 = vpack.c.bf16 %v2376_v14, %v2374_v46  ;;  %v2123_v51 = vpop.f32.mrf.mxu1  ;;  %v1939_v27 = vadd.f32 %v4820_v12, %v5526_v56  ;;  %v1750_v59 = vadd.f32 %v5527_v13, %v1557_v21  ;;  %v1941_v23 = vadd.f32 %v4828_v53, %v5528_v10  ;;  %v5530_v46 = vld [vmem:[#allocation24_spill] sm:$0xff]  ;;  %v5000_v14 = vpop.f32.mrf.mxu0  ;;  %v5533_v56 = vld [vmem:[#allocation55_spill] sm:$0xff] }
 0x216   :  { %v2124_v19 = vadd.f32 %v2123_v51, %v1931_v3  ;;  %v2377_v47 = vsel %vm2249_vm3, %v2118_v58, %v2313_v28  ;;  %v2314_v44 = vmul.f32 0.2, %v2122_v41  ;;  %vm2250_vm4 = vcmp.gt.f32.partialorder %v2122_v41, 0.0 }
 0x217   :  { %v2125_v9 = vpop.f32.mrf.mxu1  ;;  %v2431_v2 = vpack.c.bf16 %v2377_v47, %v2375_v50  ;;  %v1752_v58 = vadd.f32 %v5529_v40, %v1559_v17  ;;  %v1567_v18 = vadd.f32 %v5530_v46, %v4451_v36  ;;  %v1943_v21 = vadd.f32 %v4836_v42, %v1750_v59  ;;  %v5535_v46 = vld [vmem:[#allocation58_spill] sm:$0xff] }
 0x218   :  { %v2126_v30 = vadd.f32 %v2125_v9, %v1933_v11  ;;  %v2315_v4 = vmul.f32 0.2, %v2124_v19  ;;  %v2378_v16 = vsel %vm2250_vm4, %v2122_v41, %v2314_v44  ;;  %vm2251_vm6 = vcmp.gt.f32.partialorder %v2124_v19, 0.0  ;;  %v5531_v41 = vld [vmem:[#allocation25_spill] sm:$0xff]  ;;  %v5532_v9 = vld [vmem:[#allocation56_spill] sm:$0xff] }
 0x219   :  { %v2127_v1 = vpop.f32.mrf.mxu1  ;;  %2730 = vmatprep.mubr.bf16.mxu0 %v2431_v2  ;;  %v1569_v11 = vadd.f32 %v5531_v41, %v4454_v37  ;;  %v1945_v17 = vadd.f32 %v4844_v49, %v1752_v58  ;;  %v1949_v36 = vadd.f32 %v4852_v57, %v4749_v39  ;;  %v1760_v2 = vadd.f32 %v5532_v9, %v1567_v18  ;;  %v5534_v49 = vld [vmem:[#allocation57_spill] sm:$0xff] }
 0x21a   :  { %vm2252_vm5 = vcmp.gt.f32.partialorder %v2126_v30, 0.0  ;;  %v2316_v7 = vmul.f32 0.2, %v2126_v30  ;;  %v2128_v25 = vadd.f32 %v2127_v1, %v1935_v29  ;;  %2731 = vmatmul.mubr.bf16.gmra.mxu0 %v2430_v38  ;;  %v2379_v53 = vsel %vm2251_vm6, %v2124_v19, %v2315_v4  ;;  %v5009_v29 = vpop.f32.mrf.mxu0 }
 0x21b   :  { %v2131_v3 = vpop.f32.mrf.mxu1  ;;  %v1762_v13 = vadd.f32 %v5534_v49, %v1569_v11  ;;  %v1959_v18 = vadd.f32 %v4888_v63, %v5535_v46 }
 0x21c   :  { %v2380_v12 = vsel %vm2252_vm5, %v2126_v30, %v2316_v7  ;;  %vm2253_vm7 = vcmp.gt.f32.partialorder %v2128_v25, 0.0  ;;  %v2317_v22 = vmul.f32 0.2, %v2128_v25  ;;  %v2132_v54 = vadd.f32 %v2131_v3, %v1939_v27  ;;  %v5014_v7 = vpop.f32.mrf.mxu0 }
 0x21d   :  { %v2432_v28 = vpack.c.bf16 %v2380_v12, %v2378_v16  ;;  %v2133_v34 = vpop.f32.mrf.mxu1  ;;  %v1951_v27 = vadd.f32 %v4860_v0, %v5533_v56 }
 0x21e   :  { %v2134_v38 = vadd.f32 %v2133_v34, %v1941_v23  ;;  %v2381_v51 = vsel %vm2253_vm7, %v2128_v25, %v2317_v22  ;;  %v2318_v50 = vmul.f32 0.2, %v2132_v54  ;;  %vm2254_vm8 = vcmp.gt.f32.partialorder %v2132_v54, 0.0 }
 0x21f   :  { %v2135_v47 = vpop.f32.mrf.mxu1  ;;  %v2433_v26 = vpack.c.bf16 %v2381_v51, %v2379_v53  ;;  %v1953_v23 = vadd.f32 %v4868_v8, %v1760_v2  ;;  %v1955_v22 = vadd.f32 %v4876_v15, %v1762_v13 }
 0x220   :  { %v2136_v44 = vadd.f32 %v2135_v47, %v1943_v21  ;;  %v2319_v19 = vmul.f32 0.2, %v2134_v38  ;;  %v2382_v59 = vsel %vm2254_vm8, %v2132_v54, %v2318_v50  ;;  %vm2255_vm10 = vcmp.gt.f32.partialorder %v2134_v38, 0.0 }
 0x221   :  { %v2137_v42 = vpop.f32.mrf.mxu1  ;;  %2740 = vmatprep.mubr.bf16.mxu0 %v2433_v26 }
 0x222   :  { %vm2256_vm9 = vcmp.gt.f32.partialorder %v2136_v44, 0.0  ;;  %v2320_v30 = vmul.f32 0.2, %v2136_v44  ;;  %v2138_v37 = vadd.f32 %v2137_v42, %v1945_v17  ;;  %2741 = vmatmul.mubr.bf16.gmra.mxu0 %v2432_v28  ;;  %v2383_v58 = vsel %vm2255_vm10, %v2134_v38, %v2319_v19  ;;  %v5020_v28 = vpop.f32.mrf.mxu0  ;;  %v5536_v17 = vld [vmem:[#allocation59_spill] sm:$0xff] }
 0x223   :  { %v2141_v1 = vpop.f32.mrf.mxu1  ;;  %v1961_v38 = vadd.f32 %v4901_v31, %v4767_v20  ;;  %v1965_v31 = vadd.f32 %v4917_v35, %v4775_v32 }
 0x224   :  { %v2384_v39 = vsel %vm2256_vm9, %v2136_v44, %v2320_v30  ;;  %vm2257_vm11 = vcmp.gt.f32.partialorder %v2138_v37, 0.0  ;;  %v2321_v57 = vmul.f32 0.2, %v2138_v37  ;;  %v2142_v4 = vadd.f32 %v2141_v1, %v1949_v36  ;;  %v5024_v63 = vpop.f32.mrf.mxu0 }
 0x225   :  { %v2434_v25 = vpack.c.bf16 %v2384_v39, %v2382_v59  ;;  %v2143_v10 = vpop.f32.mrf.mxu1  ;;  %v1963_v44 = vadd.f32 %v4910_v61, %v5536_v17  ;;  %v1971_v1 = vadd.f32 %v4934_v5, %v4783_v45  ;;  %v1975_v5 = vadd.f32 %v4951_v6, %v4791_v52 }
 0x226   :  { %v2144_v40 = vadd.f32 %v2143_v10, %v1951_v27  ;;  %v2385_v16 = vsel %vm2257_vm11, %v2138_v37, %v2321_v57  ;;  %v2322_v3 = vmul.f32 0.2, %v2142_v4  ;;  %vm2258_vm12 = vcmp.gt.f32.partialorder %v2142_v4, 0.0  ;;  %v5537_v37 = vld [vmem:[#allocation60_spill] sm:$0xff]  ;;  %v5032_v27 = vpop.f32.mrf.mxu0 }
 0x227   :  { %v2145_v0 = vpop.f32.mrf.mxu1  ;;  %v2435_v12 = vpack.c.bf16 %v2385_v16, %v2383_v58  ;;  %v1969_v56 = vadd.f32 %v4926_v60, %v5537_v37 }
 0x228   :  { %v2146_v54 = vadd.f32 %v2145_v0, %v1953_v23  ;;  %v2323_v21 = vmul.f32 0.2, %v2144_v40  ;;  %v2386_v51 = vsel %vm2258_vm12, %v2142_v4, %v2322_v3  ;;  %vm2259_vm14 = vcmp.gt.f32.partialorder %v2144_v40, 0.0  ;;  %v5036_v60 = vpop.f32.mrf.mxu0  ;;  %v5538_v23 = vld [vmem:[#allocation61_spill] sm:$0xff] }
 0x229   :  { %v2147_v34 = vpop.f32.mrf.mxu1  ;;  %2750 = vmatprep.mubr.bf16.mxu0 %v2435_v12 }
 0x22a   :  { %vm2260_vm13 = vcmp.gt.f32.partialorder %v2146_v54, 0.0  ;;  %v2324_v8 = vmul.f32 0.2, %v2146_v54  ;;  %v2148_v53 = vadd.f32 %v2147_v34, %v1955_v22  ;;  %2751 = vmatmul.mubr.bf16.gmra.mxu0 %v2434_v25  ;;  %v2387_v9 = vsel %vm2259_vm14, %v2144_v40, %v2323_v21 }
 0x22b   :  { %v2151_v15 = vpop.f32.mrf.mxu1  ;;  %v1973_v40 = vadd.f32 %v4943_v24, %v5538_v23 }
 0x22c   :  { %v2388_v41 = vsel %vm2260_vm13, %v2146_v54, %v2324_v8  ;;  %vm2261_vm15 = vcmp.gt.f32.partialorder %v2148_v53, 0.0  ;;  %v2325_v11 = vmul.f32 0.2, %v2148_v53  ;;  %v2152_v50 = vadd.f32 %v2151_v15, %v1959_v18  ;;  %v5539_v54 = vld [vmem:[#allocation62_spill] sm:$0xff]  ;;  %v5044_v18 = vpop.f32.mrf.mxu0 }
 0x22d   :  { %v2436_v47 = vpack.c.bf16 %v2388_v41, %v2386_v51  ;;  %v2153_v26 = vpop.f32.mrf.mxu1  ;;  %v1979_v46 = vadd.f32 %v4960_v55, %v5539_v54 }
 0x22e   :  { %v2154_v36 = vadd.f32 %v2153_v26, %v1961_v38  ;;  %v2389_v2 = vsel %vm2261_vm15, %v2148_v53, %v2325_v11  ;;  %v2326_v42 = vmul.f32 0.2, %v2152_v50  ;;  %vm2262_vm0 = vcmp.gt.f32.partialorder %v2152_v50, 0.0  ;;  %v5540_v53 = vld [vmem:[#allocation63_spill] sm:$0xff]  ;;  %v5048_v55 = vpop.f32.mrf.mxu0 }
 0x22f   :  { %v2155_v19 = vpop.f32.mrf.mxu1  ;;  %v2437_v20 = vpack.c.bf16 %v2389_v2, %v2387_v9  ;;  %v1981_v38 = vadd.f32 %v4968_v33, %v5540_v53 }
 0x230   :  { %v2156_v30 = vadd.f32 %v2155_v19, %v1963_v44  ;;  %v2327_v13 = vmul.f32 0.2, %v2154_v36  ;;  %v2390_v39 = vsel %vm2262_vm0, %v2152_v50, %v2326_v42  ;;  %vm2263_vm2 = vcmp.gt.f32.partialorder %v2154_v36, 0.0  ;;  %v5542_v42 = vld [vmem:[#allocation65_spill] sm:$0xff]  ;;  %v5056_v37 = vpop.f32.mrf.mxu0 }
 0x231   :  { %v2157_v49 = vpop.f32.mrf.mxu1  ;;  %2760 = vmatprep.mubr.bf16.mxu0 %v2437_v20  ;;  %v1985_v19 = vadd.f32 %v4984_v48, %v5542_v42 }
 0x232   :  { %vm2264_vm1 = vcmp.gt.f32.partialorder %v2156_v30, 0.0  ;;  %v2328_v61 = vmul.f32 0.2, %v2156_v30  ;;  %v2158_v59 = vadd.f32 %v2157_v49, %v1965_v31  ;;  %2761 = vmatmul.mubr.bf16.gmra.mxu0 %v2436_v47  ;;  %v2391_v16 = vsel %vm2263_vm2, %v2154_v36, %v2327_v13  ;;  %v5541_v47 = vld [vmem:[#allocation64_spill] sm:$0xff]  ;;  %v5543_v31 = vld [vmem:[#allocation66_spill] sm:$0xff] }
 0x233   :  { %v2161_v32 = vpop.f32.mrf.mxu1  ;;  %v1983_v26 = vadd.f32 %v4977_v43, %v5541_v47 }
 0x234   :  { %v2392_v35 = vsel %vm2264_vm1, %v2156_v30, %v2328_v61  ;;  %vm2265_vm3 = vcmp.gt.f32.partialorder %v2158_v59, 0.0  ;;  %v2329_v57 = vmul.f32 0.2, %v2158_v59  ;;  %v2162_v4 = vadd.f32 %v2161_v32, %v1969_v56  ;;  %v5544_v61 = vld [vmem:[#allocation67_spill] sm:$0xff] }
 0x235   :  { %v2438_v25 = vpack.c.bf16 %v2392_v35, %v2390_v39  ;;  %v2163_v10 = vpop.f32.mrf.mxu1  ;;  %v1989_v30 = vadd.f32 %v4993_v62, %v5543_v31  ;;  %v5060_v62 = vpop.f32.mrf.mxu0 }
 0x236   :  { %v2164_v58 = vadd.f32 %v2163_v10, %v1971_v1  ;;  %v2393_v3 = vsel %vm2265_vm3, %v2158_v59, %v2329_v57  ;;  %v2330_v0 = vmul.f32 0.2, %v2162_v4  ;;  %vm2266_vm4 = vcmp.gt.f32.partialorder %v2162_v4, 0.0 }
 0x237   :  { %v2165_v12 = vpop.f32.mrf.mxu1  ;;  %v2439_v45 = vpack.c.bf16 %v2393_v3, %v2391_v16  ;;  %v1991_v59 = vadd.f32 %v5000_v14, %v5544_v61  ;;  %v2018_v54 = vpop.f32.mrf.mxu0 }
 0x238   :  { %v2166_v22 = vadd.f32 %v2165_v12, %v1973_v40  ;;  %v2331_v21 = vmul.f32 0.2, %v2164_v58  ;;  %v2394_v51 = vsel %vm2266_vm4, %v2162_v4, %v2330_v0  ;;  %vm2267_vm6 = vcmp.gt.f32.partialorder %v2164_v58, 0.0  ;;  %v5546_v0 = vld [vmem:[#allocation69_spill] sm:$0xff] }
 0x239   :  { %v2167_v34 = vpop.f32.mrf.mxu1  ;;  %2770 = vmatprep.mubr.bf16.mxu0 %v2439_v45  ;;  %v1995_v12 = vadd.f32 %v5014_v7, %v5546_v0 }
 0x23a   :  { %vm2268_vm5 = vcmp.gt.f32.partialorder %v2166_v22, 0.0  ;;  %v2332_v24 = vmul.f32 0.2, %v2166_v22  ;;  %v2168_v8 = vadd.f32 %v2167_v34, %v1975_v5  ;;  %2771 = vmatmul.mubr.bf16.gmra.mxu0 %v2438_v25  ;;  %v2395_v44 = vsel %vm2267_vm6, %v2164_v58, %v2331_v21  ;;  %v5545_v25 = vld [vmem:[#allocation68_spill] sm:$0xff]  ;;  %v5547_v5 = vld [vmem:[#allocation70_spill] sm:$0xff] }
 0x23b   :  { %v2171_v52 = vpop.f32.mrf.mxu1  ;;  %v1993_v10 = vadd.f32 %v5009_v29, %v5545_v25 }
 0x23c   :  { %v2396_v6 = vsel %vm2268_vm5, %v2166_v22, %v2332_v24  ;;  %vm2269_vm7 = vcmp.gt.f32.partialorder %v2168_v8, 0.0  ;;  %v2333_v15 = vmul.f32 0.2, %v2168_v8  ;;  %v2172_v41 = vadd.f32 %v2171_v52, %v1979_v46  ;;  %v5548_v24 = vld [vmem:[#allocation71_spill] sm:$0xff] }
 0x23d   :  { %v2440_v11 = vpack.c.bf16 %v2396_v6, %v2394_v51  ;;  %v2173_v50 = vpop.f32.mrf.mxu1  ;;  %v1999_v22 = vadd.f32 %v5020_v28, %v5547_v5  ;;  %v2020_v6 = vpop.f32.mrf.mxu0  ;;  %v5556_v5 = vld [vmem:[#allocation79_spill] sm:$0xff] }
 0x23e   :  { %v2174_v17 = vadd.f32 %v2173_v50, %v1981_v38  ;;  %v2397_v36 = vsel %vm2269_vm7, %v2168_v8, %v2333_v15  ;;  %v2334_v9 = vmul.f32 0.2, %v2172_v41  ;;  %vm2270_vm8 = vcmp.gt.f32.partialorder %v2172_v41, 0.0 }
 0x23f   :  { %v2175_v2 = vpop.f32.mrf.mxu1  ;;  %v2441_v33 = vpack.c.bf16 %v2397_v36, %v2395_v44  ;;  %v2001_v8 = vadd.f32 %v5024_v63, %v5548_v24  ;;  %v5550_v63 = vld [vmem:[#allocation73_spill] sm:$0xff] }
 0x240   :  { %v2176_v20 = vadd.f32 %v2175_v2, %v1983_v26  ;;  %v2335_v49 = vmul.f32 0.2, %v2174_v17  ;;  %v2398_v1 = vsel %vm2270_vm8, %v2172_v41, %v2334_v9  ;;  %vm2271_vm10 = vcmp.gt.f32.partialorder %v2174_v17, 0.0  ;;  %v5549_v41 = vld [vmem:[#allocation72_spill] sm:$0xff] }
 0x241   :  { %v2177_v56 = vpop.f32.mrf.mxu1  ;;  %2780 = vmatprep.mubr.bf16.mxu0 %v2441_v33  ;;  %v2005_v9 = vadd.f32 %v5036_v60, %v5550_v63  ;;  %v5551_v33 = vld [vmem:[#allocation74_spill] sm:$0xff] }
 0x242   :  { %vm2272_vm9 = vcmp.gt.f32.partialorder %v2176_v20, 0.0  ;;  %v2336_v43 = vmul.f32 0.2, %v2176_v20  ;;  %v2178_v13 = vadd.f32 %v2177_v56, %v1985_v19  ;;  %2781 = vmatmul.mubr.bf16.gmra.mxu0 %v2440_v11  ;;  %v2399_v40 = vsel %vm2271_vm10, %v2174_v17, %v2335_v49  ;;  %v2022_v19 = vpop.f32.mrf.mxu0  ;;  %v5552_v56 = vld [vmem:[#allocation75_spill] sm:$0xff] }
 0x243   :  { %v2181_v48 = vpop.f32.mrf.mxu1  ;;  %v2003_v11 = vadd.f32 %v5032_v27, %v5549_v41  ;;  %v2009_v42 = vadd.f32 %v5044_v18, %v5551_v33  ;;  %v2011_v49 = vadd.f32 %v5048_v55, %v5552_v56  ;;  %v5554_v55 = vld [vmem:[#allocation77_spill] sm:$0xff] }
 0x244   :  { %v2400_v39 = vsel %vm2272_vm9, %v2176_v20, %v2336_v43  ;;  %vm2273_vm11 = vcmp.gt.f32.partialorder %v2178_v13, 0.0  ;;  %v2337_v32 = vmul.f32 0.2, %v2178_v13  ;;  %v2182_v35 = vadd.f32 %v2181_v48, %v1989_v30 }
 0x245   :  { %v2442_v57 = vpack.c.bf16 %v2400_v39, %v2398_v1  ;;  %v2183_v4 = vpop.f32.mrf.mxu1  ;;  %v2024_v1 = vpop.f32.mrf.mxu0  ;;  %v5553_v39 = vld [vmem:[#allocation76_spill] sm:$0xff] }
 0x246   :  { %v2184_v23 = vadd.f32 %v2183_v4, %v1991_v59  ;;  %v2401_v58 = vsel %vm2273_vm11, %v2178_v13, %v2337_v32  ;;  %v2338_v16 = vmul.f32 0.2, %v2182_v35  ;;  %vm2274_vm12 = vcmp.gt.f32.partialorder %v2182_v35, 0.0 }
 0x247   :  { %v2185_v3 = vpop.f32.mrf.mxu1  ;;  %v2443_v14 = vpack.c.bf16 %v2401_v58, %v2399_v40  ;;  %v2013_v32 = vadd.f32 %v5056_v37, %v5553_v39  ;;  %v2015_v40 = vadd.f32 %v5060_v62, %v5554_v55 }
 0x248   :  { %v2186_v45 = vadd.f32 %v2185_v3, %v1993_v10  ;;  %v2339_v34 = vmul.f32 0.2, %v2184_v23  ;;  %v2402_v53 = vsel %vm2274_vm12, %v2182_v35, %v2338_v16  ;;  %vm2275_vm14 = vcmp.gt.f32.partialorder %v2184_v23, 0.0  ;;  %v5555_v16 = vld [vmem:[#allocation78_spill] sm:$0xff] }
 0x249   :  { %v2187_v46 = vpop.f32.mrf.mxu1  ;;  %2790 = vmatprep.mubr.bf16.mxu0 %v2443_v14  ;;  %v2019_v3 = vadd.f32 %v2018_v54, %v5555_v16  ;;  %v2028_v14 = vpop.f32.mrf.mxu0 }
 0x24a   :  { %vm2276_vm13 = vcmp.gt.f32.partialorder %v2186_v45, 0.0  ;;  %v2340_v29 = vmul.f32 0.2, %v2186_v45  ;;  %v2188_v21 = vadd.f32 %v2187_v46, %v1995_v12  ;;  %2791 = vmatmul.mubr.bf16.gmra.mxu0 %v2442_v57  ;;  %v2403_v47 = vsel %vm2275_vm14, %v2184_v23, %v2339_v34 }
 0x24b   :  { %v2191_v38 = vpop.f32.mrf.mxu1  ;;  %v2030_v24 = vpop.f32.mrf.mxu0 }
 0x24c   :  { %v2404_v7 = vsel %vm2276_vm13, %v2186_v45, %v2340_v29  ;;  %vm2277_vm15 = vcmp.gt.f32.partialorder %v2188_v21, 0.0  ;;  %v2341_v51 = vmul.f32 0.2, %v2188_v21  ;;  %v2192_v52 = vadd.f32 %v2191_v38, %v1999_v22 }
 0x24d   :  { %v2444_v28 = vpack.c.bf16 %v2404_v7, %v2402_v53  ;;  %v2193_v15 = vpop.f32.mrf.mxu1  ;;  %v2021_v22 = vadd.f32 %v2020_v6, %v5556_v5  ;;  %v5557_v53 = vld [vmem:[#allocation80_spill] sm:$0xff] }
 0x24e   :  { %v2194_v50 = vadd.f32 %v2193_v15, %v2001_v8  ;;  %v2405_v26 = vsel %vm2277_vm15, %v2188_v21, %v2341_v51  ;;  %v2342_v17 = vmul.f32 0.2, %v2192_v52  ;;  %vm2278_vm0 = vcmp.gt.f32.partialorder %v2192_v52, 0.0 }
 0x24f   :  { %v2195_v44 = vpop.f32.mrf.mxu1  ;;  %v2445_v36 = vpack.c.bf16 %v2405_v26, %v2403_v47  ;;  %v2023_v38 = vadd.f32 %v2022_v19, %v5557_v53  ;;  %v5559_v47 = vld [vmem:[#allocation82_spill] sm:$0xff] }
 0x250   :  { %v2196_v2 = vadd.f32 %v2195_v44, %v2003_v11  ;;  %v2343_v31 = vmul.f32 0.2, %v2194_v50  ;;  %v2406_v43 = vsel %vm2278_vm0, %v2192_v52, %v2342_v17  ;;  %vm2279_vm2 = vcmp.gt.f32.partialorder %v2194_v50, 0.0  ;;  %v5558_v11 = vld [vmem:[#allocation81_spill] sm:$0xff]  ;;  %v2032_v17 = vpop.f32.mrf.mxu0 }
 0x251   :  { %v2197_v20 = vpop.f32.mrf.mxu1  ;;  %2800 = vmatprep.mubr.bf16.mxu0 %v2445_v36  ;;  %v2025_v6 = vadd.f32 %v2024_v1, %v5558_v11  ;;  %v2029_v26 = vadd.f32 %v2028_v14, %v5559_v47 }
 0x252   :  { %vm2280_vm1 = vcmp.gt.f32.partialorder %v2196_v2, 0.0  ;;  %v2344_v27 = vmul.f32 0.2, %v2196_v2  ;;  %v2198_v30 = vadd.f32 %v2197_v20, %v2005_v9  ;;  %2801 = vmatmul.mubr.bf16.gmra.mxu0 %v2444_v28  ;;  %v2407_v57 = vsel %vm2279_vm2, %v2194_v50, %v2343_v31 }
 0x253   :  { %v2201_v13 = vpop.f32.mrf.mxu1 }
 0x254   :  { %v2408_v60 = vsel %vm2280_vm1, %v2196_v2, %v2344_v27  ;;  %vm2281_vm3 = vcmp.gt.f32.partialorder %v2198_v30, 0.0  ;;  %v2345_v61 = vmul.f32 0.2, %v2198_v30  ;;  %v2202_v59 = vadd.f32 %v2201_v13, %v2009_v42  ;;  %v5560_v2 = vld [vmem:[#allocation83_spill] sm:$0xff] }
 0x255   :  { %v2446_v18 = vpack.c.bf16 %v2408_v60, %v2406_v43  ;;  %v2203_v48 = vpop.f32.mrf.mxu1  ;;  %v2031_v33 = vadd.f32 %v2030_v24, %v5560_v2  ;;  %v5561_v43 = vld [vmem:[#allocation84_spill] sm:$0xff] }
 0x256   :  { %v2204_v35 = vadd.f32 %v2203_v48, %v2011_v49  ;;  %v2409_v4 = vsel %vm2281_vm3, %v2198_v30, %v2345_v61  ;;  %v2346_v25 = vmul.f32 0.2, %v2202_v59  ;;  %vm2282_vm4 = vcmp.gt.f32.partialorder %v2202_v59, 0.0  ;;  %v2034_v30 = vpop.f32.mrf.mxu0  ;;  %v5562_v48 = vld [vmem:[#allocation27_spill] sm:$0xff] }
 0x257   :  { %v2205_v10 = vpop.f32.mrf.mxu1  ;;  %v2447_v23 = vpack.c.bf16 %v2409_v4, %v2407_v57  ;;  %v2033_v13 = vadd.f32 %v2032_v17, %v5561_v43  ;;  %v2035_v39 = vadd.f32 %v2034_v30, %v5562_v48 }
 0x258   :  { %v2206_v58 = vadd.f32 %v2205_v10, %v2013_v32  ;;  %v2347_v12 = vmul.f32 0.2, %v2204_v35  ;;  %v2410_v46 = vsel %vm2282_vm4, %v2202_v59, %v2346_v25  ;;  %vm2283_vm6 = vcmp.gt.f32.partialorder %v2204_v35, 0.0 }
 0x259   :  { %v2207_v0 = vpop.f32.mrf.mxu1  ;;  %2810 = vmatprep.mubr.bf16.mxu0 %v2447_v23 }
 0x25a   :  { %vm2284_vm5 = vcmp.gt.f32.partialorder %v2206_v58, 0.0  ;;  %v2348_v45 = vmul.f32 0.2, %v2206_v58  ;;  %v2208_v37 = vadd.f32 %v2207_v0, %v2015_v40  ;;  %2811 = vmatmul.mubr.bf16.gmra.mxu0 %v2446_v18  ;;  %v2411_v51 = vsel %vm2283_vm6, %v2204_v35, %v2347_v12  ;;  %v2486_v0 = vld [vmem:[%s5402_s4] sm:$0x3] }
 0x25b   :  { %v2211_v34 = vpop.f32.mrf.mxu1  ;;  %v5563_v12 = vld [vmem:[#allocation10_spill] sm:$0xff] }
 0x25c   :  { %v2412_v29 = vsel %vm2284_vm5, %v2206_v58, %v2348_v45  ;;  %vm2285_vm7 = vcmp.gt.f32.partialorder %v2208_v37, 0.0  ;;  %v2349_v62 = vmul.f32 0.2, %v2208_v37  ;;  %v2212_v21 = vadd.f32 %v2211_v34, %v2019_v3  ;;  %v3043_v34 = vld [vmem:[%s5403_s5] sm:$0x3] }
 0x25d   :  { %v2448_v8 = vpack.c.bf16 %v2412_v29, %v2410_v46  ;;  %v2213_v54 = vpop.f32.mrf.mxu1  ;;  %v5094_v45 = vrot.slane %v2486_v0, %v5563_v12 }
 0x25e   :  { %v2214_v7 = vadd.f32 %v2213_v54, %v2021_v22  ;;  %v2413_v52 = vsel %vm2285_vm7, %v2208_v37, %v2349_v62  ;;  %v2350_v28 = vmul.f32 0.2, %v2212_v21  ;;  %vm2286_vm8 = vcmp.gt.f32.partialorder %v2212_v21, 0.0  ;;  %v5564_v37 = vld [vmem:[#allocation11_spill] sm:$0xff] }
 0x25f   :  { %v2215_v15 = vpop.f32.mrf.mxu1  ;;  %v2449_v41 = vpack.c.bf16 %v2413_v52, %v2411_v51  ;;  %v5097_v5 = vrot.slane %v2486_v0, %v5564_v37  ;;  %v5108_v54 = vrot.slane %v3043_v34, %v5564_v37 }
 0x260   :  { %v2216_v50 = vadd.f32 %v2215_v15, %v2023_v38  ;;  %v2351_v36 = vmul.f32 0.2, %v2214_v7  ;;  %v2414_v42 = vsel %vm2286_vm8, %v2212_v21, %v2350_v28  ;;  %vm2287_vm10 = vcmp.gt.f32.partialorder %v2214_v7, 0.0 }
 0x261   :  { %v2217_v44 = vpop.f32.mrf.mxu1  ;;  %2820 = vmatprep.mubr.bf16.mxu0 %v2449_v41 }
 0x262   :  { %vm2288_vm9 = vcmp.gt.f32.partialorder %v2216_v50, 0.0  ;;  %v2352_v63 = vmul.f32 0.2, %v2216_v50  ;;  %v2218_v9 = vadd.f32 %v2217_v44, %v2025_v6  ;;  %2821 = vmatmul.mubr.bf16.gmra.mxu0 %v2448_v8  ;;  %v2415_v61 = vsel %vm2287_vm10, %v2214_v7, %v2351_v36 }
 0x263   :  { %v2221_v19 = vpop.f32.mrf.mxu1  ;;  %v5105_v8 = vrot.slane %v3043_v34, %v5563_v12 }
 0x264   :  { %v2416_v20 = vsel %vm2288_vm9, %v2216_v50, %v2352_v63  ;;  %vm2289_vm11 = vcmp.gt.f32.partialorder %v2218_v9, 0.0  ;;  %v2353_v31 = vmul.f32 0.2, %v2218_v9  ;;  %v2222_v27 = vadd.f32 %v2221_v19, %v2029_v26 }
 0x265   :  { %v2450_v56 = vpack.c.bf16 %v2416_v20, %v2414_v42  ;;  %v2223_v49 = vpop.f32.mrf.mxu1 }
 0x266   :  { %v2224_v60 = vadd.f32 %v2223_v49, %v2031_v33  ;;  %v2417_v59 = vsel %vm2289_vm11, %v2218_v9, %v2353_v31  ;;  %v2354_v32 = vmul.f32 0.2, %v2222_v27  ;;  %vm2290_vm12 = vcmp.gt.f32.partialorder %v2222_v27, 0.0 }
 0x267   :  { %v2225_v1 = vpop.f32.mrf.mxu1  ;;  %v2451_v18 = vpack.c.bf16 %v2417_v59, %v2415_v61 }
 0x268   :  { %v2226_v35 = vadd.f32 %v2225_v1, %v2033_v13  ;;  %v2355_v4 = vmul.f32 0.2, %v2224_v60  ;;  %vm2291_vm14 = vcmp.gt.f32.partialorder %v2224_v60, 0.0  ;;  %v2418_v23 = vsel %vm2290_vm12, %v2222_v27, %v2354_v32 }
 0x269   :  { %v2227_v57 = vpop.f32.mrf.mxu1  ;;  %2830 = vmatprep.mubr.bf16.mxu0 %v2451_v18 }
 0x26a   :  { %vm2292_vm13 = vcmp.gt.f32.partialorder %v2226_v35, 0.0  ;;  %v2356_v25 = vmul.f32 0.2, %v2226_v35  ;;  %v2228_v10 = vadd.f32 %v2227_v57, %v2035_v39  ;;  %2831 = vmatmul.mubr.bf16.gmra.mxu0 %v2450_v56  ;;  %v2419_v16 = vsel %vm2291_vm14, %v2224_v60, %v2355_v4 }
 0x26c   :  { %v2420_v55 = vsel %vm2292_vm13, %v2226_v35, %v2356_v25  ;;  %vm2293_vm15 = vcmp.gt.f32.partialorder %v2228_v10, 0.0  ;;  %v2357_v40 = vmul.f32 0.2, %v2228_v10 }
 0x26d   :  { %v2452_v58 = vpack.c.bf16 %v2420_v55, %v2418_v23 }
 0x26e   :  { %v2421_v3 = vsel %vm2293_vm15, %v2228_v10, %v2357_v40 }
 0x26f   :  { %v2453_v14 = vpack.c.bf16 %v2421_v3, %v2419_v16 }
 0x271   :  { %2840 = vmatprep.mubr.bf16.mxu0 %v2453_v14 }
 0x272   :  { %2841 = vmatmul.mubr.bf16.gmra.mxu0 %v2452_v58 }
 0x2ba   :  { %v2692_v22 = vpop.f32.mrf.mxu0 }
 0x2bb   :  { %v2693_v46 = vadd.f32 %v2692_v22, %v5094_v45 }
 0x2bc   :  { %v2694_v29 = vpop.f32.mrf.mxu0 }
 0x2bd   :  { %vm2851_vm0 = vcmp.gt.f32.partialorder %v2693_v46, 0.0  ;;  %v2915_v62 = vmul.f32 0.2, %v2693_v46  ;;  %v2695_v21 = vadd.f32 %v2694_v29, %v5097_v5 }
 0x2be   :  { %v2696_v24 = vpop.f32.mrf.mxu0 }
 0x2bf   :  { %vm2852_vm1 = vcmp.gt.f32.partialorder %v2695_v21, 0.0  ;;  %v2916_v53 = vmul.f32 0.2, %v2695_v21  ;;  %v2697_v38 = vadd.f32 %v2696_v24, %v5094_v45  ;;  %v2979_v7 = vsel %vm2851_vm0, %v2693_v46, %v2915_v62 }
 0x2c0   :  { %v2698_v51 = vpop.f32.mrf.mxu0  ;;  %v3055_v11 = vmul.f32 %v5105_v8, %v2979_v7 }
 0x2c1   :  { %vm2853_vm2 = vcmp.gt.f32.partialorder %v2697_v38, 0.0  ;;  %v2917_v52 = vmul.f32 0.2, %v2697_v38  ;;  %v2699_v28 = vadd.f32 %v2698_v51, %v5097_v5  ;;  %v2980_v15 = vsel %vm2852_vm1, %v2695_v21, %v2916_v53 }
 0x2c2   :  { %v2702_v41 = vpop.f32.mrf.mxu0  ;;  %v3056_v6 = vmul.f32 %v5108_v54, %v2980_v15 }
 0x2c3   :  { %vm2854_vm3 = vcmp.gt.f32.partialorder %v2699_v28, 0.0  ;;  %v2918_v50 = vmul.f32 0.2, %v2699_v28  ;;  %v2703_v47 = vadd.f32 %v2702_v41, %v5094_v45  ;;  %v2981_v26 = vsel %vm2853_vm2, %v2697_v38, %v2917_v52 }
 0x2c4   :  { %v2704_v17 = vpop.f32.mrf.mxu0  ;;  %v3119_v44 = vadd.f32 %v3056_v6, %v3055_v11  ;;  %v3057_v33 = vmul.f32 %v5105_v8, %v2981_v26 }
 0x2c5   :  { %vm2855_vm4 = vcmp.gt.f32.partialorder %v2703_v47, 0.0  ;;  %v2919_v36 = vmul.f32 0.2, %v2703_v47  ;;  %v2705_v63 = vadd.f32 %v2704_v17, %v5097_v5  ;;  %v2982_v9 = vsel %vm2854_vm3, %v2699_v28, %v2918_v50 }
 0x2c6   :  { %v2706_v2 = vpop.f32.mrf.mxu0  ;;  %3120 = vadd.xlane.f32.xlu0 %v3119_v44  ;;  %v3058_v42 = vmul.f32 %v5108_v54, %v2982_v9 }
 0x2c7   :  { %vm2856_vm5 = vcmp.gt.f32.partialorder %v2705_v63, 0.0  ;;  %v2920_v19 = vmul.f32 0.2, %v2705_v63  ;;  %v2707_v20 = vadd.f32 %v2706_v2, %v5094_v45  ;;  %v2983_v31 = vsel %vm2855_vm4, %v2703_v47, %v2919_v36 }
 0x2c8   :  { %v2708_v27 = vpop.f32.mrf.mxu0  ;;  %v3122_v30 = vadd.f32 %v3058_v42, %v3057_v33  ;;  %v3059_v60 = vmul.f32 %v5105_v8, %v2983_v31 }
 0x2c9   :  { %vm2857_vm6 = vcmp.gt.f32.partialorder %v2707_v20, 0.0  ;;  %v2921_v56 = vmul.f32 0.2, %v2707_v20  ;;  %v2709_v49 = vadd.f32 %v2708_v27, %v5097_v5  ;;  %v2984_v43 = vsel %vm2856_vm5, %v2705_v63, %v2920_v19 }
 0x2ca   :  { %v2712_v13 = vpop.f32.mrf.mxu0  ;;  %3123 = vadd.xlane.f32.xlu0 %v3122_v30  ;;  %v3060_v61 = vmul.f32 %v5108_v54, %v2984_v43 }
 0x2cb   :  { %vm2858_vm7 = vcmp.gt.f32.partialorder %v2709_v49, 0.0  ;;  %v2922_v59 = vmul.f32 0.2, %v2709_v49  ;;  %v2713_v1 = vadd.f32 %v2712_v13, %v5094_v45  ;;  %v2985_v18 = vsel %vm2857_vm6, %v2707_v20, %v2921_v56 }
 0x2cc   :  { %v2714_v48 = vpop.f32.mrf.mxu0  ;;  %v3125_v39 = vadd.f32 %v3060_v61, %v3059_v60  ;;  %v3061_v25 = vmul.f32 %v5105_v8, %v2985_v18 }
 0x2cd   :  { %vm2859_vm8 = vcmp.gt.f32.partialorder %v2713_v1, 0.0  ;;  %v2923_v32 = vmul.f32 0.2, %v2713_v1  ;;  %v2715_v35 = vadd.f32 %v2714_v48, %v5097_v5  ;;  %v2986_v57 = vsel %vm2858_vm7, %v2709_v49, %v2922_v59 }
 0x2ce   :  { %v2716_v4 = vpop.f32.mrf.mxu0  ;;  %3126 = vadd.xlane.f32.xlu1 %v3125_v39  ;;  %v3062_v10 = vmul.f32 %v5108_v54, %v2986_v57 }
 0x2cf   :  { %vm2860_vm9 = vcmp.gt.f32.partialorder %v2715_v35, 0.0  ;;  %v2924_v23 = vmul.f32 0.2, %v2715_v35  ;;  %v2717_v55 = vadd.f32 %v2716_v4, %v5094_v45  ;;  %v2987_v40 = vsel %vm2859_vm8, %v2713_v1, %v2923_v32 }
 0x2d0   :  { %v2718_v58 = vpop.f32.mrf.mxu0  ;;  %v3128_v16 = vadd.f32 %v3062_v10, %v3061_v25  ;;  %v3063_v37 = vmul.f32 %v5105_v8, %v2987_v40 }
 0x2d1   :  { %vm2861_vm10 = vcmp.gt.f32.partialorder %v2717_v55, 0.0  ;;  %v2925_v3 = vmul.f32 0.2, %v2717_v55  ;;  %v2719_v14 = vadd.f32 %v2718_v58, %v5097_v5  ;;  %v2988_v0 = vsel %vm2860_vm9, %v2715_v35, %v2924_v23 }
 0x2d2   :  { %v2722_v12 = vpop.f32.mrf.mxu0  ;;  %3129 = vadd.xlane.f32.xlu1 %v3128_v16  ;;  %v3064_v22 = vmul.f32 %v5108_v54, %v2988_v0 }
 0x2d3   :  { %vm2862_vm11 = vcmp.gt.f32.partialorder %v2719_v14, 0.0  ;;  %v2926_v46 = vmul.f32 0.2, %v2719_v14  ;;  %v2723_v34 = vadd.f32 %v2722_v12, %v5094_v45  ;;  %v2989_v29 = vsel %vm2861_vm10, %v2717_v55, %v2925_v3 }
 0x2d4   :  { %v2724_v62 = vpop.f32.mrf.mxu0  ;;  %v3131_v21 = vadd.f32 %v3064_v22, %v3063_v37  ;;  %v3065_v51 = vmul.f32 %v5105_v8, %v2989_v29 }
 0x2d5   :  { %vm2863_vm12 = vcmp.gt.f32.partialorder %v2723_v34, 0.0  ;;  %v2927_v24 = vmul.f32 0.2, %v2723_v34  ;;  %v2725_v53 = vadd.f32 %v2724_v62, %v5097_v5  ;;  %v2990_v38 = vsel %vm2862_vm11, %v2719_v14, %v2926_v46 }
 0x2d6   :  { %v2726_v7 = vpop.f32.mrf.mxu0  ;;  %3132 = vadd.xlane.f32.xlu0 %v3131_v21  ;;  %v3066_v52 = vmul.f32 %v5108_v54, %v2990_v38 }
 0x2d7   :  { %vm2864_vm13 = vcmp.gt.f32.partialorder %v2725_v53, 0.0  ;;  %v2928_v28 = vmul.f32 0.2, %v2725_v53  ;;  %v2727_v15 = vadd.f32 %v2726_v7, %v5094_v45  ;;  %v2991_v41 = vsel %vm2863_vm12, %v2723_v34, %v2927_v24 }
 0x2d8   :  { %v2728_v11 = vpop.f32.mrf.mxu0  ;;  %v3134_v6 = vadd.f32 %v3066_v52, %v3065_v51  ;;  %v3067_v44 = vmul.f32 %v5105_v8, %v2991_v41 }
 0x2d9   :  { %vm2865_vm14 = vcmp.gt.f32.partialorder %v2727_v15, 0.0  ;;  %v2929_v50 = vmul.f32 0.2, %v2727_v15  ;;  %v2729_v47 = vadd.f32 %v2728_v11, %v5097_v5  ;;  %v2992_v26 = vsel %vm2864_vm13, %v2725_v53, %v2928_v28 }
 0x2da   :  { %v2732_v17 = vpop.f32.mrf.mxu0  ;;  %3135 = vadd.xlane.f32.xlu1 %v3134_v6  ;;  %v3068_v36 = vmul.f32 %v5108_v54, %v2992_v26 }
 0x2db   :  { %vm2866_vm15 = vcmp.gt.f32.partialorder %v2729_v47, 0.0  ;;  %v2930_v63 = vmul.f32 0.2, %v2729_v47  ;;  %v2733_v9 = vadd.f32 %v2732_v17, %v5094_v45  ;;  %v2993_v2 = vsel %vm2865_vm14, %v2727_v15, %v2929_v50 }
 0x2dc   :  { %v2734_v33 = vpop.f32.mrf.mxu0  ;;  %v3137_v42 = vadd.f32 %v3068_v36, %v3067_v44  ;;  %v3069_v30 = vmul.f32 %v5105_v8, %v2993_v2 }
 0x2dd   :  { %vm2867_vm0 = vcmp.gt.f32.partialorder %v2733_v9, 0.0  ;;  %v2931_v19 = vmul.f32 0.2, %v2733_v9  ;;  %v2735_v20 = vadd.f32 %v2734_v33, %v5097_v5  ;;  %v2994_v31 = vsel %vm2866_vm15, %v2729_v47, %v2930_v63 }
 0x2de   :  { %v2736_v27 = vpop.f32.mrf.mxu0  ;;  %3138 = vadd.xlane.f32.xlu0 %v3137_v42  ;;  %v3070_v56 = vmul.f32 %v5108_v54, %v2994_v31 }
 0x2df   :  { %vm2868_vm1 = vcmp.gt.f32.partialorder %v2735_v20, 0.0  ;;  %v2932_v49 = vmul.f32 0.2, %v2735_v20  ;;  %v2737_v43 = vadd.f32 %v2736_v27, %v5094_v45  ;;  %v2995_v13 = vsel %vm2867_vm0, %v2733_v9, %v2931_v19 }
 0x2e0   :  { %v2738_v60 = vpop.f32.mrf.mxu0  ;;  %v3140_v61 = vadd.f32 %v3070_v56, %v3069_v30  ;;  %v3071_v39 = vmul.f32 %v5105_v8, %v2995_v13 }
 0x2e1   :  { %vm2869_vm2 = vcmp.gt.f32.partialorder %v2737_v43, 0.0  ;;  %v2933_v59 = vmul.f32 0.2, %v2737_v43  ;;  %v2739_v1 = vadd.f32 %v2738_v60, %v5097_v5  ;;  %v2996_v18 = vsel %vm2868_vm1, %v2735_v20, %v2932_v49 }
 0x2e2   :  { %v2742_v48 = vpop.f32.mrf.mxu0  ;;  %3141 = vadd.xlane.f32.xlu1 %v3140_v61  ;;  %v3072_v32 = vmul.f32 %v5108_v54, %v2996_v18 }
 0x2e3   :  { %vm2870_vm3 = vcmp.gt.f32.partialorder %v2739_v1, 0.0  ;;  %v2934_v35 = vmul.f32 0.2, %v2739_v1  ;;  %v2743_v57 = vadd.f32 %v2742_v48, %v5094_v45  ;;  %v2997_v4 = vsel %vm2869_vm2, %v2737_v43, %v2933_v59 }
 0x2e4   :  { %v2744_v25 = vpop.f32.mrf.mxu0  ;;  %v3143_v10 = vadd.f32 %v3072_v32, %v3071_v39  ;;  %v3073_v16 = vmul.f32 %v5105_v8, %v2997_v4 }
 0x2e5   :  { %vm2871_vm4 = vcmp.gt.f32.partialorder %v2743_v57, 0.0  ;;  %v2935_v23 = vmul.f32 0.2, %v2743_v57  ;;  %v2745_v55 = vadd.f32 %v2744_v25, %v5097_v5  ;;  %v2998_v40 = vsel %vm2870_vm3, %v2739_v1, %v2934_v35 }
 0x2e6   :  { %v2746_v58 = vpop.f32.mrf.mxu0  ;;  %3144 = vadd.xlane.f32.xlu0 %v3143_v10  ;;  %v3074_v3 = vmul.f32 %v5108_v54, %v2998_v40 }
 0x2e7   :  { %vm2872_vm5 = vcmp.gt.f32.partialorder %v2745_v55, 0.0  ;;  %v2936_v14 = vmul.f32 0.2, %v2745_v55  ;;  %v2747_v0 = vadd.f32 %v2746_v58, %v5094_v45  ;;  %v2999_v12 = vsel %vm2871_vm4, %v2743_v57, %v2935_v23 }
 0x2e8   :  { %v2748_v37 = vpop.f32.mrf.mxu0  ;;  %v3146_v22 = vadd.f32 %v3074_v3, %v3073_v16  ;;  %v3075_v21 = vmul.f32 %v5105_v8, %v2999_v12 }
 0x2e9   :  { %vm2873_vm6 = vcmp.gt.f32.partialorder %v2747_v0, 0.0  ;;  %v2937_v46 = vmul.f32 0.2, %v2747_v0  ;;  %v2749_v34 = vadd.f32 %v2748_v37, %v5097_v5  ;;  %v3000_v29 = vsel %vm2872_vm5, %v2745_v55, %v2936_v14 }
 0x2ea   :  { %v2752_v62 = vpop.f32.mrf.mxu0  ;;  %3147 = vadd.xlane.f32.xlu1 %v3146_v22  ;;  %v3076_v24 = vmul.f32 %v5108_v54, %v3000_v29 }
 0x2eb   :  { %vm2874_vm7 = vcmp.gt.f32.partialorder %v2749_v34, 0.0  ;;  %v2938_v53 = vmul.f32 0.2, %v2749_v34  ;;  %v2753_v38 = vadd.f32 %v2752_v62, %v5094_v45  ;;  %v3001_v7 = vsel %vm2873_vm6, %v2747_v0, %v2937_v46 }
 0x2ec   :  { %v2754_v51 = vpop.f32.mrf.mxu0  ;;  %v3149_v52 = vadd.f32 %v3076_v24, %v3075_v21  ;;  %v3077_v6 = vmul.f32 %v5105_v8, %v3001_v7 }
 0x2ed   :  { %vm2875_vm8 = vcmp.gt.f32.partialorder %v2753_v38, 0.0  ;;  %v2939_v28 = vmul.f32 0.2, %v2753_v38  ;;  %v2755_v15 = vadd.f32 %v2754_v51, %v5097_v5  ;;  %v3002_v41 = vsel %vm2874_vm7, %v2749_v34, %v2938_v53 }
 0x2ee   :  { %v2756_v11 = vpop.f32.mrf.mxu0  ;;  %3150 = vadd.xlane.f32.xlu0 %v3149_v52  ;;  %v3078_v50 = vmul.f32 %v5108_v54, %v3002_v41 }
 0x2ef   :  { %vm2876_vm9 = vcmp.gt.f32.partialorder %v2755_v15, 0.0  ;;  %v2940_v47 = vmul.f32 0.2, %v2755_v15  ;;  %v2757_v26 = vadd.f32 %v2756_v11, %v5094_v45  ;;  %v3003_v17 = vsel %vm2875_vm8, %v2753_v38, %v2939_v28 }
 0x2f0   :  { %v2758_v44 = vpop.f32.mrf.mxu0  ;;  %v3152_v36 = vadd.f32 %v3078_v50, %v3077_v6  ;;  %v3079_v42 = vmul.f32 %v5105_v8, %v3003_v17 }
 0x2f1   :  { %vm2877_vm10 = vcmp.gt.f32.partialorder %v2757_v26, 0.0  ;;  %v2941_v63 = vmul.f32 0.2, %v2757_v26  ;;  %v2759_v9 = vadd.f32 %v2758_v44, %v5097_v5  ;;  %v3004_v2 = vsel %vm2876_vm9, %v2755_v15, %v2940_v47 }
 0x2f2   :  { %v2762_v33 = vpop.f32.mrf.mxu0  ;;  %3153 = vadd.xlane.f32.xlu1 %v3152_v36  ;;  %v3080_v19 = vmul.f32 %v5108_v54, %v3004_v2 }
 0x2f3   :  { %vm2878_vm11 = vcmp.gt.f32.partialorder %v2759_v9, 0.0  ;;  %v2942_v20 = vmul.f32 0.2, %v2759_v9  ;;  %v2763_v31 = vadd.f32 %v2762_v33, %v5094_v45  ;;  %v3005_v27 = vsel %vm2877_vm10, %v2757_v26, %v2941_v63 }
 0x2f4   :  { %v2764_v30 = vpop.f32.mrf.mxu0  ;;  %v3155_v56 = vadd.f32 %v3080_v19, %v3079_v42  ;;  %v3081_v61 = vmul.f32 %v5105_v8, %v3005_v27 }
 0x2f5   :  { %vm2879_vm12 = vcmp.gt.f32.partialorder %v2763_v31, 0.0  ;;  %v2943_v49 = vmul.f32 0.2, %v2763_v31  ;;  %v2765_v43 = vadd.f32 %v2764_v30, %v5097_v5  ;;  %v3006_v13 = vsel %vm2878_vm11, %v2759_v9, %v2942_v20 }
 0x2f6   :  { %v2766_v60 = vpop.f32.mrf.mxu0  ;;  %3156 = vadd.xlane.f32.xlu0 %v3155_v56  ;;  %v3082_v59 = vmul.f32 %v5108_v54, %v3006_v13 }
 0x2f7   :  { %vm2880_vm13 = vcmp.gt.f32.partialorder %v2765_v43, 0.0  ;;  %v2944_v1 = vmul.f32 0.2, %v2765_v43  ;;  %v2767_v18 = vadd.f32 %v2766_v60, %v5094_v45  ;;  %v3007_v48 = vsel %vm2879_vm12, %v2763_v31, %v2943_v49 }
 0x2f8   :  { %v2768_v39 = vpop.f32.mrf.mxu0  ;;  %v3158_v32 = vadd.f32 %v3082_v59, %v3081_v61  ;;  %v3083_v10 = vmul.f32 %v5105_v8, %v3007_v48 }
 0x2f9   :  { %vm2881_vm14 = vcmp.gt.f32.partialorder %v2767_v18, 0.0  ;;  %v2945_v35 = vmul.f32 0.2, %v2767_v18  ;;  %v2769_v57 = vadd.f32 %v2768_v39, %v5097_v5  ;;  %v3008_v4 = vsel %vm2880_vm13, %v2765_v43, %v2944_v1 }
 0x2fa   :  { %v2772_v25 = vpop.f32.mrf.mxu0  ;;  %3159 = vadd.xlane.f32.xlu1 %v3158_v32  ;;  %v3084_v23 = vmul.f32 %v5108_v54, %v3008_v4 }
 0x2fb   :  { %vm2882_vm15 = vcmp.gt.f32.partialorder %v2769_v57, 0.0  ;;  %v2946_v55 = vmul.f32 0.2, %v2769_v57  ;;  %v2773_v40 = vadd.f32 %v2772_v25, %v5094_v45  ;;  %v3009_v58 = vsel %vm2881_vm14, %v2767_v18, %v2945_v35 }
 0x2fc   :  { %v2774_v16 = vpop.f32.mrf.mxu0  ;;  %v3161_v3 = vadd.f32 %v3084_v23, %v3083_v10  ;;  %v3085_v22 = vmul.f32 %v5105_v8, %v3009_v58 }
 0x2fd   :  { %vm2883_vm0 = vcmp.gt.f32.partialorder %v2773_v40, 0.0  ;;  %v2947_v14 = vmul.f32 0.2, %v2773_v40  ;;  %v2775_v0 = vadd.f32 %v2774_v16, %v5097_v5  ;;  %v3010_v12 = vsel %vm2882_vm15, %v2769_v57, %v2946_v55 }
 0x2fe   :  { %v2776_v37 = vpop.f32.mrf.mxu0  ;;  %3162 = vadd.xlane.f32.xlu0 %v3161_v3  ;;  %v3086_v46 = vmul.f32 %v5108_v54, %v3010_v12 }
 0x2ff   :  { %vm2884_vm1 = vcmp.gt.f32.partialorder %v2775_v0, 0.0  ;;  %v2948_v34 = vmul.f32 0.2, %v2775_v0  ;;  %v2777_v29 = vadd.f32 %v2776_v37, %v5094_v45  ;;  %v3011_v62 = vsel %vm2883_vm0, %v2773_v40, %v2947_v14 }
 0x300   :  { %v2778_v21 = vpop.f32.mrf.mxu0  ;;  %v3164_v24 = vadd.f32 %v3086_v46, %v3085_v22  ;;  %v3087_v52 = vmul.f32 %v5105_v8, %v3011_v62 }
 0x301   :  { %vm2885_vm2 = vcmp.gt.f32.partialorder %v2777_v29, 0.0  ;;  %v2949_v53 = vmul.f32 0.2, %v2777_v29  ;;  %v2779_v38 = vadd.f32 %v2778_v21, %v5097_v5  ;;  %v3012_v7 = vsel %vm2884_vm1, %v2775_v0, %v2948_v34 }
 0x302   :  { %v2782_v51 = vpop.f32.mrf.mxu0  ;;  %3165 = vadd.xlane.f32.xlu1 %v3164_v24  ;;  %v3088_v28 = vmul.f32 %v5108_v54, %v3012_v7 }
 0x303   :  { %vm2886_vm3 = vcmp.gt.f32.partialorder %v2779_v38, 0.0  ;;  %v2950_v15 = vmul.f32 0.2, %v2779_v38  ;;  %v2783_v41 = vadd.f32 %v2782_v51, %v5094_v45  ;;  %v3013_v11 = vsel %vm2885_vm2, %v2777_v29, %v2949_v53 }
 0x304   :  { %v2784_v6 = vpop.f32.mrf.mxu0  ;;  %v3167_v50 = vadd.f32 %v3088_v28, %v3087_v52  ;;  %v3089_v36 = vmul.f32 %v5105_v8, %v3013_v11 }
 0x305   :  { %vm2887_vm4 = vcmp.gt.f32.partialorder %v2783_v41, 0.0  ;;  %v2951_v47 = vmul.f32 0.2, %v2783_v41  ;;  %v2785_v26 = vadd.f32 %v2784_v6, %v5097_v5  ;;  %v3014_v17 = vsel %vm2886_vm3, %v2779_v38, %v2950_v15 }
 0x306   :  { %v2786_v44 = vpop.f32.mrf.mxu0  ;;  %3168 = vadd.xlane.f32.xlu0 %v3167_v50  ;;  %v3090_v63 = vmul.f32 %v5108_v54, %v3014_v17 }
 0x307   :  { %vm2888_vm5 = vcmp.gt.f32.partialorder %v2785_v26, 0.0  ;;  %v2952_v9 = vmul.f32 0.2, %v2785_v26  ;;  %v2787_v2 = vadd.f32 %v2786_v44, %v5094_v45  ;;  %v3015_v33 = vsel %vm2887_vm4, %v2783_v41, %v2951_v47 }
 0x308   :  { %v2788_v42 = vpop.f32.mrf.mxu0  ;;  %v3170_v19 = vadd.f32 %v3090_v63, %v3089_v36  ;;  %v3091_v56 = vmul.f32 %v5105_v8, %v3015_v33 }
 0x309   :  { %vm2889_vm6 = vcmp.gt.f32.partialorder %v2787_v2, 0.0  ;;  %v2953_v20 = vmul.f32 0.2, %v2787_v2  ;;  %v2789_v31 = vadd.f32 %v2788_v42, %v5097_v5  ;;  %v3016_v27 = vsel %vm2888_vm5, %v2785_v26, %v2952_v9 }
 0x30a   :  { %v2792_v30 = vpop.f32.mrf.mxu0  ;;  %3171 = vadd.xlane.f32.xlu1 %v3170_v19  ;;  %v3092_v49 = vmul.f32 %v5108_v54, %v3016_v27 }
 0x30b   :  { %vm2890_vm7 = vcmp.gt.f32.partialorder %v2789_v31, 0.0  ;;  %v2954_v43 = vmul.f32 0.2, %v2789_v31  ;;  %v2793_v13 = vadd.f32 %v2792_v30, %v5094_v45  ;;  %v3017_v60 = vsel %vm2889_vm6, %v2787_v2, %v2953_v20 }
 0x30c   :  { %v2794_v61 = vpop.f32.mrf.mxu0  ;;  %v3173_v59 = vadd.f32 %v3092_v49, %v3091_v56  ;;  %v3093_v32 = vmul.f32 %v5105_v8, %v3017_v60 }
 0x30d   :  { %vm2891_vm8 = vcmp.gt.f32.partialorder %v2793_v13, 0.0  ;;  %v2955_v1 = vmul.f32 0.2, %v2793_v13  ;;  %v2795_v18 = vadd.f32 %v2794_v61, %v5097_v5  ;;  %v3018_v48 = vsel %vm2890_vm7, %v2789_v31, %v2954_v43 }
 0x30e   :  { %v2796_v39 = vpop.f32.mrf.mxu0  ;;  %3174 = vadd.xlane.f32.xlu0 %v3173_v59  ;;  %v3094_v35 = vmul.f32 %v5108_v54, %v3018_v48 }
 0x30f   :  { %vm2892_vm9 = vcmp.gt.f32.partialorder %v2795_v18, 0.0  ;;  %v2956_v57 = vmul.f32 0.2, %v2795_v18  ;;  %v2797_v4 = vadd.f32 %v2796_v39, %v5094_v45  ;;  %v3019_v25 = vsel %vm2891_vm8, %v2793_v13, %v2955_v1 }
 0x310   :  { %v2798_v10 = vpop.f32.mrf.mxu0  ;;  %v3176_v23 = vadd.f32 %v3094_v35, %v3093_v32  ;;  %v3095_v3 = vmul.f32 %v5105_v8, %v3019_v25 }
 0x311   :  { %vm2893_vm10 = vcmp.gt.f32.partialorder %v2797_v4, 0.0  ;;  %v2957_v55 = vmul.f32 0.2, %v2797_v4  ;;  %v2799_v40 = vadd.f32 %v2798_v10, %v5097_v5  ;;  %v3020_v58 = vsel %vm2892_vm9, %v2795_v18, %v2956_v57 }
 0x312   :  { %v2802_v16 = vpop.f32.mrf.mxu0  ;;  %3177 = vadd.xlane.f32.xlu1 %v3176_v23  ;;  %v3096_v14 = vmul.f32 %v5108_v54, %v3020_v58 }
 0x313   :  { %vm2894_vm11 = vcmp.gt.f32.partialorder %v2799_v40, 0.0  ;;  %v2958_v0 = vmul.f32 0.2, %v2799_v40  ;;  %v2803_v12 = vadd.f32 %v2802_v16, %v5094_v45  ;;  %v3021_v37 = vsel %vm2893_vm10, %v2797_v4, %v2957_v55 }
 0x314   :  { %v2804_v22 = vpop.f32.mrf.mxu0  ;;  %v3179_v46 = vadd.f32 %v3096_v14, %v3095_v3  ;;  %v3097_v24 = vmul.f32 %v5105_v8, %v3021_v37 }
 0x315   :  { %vm2895_vm12 = vcmp.gt.f32.partialorder %v2803_v12, 0.0  ;;  %v2959_v34 = vmul.f32 0.2, %v2803_v12  ;;  %v2805_v29 = vadd.f32 %v2804_v22, %v5097_v5  ;;  %v3022_v62 = vsel %vm2894_vm11, %v2799_v40, %v2958_v0 }
 0x316   :  { %v2806_v21 = vpop.f32.mrf.mxu0  ;;  %3180 = vadd.xlane.f32.xlu0 %v3179_v46  ;;  %v3098_v53 = vmul.f32 %v5108_v54, %v3022_v62 }
 0x317   :  { %vm2896_vm13 = vcmp.gt.f32.partialorder %v2805_v29, 0.0  ;;  %v2960_v38 = vmul.f32 0.2, %v2805_v29  ;;  %v2807_v7 = vadd.f32 %v2806_v21, %v5094_v45  ;;  %v3023_v51 = vsel %vm2895_vm12, %v2803_v12, %v2959_v34 }
 0x318   :  { %v2808_v52 = vpop.f32.mrf.mxu0  ;;  %v3182_v28 = vadd.f32 %v3098_v53, %v3097_v24  ;;  %v3099_v50 = vmul.f32 %v5105_v8, %v3023_v51 }
 0x319   :  { %vm2897_vm14 = vcmp.gt.f32.partialorder %v2807_v7, 0.0  ;;  %v2961_v15 = vmul.f32 0.2, %v2807_v7  ;;  %v2809_v41 = vadd.f32 %v2808_v52, %v5097_v5  ;;  %v3024_v11 = vsel %vm2896_vm13, %v2805_v29, %v2960_v38 }
 0x31a   :  { %v2812_v6 = vpop.f32.mrf.mxu0  ;;  %3183 = vadd.xlane.f32.xlu1 %v3182_v28  ;;  %v3100_v47 = vmul.f32 %v5108_v54, %v3024_v11 }
 0x31b   :  { %vm2898_vm15 = vcmp.gt.f32.partialorder %v2809_v41, 0.0  ;;  %v2962_v26 = vmul.f32 0.2, %v2809_v41  ;;  %v2813_v17 = vadd.f32 %v2812_v6, %v5094_v45  ;;  %v3025_v44 = vsel %vm2897_vm14, %v2807_v7, %v2961_v15 }
 0x31c   :  { %v2814_v36 = vpop.f32.mrf.mxu0  ;;  %v3185_v63 = vadd.f32 %v3100_v47, %v3099_v50  ;;  %v3101_v19 = vmul.f32 %v5105_v8, %v3025_v44 }
 0x31d   :  { %vm2899_vm0 = vcmp.gt.f32.partialorder %v2813_v17, 0.0  ;;  %v2963_v9 = vmul.f32 0.2, %v2813_v17  ;;  %v2815_v2 = vadd.f32 %v2814_v36, %v5097_v5  ;;  %v3026_v33 = vsel %vm2898_vm15, %v2809_v41, %v2962_v26 }
 0x31e   :  { %v2816_v42 = vpop.f32.mrf.mxu0  ;;  %3186 = vadd.xlane.f32.xlu0 %v3185_v63  ;;  %v3102_v20 = vmul.f32 %v5108_v54, %v3026_v33 }
 0x31f   :  { %vm2900_vm1 = vcmp.gt.f32.partialorder %v2815_v2, 0.0  ;;  %v2964_v31 = vmul.f32 0.2, %v2815_v2  ;;  %v2817_v27 = vadd.f32 %v2816_v42, %v5094_v45  ;;  %v3027_v30 = vsel %vm2899_vm0, %v2813_v17, %v2963_v9 }
 0x320   :  { %v2818_v56 = vpop.f32.mrf.mxu0  ;;  %v3188_v49 = vadd.f32 %v3102_v20, %v3101_v19  ;;  %v3103_v59 = vmul.f32 %v5105_v8, %v3027_v30  ;;  %vm3446_vm0 = vcmask 7168  }
 0x321   :  { %vm2901_vm2 = vcmp.gt.f32.partialorder %v2817_v27, 0.0  ;;  %v2965_v43 = vmul.f32 0.2, %v2817_v27  ;;  %v2819_v13 = vadd.f32 %v2818_v56, %v5097_v5  ;;  %v3028_v60 = vsel %vm2900_vm1, %v2815_v2, %v2964_v31 }
 0x322   :  { %v2822_v61 = vpop.f32.mrf.mxu0  ;;  %3189 = vadd.xlane.f32.xlu1 %v3188_v49  ;;  %v3104_v1 = vmul.f32 %v5108_v54, %v3028_v60 }
 0x323   :  { %vm2902_vm3 = vcmp.gt.f32.partialorder %v2819_v13, 0.0  ;;  %v2966_v18 = vmul.f32 0.2, %v2819_v13  ;;  %v2823_v48 = vadd.f32 %v2822_v61, %v5094_v45  ;;  %v3029_v39 = vsel %vm2901_vm2, %v2817_v27, %v2965_v43 }
 0x324   :  { %v2824_v32 = vpop.f32.mrf.mxu0  ;;  %v3191_v35 = vadd.f32 %v3104_v1, %v3103_v59  ;;  %v3105_v23 = vmul.f32 %v5105_v8, %v3029_v39 }
 0x325   :  { %vm2903_vm4 = vcmp.gt.f32.partialorder %v2823_v48, 0.0  ;;  %v2967_v57 = vmul.f32 0.2, %v2823_v48  ;;  %v2825_v4 = vadd.f32 %v2824_v32, %v5097_v5  ;;  %v3030_v25 = vsel %vm2902_vm3, %v2819_v13, %v2966_v18 }
 0x326   :  { %v2826_v10 = vpop.f32.mrf.mxu0  ;;  %3192 = vadd.xlane.f32.xlu0 %v3191_v35  ;;  %v3106_v55 = vmul.f32 %v5108_v54, %v3030_v25 }
 0x327   :  { %vm2904_vm5 = vcmp.gt.f32.partialorder %v2825_v4, 0.0  ;;  %v2968_v40 = vmul.f32 0.2, %v2825_v4  ;;  %v2827_v58 = vadd.f32 %v2826_v10, %v5094_v45  ;;  %v3031_v16 = vsel %vm2903_vm4, %v2823_v48, %v2967_v57 }
 0x328   :  { %v2828_v3 = vpop.f32.mrf.mxu0  ;;  %v3194_v14 = vadd.f32 %v3106_v55, %v3105_v23  ;;  %v3107_v46 = vmul.f32 %v5105_v8, %v3031_v16 }
 0x329   :  { %vm2905_vm6 = vcmp.gt.f32.partialorder %v2827_v58, 0.0  ;;  %v2969_v0 = vmul.f32 0.2, %v2827_v58  ;;  %v2829_v12 = vadd.f32 %v2828_v3, %v5097_v5  ;;  %v3032_v37 = vsel %vm2904_vm5, %v2825_v4, %v2968_v40  ;;  %v5236_v40 = vld [vmem:[#allocation2] ss:$0 sm:$0xff] }
 0x32a   :  { %v2832_v22 = vpop.f32.mrf.mxu0  ;;  %3195 = vadd.xlane.f32.xlu1 %v3194_v14  ;;  %v3108_v34 = vmul.f32 %v5108_v54, %v3032_v37 }
 0x32b   :  { %vm2906_vm7 = vcmp.gt.f32.partialorder %v2829_v12, 0.0  ;;  %v2970_v29 = vmul.f32 0.2, %v2829_v12  ;;  %v2833_v62 = vadd.f32 %v2832_v22, %v5094_v45  ;;  %v3033_v21 = vsel %vm2905_vm6, %v2827_v58, %v2969_v0 }
 0x32c   :  { %v2834_v24 = vpop.f32.mrf.mxu0  ;;  %v3197_v53 = vadd.f32 %v3108_v34, %v3107_v46  ;;  %v3109_v28 = vmul.f32 %v5105_v8, %v3033_v21 }
 0x32d   :  { %vm2907_vm8 = vcmp.gt.f32.partialorder %v2833_v62, 0.0  ;;  %v2971_v38 = vmul.f32 0.2, %v2833_v62  ;;  %v2835_v7 = vadd.f32 %v2834_v24, %v5097_v5  ;;  %v3034_v51 = vsel %vm2906_vm7, %v2829_v12, %v2970_v29 }
 0x32e   :  { %v2836_v52 = vpop.f32.mrf.mxu0  ;;  %3198 = vadd.xlane.f32.xlu0 %v3197_v53  ;;  %v3110_v15 = vmul.f32 %v5108_v54, %v3034_v51 }
 0x32f   :  { %vm2908_vm9 = vcmp.gt.f32.partialorder %v2835_v7, 0.0  ;;  %v2972_v41 = vmul.f32 0.2, %v2835_v7  ;;  %v2837_v11 = vadd.f32 %v2836_v52, %v5094_v45  ;;  %v3035_v6 = vsel %vm2907_vm8, %v2833_v62, %v2971_v38 }
 0x330   :  { %v2838_v50 = vpop.f32.mrf.mxu0  ;;  %v3200_v47 = vadd.f32 %v3110_v15, %v3109_v28  ;;  %v3111_v63 = vmul.f32 %v5105_v8, %v3035_v6 }
 0x331   :  { %vm2909_vm10 = vcmp.gt.f32.partialorder %v2837_v11, 0.0  ;;  %v2973_v26 = vmul.f32 0.2, %v2837_v11  ;;  %v2839_v17 = vadd.f32 %v2838_v50, %v5097_v5  ;;  %v3036_v44 = vsel %vm2908_vm9, %v2835_v7, %v2972_v41 }
 0x332   :  { %v2842_v36 = vpop.f32.mrf.mxu0  ;;  %3201 = vadd.xlane.f32.xlu1 %v3200_v47  ;;  %v3112_v9 = vmul.f32 %v5108_v54, %v3036_v44 }
 0x333   :  { %vm2910_vm11 = vcmp.gt.f32.partialorder %v2839_v17, 0.0  ;;  %v2974_v2 = vmul.f32 0.2, %v2839_v17  ;;  %v2843_v33 = vadd.f32 %v2842_v36, %v5094_v45  ;;  %v3037_v42 = vsel %vm2909_vm10, %v2837_v11, %v2973_v26 }
 0x334   :  { %v2844_v19 = vpop.f32.mrf.mxu0  ;;  %v3203_v20 = vadd.f32 %v3112_v9, %v3111_v63  ;;  %v3113_v49 = vmul.f32 %v5105_v8, %v3037_v42 }
 0x335   :  { %vm2911_vm12 = vcmp.gt.f32.partialorder %v2843_v33, 0.0  ;;  %v2975_v31 = vmul.f32 0.2, %v2843_v33  ;;  %v2845_v27 = vadd.f32 %v2844_v19, %v5097_v5  ;;  %v3038_v30 = vsel %vm2910_vm11, %v2839_v17, %v2974_v2 }
 0x336   :  { %v2846_v56 = vpop.f32.mrf.mxu0  ;;  %3204 = vadd.xlane.f32.xlu0 %v3203_v20  ;;  %v3114_v43 = vmul.f32 %v5108_v54, %v3038_v30 }
 0x337   :  { %vm2912_vm13 = vcmp.gt.f32.partialorder %v2845_v27, 0.0  ;;  %v2976_v13 = vmul.f32 0.2, %v2845_v27  ;;  %v2847_v60 = vadd.f32 %v2846_v56, %v5094_v45  ;;  %v3039_v61 = vsel %vm2911_vm12, %v2843_v33, %v2975_v31 }
 0x338   :  { %v2848_v59 = vpop.f32.mrf.mxu0  ;;  %v3206_v1 = vadd.f32 %v3114_v43, %v3113_v49  ;;  %v3115_v32 = vmul.f32 %v5105_v8, %v3039_v61 }
 0x339   :  { %vm2913_vm14 = vcmp.gt.f32.partialorder %v2847_v60, 0.0  ;;  %v2977_v18 = vmul.f32 0.2, %v2847_v60  ;;  %v2849_v48 = vadd.f32 %v2848_v59, %v5097_v5  ;;  %v3040_v39 = vsel %vm2912_vm13, %v2845_v27, %v2976_v13 }
 0x33a   :  { %3207 = vadd.xlane.f32.xlu1 %v3206_v1  ;;  %v3116_v35 = vmul.f32 %v5108_v54, %v3040_v39 }
 0x33b   :  { %vm2914_vm15 = vcmp.gt.f32.partialorder %v2849_v48, 0.0  ;;  %v2978_v57 = vmul.f32 0.2, %v2849_v48  ;;  %v3041_v4 = vsel %vm2913_vm14, %v2847_v60, %v2977_v18 }
 0x33c   :  { %v3209_v25 = vadd.f32 %v3116_v35, %v3115_v32  ;;  %v3117_v45 = vmul.f32 %v5105_v8, %v3041_v4 }
 0x33d   :  { %v3042_v10 = vsel %vm2914_vm15, %v2849_v48, %v2978_v57 }
 0x33e   :  { %3210 = vadd.xlane.f32.xlu0 %v3209_v25  ;;  %v3118_v23 = vmul.f32 %v5108_v54, %v3042_v10 }
 0x340   :  { %v3212_v55 = vadd.f32 %v3118_v23, %v3117_v45 }
 0x342   :  { %3213 = vadd.xlane.f32.xlu1 %v3212_v55 }
 0x34f   :  { %v3121_v5 = vpop.xlane.xlu0 %3120 }
 0x350   :  { %v3222_v58 = vadd.f32 %v5236_v40, %v3121_v5 }
 0x352   :  { %v3742_v16 = vmul.f32 -1.442695, %v3222_v58 }
 0x353   :  { %v3124_v3 = vpop.xlane.xlu0 %3123 }
 0x354   :  { %4190 = vpow2.f32 %v3742_v16  ;;  %v3223_v14 = vadd.f32 %v5236_v40, %v3124_v3 }
 0x356   :  { %v3743_v0 = vmul.f32 -1.442695, %v3223_v14 }
 0x357   :  { %v3127_v12 = vpop.xlane.xlu1 %3126 }
 0x358   :  { %4192 = vpow2.f32 %v3743_v0  ;;  %v3224_v37 = vadd.f32 %v5236_v40, %v3127_v12 }
 0x35a   :  { %v3744_v8 = vmul.f32 -1.442695, %v3224_v37 }
 0x35b   :  { %v3130_v22 = vpop.xlane.xlu1 %3129 }
 0x35c   :  { %4194 = vpow2.f32 %v3744_v8  ;;  %v3225_v54 = vadd.f32 %v5236_v40, %v3130_v22 }
 0x35e   :  { %v3745_v46 = vmul.f32 -1.442695, %v3225_v54 }
 0x35f   :  { %v3133_v34 = vpop.xlane.xlu0 %3132 }
 0x360   :  { %4196 = vpow2.f32 %v3745_v46  ;;  %v3226_v29 = vadd.f32 %v5236_v40, %v3133_v34 }
 0x361   :  { %v4191_v62 = vpop.eup %4190 }
 0x362   :  { %v3350_v21 = vadd.f32 1.0, %v4191_v62  ;;  %v3746_v24 = vmul.f32 -1.442695, %v3226_v29 }
 0x363   :  { %v3136_v53 = vpop.xlane.xlu1 %3135 }
 0x364   :  { %4198 = vrcp.f32 %v3350_v21  ;;  %v3227_v38 = vadd.f32 %v5236_v40, %v3136_v53 }
 0x365   :  { %v4193_v7 = vpop.eup %4192  ;;  %4200 = vpow2.f32 %v3746_v24 }
 0x366   :  { %v3351_v51 = vadd.f32 1.0, %v4193_v7  ;;  %v3747_v52 = vmul.f32 -1.442695, %v3227_v38 }
 0x367   :  { %v3139_v28 = vpop.xlane.xlu0 %3138 }
 0x368   :  { %4202 = vrcp.f32 %v3351_v51  ;;  %v3228_v15 = vadd.f32 %v5236_v40, %v3139_v28 }
 0x369   :  { %v4195_v41 = vpop.eup %4194  ;;  %4204 = vpow2.f32 %v3747_v52 }
 0x36a   :  { %v3352_v11 = vadd.f32 1.0, %v4195_v41  ;;  %v3748_v6 = vmul.f32 -1.442695, %v3228_v15 }
 0x36b   :  { %v3142_v50 = vpop.xlane.xlu1 %3141 }
 0x36c   :  { %4206 = vrcp.f32 %v3352_v11  ;;  %v3229_v47 = vadd.f32 %v5236_v40, %v3142_v50 }
 0x36d   :  { %v4197_v26 = vpop.eup %4196  ;;  %4208 = vpow2.f32 %v3748_v6 }
 0x36e   :  { %v3353_v17 = vadd.f32 1.0, %v4197_v26  ;;  %v3749_v44 = vmul.f32 -1.442695, %v3229_v47 }
 0x36f   :  { %v3145_v36 = vpop.xlane.xlu0 %3144 }
 0x370   :  { %4210 = vrcp.f32 %v3353_v17  ;;  %v3230_v63 = vadd.f32 %v5236_v40, %v3145_v36 }
 0x371   :  { %v4199_v9 = vpop.eup %4198  ;;  %4212 = vpow2.f32 %v3749_v44 }
 0x372   :  { %v4201_v2 = vpop.eup %4200  ;;  %3447 = vst.msk [vmem:[%s5405_s7] sm:$0xff] %vm3446_vm0, %v4199_v9  ;;  %v3750_v33 = vmul.f32 -1.442695, %v3230_v63 }
 0x373   :  { %v3354_v42 = vadd.f32 1.0, %v4201_v2  ;;  %v3148_v19 = vpop.xlane.xlu1 %3147 }
 0x374   :  { %4214 = vpow2.f32 %v3750_v33  ;;  %v3231_v20 = vadd.f32 %v5236_v40, %v3148_v19 }
 0x375   :  { %v4203_v31 = vpop.eup %4202  ;;  %4216 = vrcp.f32 %v3354_v42 }
 0x376   :  { %v4205_v27 = vpop.eup %4204  ;;  %3448 = vst.msk [vmem:[%s5405_s7 + $0x8] sm:$0xff] %vm3446_vm0, %v4203_v31  ;;  %v3751_v30 = vmul.f32 -1.442695, %v3231_v20 }
 0x377   :  { %v3355_v56 = vadd.f32 1.0, %v4205_v27  ;;  %v3151_v49 = vpop.xlane.xlu0 %3150 }
 0x378   :  { %4218 = vpow2.f32 %v3751_v30  ;;  %v3232_v43 = vadd.f32 %v5236_v40, %v3151_v49 }
 0x379   :  { %v4207_v13 = vpop.eup %4206  ;;  %4220 = vrcp.f32 %v3355_v56 }
 0x37a   :  { %v4209_v60 = vpop.eup %4208  ;;  %3449 = vst.msk [vmem:[%s5405_s7 + $0x10] sm:$0xff] %vm3446_vm0, %v4207_v13  ;;  %v3752_v61 = vmul.f32 -1.442695, %v3232_v43 }
 0x37b   :  { %v3356_v59 = vadd.f32 1.0, %v4209_v60  ;;  %v3154_v1 = vpop.xlane.xlu1 %3153 }
 0x37c   :  { %4222 = vpow2.f32 %v3752_v61  ;;  %v3233_v18 = vadd.f32 %v5236_v40, %v3154_v1 }
 0x37d   :  { %v4211_v48 = vpop.eup %4210  ;;  %4224 = vrcp.f32 %v3356_v59 }
 0x37e   :  { %v4213_v39 = vpop.eup %4212  ;;  %3450 = vst.msk [vmem:[%s5405_s7 + $0x18] sm:$0xff] %vm3446_vm0, %v4211_v48  ;;  %v3753_v32 = vmul.f32 -1.442695, %v3233_v18 }
 0x37f   :  { %v3357_v35 = vadd.f32 1.0, %v4213_v39  ;;  %v3157_v57 = vpop.xlane.xlu0 %3156 }
 0x380   :  { %4226 = vpow2.f32 %v3753_v32  ;;  %v3234_v4 = vadd.f32 %v5236_v40, %v3157_v57 }
 0x381   :  { %v4215_v25 = vpop.eup %4214  ;;  %4228 = vrcp.f32 %v3357_v35 }
 0x382   :  { %v4217_v10 = vpop.eup %4216  ;;  %v3358_v45 = vadd.f32 1.0, %v4215_v25  ;;  %v3754_v23 = vmul.f32 -1.442695, %v3234_v4 }
 0x383   :  { %3451 = vst.msk [vmem:[%s5405_s7 + $0x20] sm:$0xff] %vm3446_vm0, %v4217_v10  ;;  %v3160_v55 = vpop.xlane.xlu1 %3159 }
 0x384   :  { %4230 = vrcp.f32 %v3358_v45  ;;  %v3235_v5 = vadd.f32 %v5236_v40, %v3160_v55 }
 0x385   :  { %v4219_v58 = vpop.eup %4218  ;;  %4232 = vpow2.f32 %v3754_v23 }
 0x386   :  { %v4221_v16 = vpop.eup %4220  ;;  %v3359_v3 = vadd.f32 1.0, %v4219_v58  ;;  %v3755_v14 = vmul.f32 -1.442695, %v3235_v5 }
 0x387   :  { %3452 = vst.msk [vmem:[%s5405_s7 + $0x28] sm:$0xff] %vm3446_vm0, %v4221_v16  ;;  %v3163_v0 = vpop.xlane.xlu0 %3162 }
 0x388   :  { %4234 = vrcp.f32 %v3359_v3  ;;  %v3236_v12 = vadd.f32 %v5236_v40, %v3163_v0 }
 0x389   :  { %v4223_v37 = vpop.eup %4222  ;;  %4236 = vpow2.f32 %v3755_v14 }
 0x38a   :  { %v4225_v8 = vpop.eup %4224  ;;  %v3360_v22 = vadd.f32 1.0, %v4223_v37  ;;  %v3756_v54 = vmul.f32 -1.442695, %v3236_v12 }
 0x38b   :  { %3453 = vst.msk [vmem:[%s5405_s7 + $0x30] sm:$0xff] %vm3446_vm0, %v4225_v8  ;;  %v3166_v46 = vpop.xlane.xlu1 %3165 }
 0x38c   :  { %4238 = vrcp.f32 %v3360_v22  ;;  %v3237_v34 = vadd.f32 %v5236_v40, %v3166_v46 }
 0x38d   :  { %v4227_v29 = vpop.eup %4226  ;;  %4240 = vpow2.f32 %v3756_v54 }
 0x38e   :  { %v4229_v62 = vpop.eup %4228  ;;  %v3361_v21 = vadd.f32 1.0, %v4227_v29  ;;  %v3757_v24 = vmul.f32 -1.442695, %v3237_v34 }
 0x38f   :  { %3454 = vst.msk [vmem:[%s5405_s7 + $0x38] sm:$0xff] %vm3446_vm0, %v4229_v62  ;;  %v3169_v53 = vpop.xlane.xlu0 %3168 }
 0x390   :  { %4242 = vrcp.f32 %v3361_v21  ;;  %v3238_v38 = vadd.f32 %v5236_v40, %v3169_v53 }
 0x391   :  { %v4231_v7 = vpop.eup %4230  ;;  %4244 = vpow2.f32 %v3757_v24 }
 0x392   :  { %v4233_v51 = vpop.eup %4232  ;;  %3455 = vst.msk [vmem:[%s5405_s7 + $0x40] sm:$0xff] %vm3446_vm0, %v4231_v7  ;;  %v3758_v52 = vmul.f32 -1.442695, %v3238_v38 }
 0x393   :  { %v3362_v28 = vadd.f32 1.0, %v4233_v51  ;;  %v3172_v15 = vpop.xlane.xlu1 %3171 }
 0x394   :  { %4246 = vpow2.f32 %v3758_v52  ;;  %v3239_v41 = vadd.f32 %v5236_v40, %v3172_v15 }
 0x395   :  { %v4235_v11 = vpop.eup %4234  ;;  %4248 = vrcp.f32 %v3362_v28 }
 0x396   :  { %v4237_v6 = vpop.eup %4236  ;;  %3456 = vst.msk [vmem:[%s5405_s7 + $0x48] sm:$0xff] %vm3446_vm0, %v4235_v11  ;;  %v3759_v50 = vmul.f32 -1.442695, %v3239_v41 }
 0x397   :  { %v3363_v47 = vadd.f32 1.0, %v4237_v6  ;;  %v3175_v26 = vpop.xlane.xlu0 %3174 }
 0x398   :  { %4250 = vpow2.f32 %v3759_v50  ;;  %v3240_v17 = vadd.f32 %v5236_v40, %v3175_v26 }
 0x399   :  { %v4239_v44 = vpop.eup %4238  ;;  %4252 = vrcp.f32 %v3363_v47 }
 0x39a   :  { %v4241_v36 = vpop.eup %4240  ;;  %3457 = vst.msk [vmem:[%s5405_s7 + $0x50] sm:$0xff] %vm3446_vm0, %v4239_v44  ;;  %v3760_v63 = vmul.f32 -1.442695, %v3240_v17 }
 0x39b   :  { %v3364_v9 = vadd.f32 1.0, %v4241_v36  ;;  %v3178_v2 = vpop.xlane.xlu1 %3177 }
 0x39c   :  { %4254 = vpow2.f32 %v3760_v63  ;;  %v3241_v33 = vadd.f32 %v5236_v40, %v3178_v2 }
 0x39d   :  { %v4243_v42 = vpop.eup %4242  ;;  %4256 = vrcp.f32 %v3364_v9 }
 0x39e   :  { %v4245_v19 = vpop.eup %4244  ;;  %3458 = vst.msk [vmem:[%s5405_s7 + $0x58] sm:$0xff] %vm3446_vm0, %v4243_v42  ;;  %v3761_v20 = vmul.f32 -1.442695, %v3241_v33 }
 0x39f   :  { %v3365_v31 = vadd.f32 1.0, %v4245_v19  ;;  %v3181_v27 = vpop.xlane.xlu0 %3180 }
 0x3a0   :  { %4258 = vpow2.f32 %v3761_v20  ;;  %v3242_v30 = vadd.f32 %v5236_v40, %v3181_v27 }
 0x3a1   :  { %v4247_v56 = vpop.eup %4246  ;;  %4260 = vrcp.f32 %v3365_v31 }
 0x3a2   :  { %v4249_v49 = vpop.eup %4248  ;;  %v3366_v43 = vadd.f32 1.0, %v4247_v56  ;;  %v3762_v13 = vmul.f32 -1.442695, %v3242_v30 }
 0x3a3   :  { %3459 = vst.msk [vmem:[%s5405_s7 + $0x60] sm:$0xff] %vm3446_vm0, %v4249_v49  ;;  %v3184_v60 = vpop.xlane.xlu1 %3183 }
 0x3a4   :  { %4262 = vrcp.f32 %v3366_v43  ;;  %v3243_v61 = vadd.f32 %v5236_v40, %v3184_v60 }
 0x3a5   :  { %v4251_v59 = vpop.eup %4250  ;;  %4264 = vpow2.f32 %v3762_v13 }
 0x3a6   :  { %v4253_v1 = vpop.eup %4252  ;;  %v3367_v18 = vadd.f32 1.0, %v4251_v59  ;;  %v3763_v48 = vmul.f32 -1.442695, %v3243_v61 }
 0x3a7   :  { %3460 = vst.msk [vmem:[%s5405_s7 + $0x68] sm:$0xff] %vm3446_vm0, %v4253_v1  ;;  %v3187_v39 = vpop.xlane.xlu0 %3186 }
 0x3a8   :  { %4266 = vrcp.f32 %v3367_v18  ;;  %v3244_v32 = vadd.f32 %v5236_v40, %v3187_v39 }
 0x3a9   :  { %v4255_v35 = vpop.eup %4254  ;;  %4268 = vpow2.f32 %v3763_v48 }
 0x3aa   :  { %v4257_v57 = vpop.eup %4256  ;;  %v3368_v4 = vadd.f32 1.0, %v4255_v35  ;;  %v3764_v25 = vmul.f32 -1.442695, %v3244_v32 }
 0x3ab   :  { %3461 = vst.msk [vmem:[%s5405_s7 + $0x70] sm:$0xff] %vm3446_vm0, %v4257_v57  ;;  %v3190_v10 = vpop.xlane.xlu1 %3189 }
 0x3ac   :  { %4270 = vrcp.f32 %v3368_v4  ;;  %v3245_v45 = vadd.f32 %v5236_v40, %v3190_v10 }
 0x3ad   :  { %v4259_v23 = vpop.eup %4258  ;;  %4272 = vpow2.f32 %v3764_v25 }
 0x3ae   :  { %v4261_v55 = vpop.eup %4260  ;;  %v3369_v5 = vadd.f32 1.0, %v4259_v23  ;;  %v3765_v58 = vmul.f32 -1.442695, %v3245_v45 }
 0x3af   :  { %3462 = vst.msk [vmem:[%s5405_s7 + $0x78] sm:$0xff] %vm3446_vm0, %v4261_v55  ;;  %v3193_v16 = vpop.xlane.xlu0 %3192 }
 0x3b0   :  { %4274 = vrcp.f32 %v3369_v5  ;;  %v3246_v3 = vadd.f32 %v5236_v40, %v3193_v16 }
 0x3b1   :  { %v4263_v14 = vpop.eup %4262  ;;  %4276 = vpow2.f32 %v3765_v58 }
 0x3b2   :  { %v4265_v0 = vpop.eup %4264  ;;  %3463 = vst.msk [vmem:[%s5405_s7 + $0x80] sm:$0xff] %vm3446_vm0, %v4263_v14  ;;  %v3766_v12 = vmul.f32 -1.442695, %v3246_v3 }
 0x3b3   :  { %v3370_v37 = vadd.f32 1.0, %v4265_v0  ;;  %v3196_v8 = vpop.xlane.xlu1 %3195 }
 0x3b4   :  { %4278 = vpow2.f32 %v3766_v12  ;;  %v3247_v22 = vadd.f32 %v5236_v40, %v3196_v8 }
 0x3b5   :  { %v4267_v54 = vpop.eup %4266  ;;  %4280 = vrcp.f32 %v3370_v37 }
 0x3b6   :  { %v4269_v46 = vpop.eup %4268  ;;  %3464 = vst.msk [vmem:[%s5405_s7 + $0x88] sm:$0xff] %vm3446_vm0, %v4267_v54  ;;  %v3767_v34 = vmul.f32 -1.442695, %v3247_v22 }
 0x3b7   :  { %v3371_v29 = vadd.f32 1.0, %v4269_v46  ;;  %v3199_v62 = vpop.xlane.xlu0 %3198 }
 0x3b8   :  { %4282 = vpow2.f32 %v3767_v34  ;;  %v3248_v21 = vadd.f32 %v5236_v40, %v3199_v62 }
 0x3b9   :  { %v4271_v24 = vpop.eup %4270  ;;  %4284 = vrcp.f32 %v3371_v29 }
 0x3ba   :  { %v4273_v53 = vpop.eup %4272  ;;  %3465 = vst.msk [vmem:[%s5405_s7 + $0x90] sm:$0xff] %vm3446_vm0, %v4271_v24  ;;  %v3768_v38 = vmul.f32 -1.442695, %v3248_v21 }
 0x3bb   :  { %v3372_v7 = vadd.f32 1.0, %v4273_v53  ;;  %v3202_v51 = vpop.xlane.xlu1 %3201 }
 0x3bc   :  { %4286 = vpow2.f32 %v3768_v38  ;;  %v3249_v52 = vadd.f32 %v5236_v40, %v3202_v51 }
 0x3bd   :  { %v4275_v28 = vpop.eup %4274  ;;  %4288 = vrcp.f32 %v3372_v7 }
 0x3be   :  { %v4277_v15 = vpop.eup %4276  ;;  %3466 = vst.msk [vmem:[%s5405_s7 + $0x98] sm:$0xff] %vm3446_vm0, %v4275_v28  ;;  %v3769_v41 = vmul.f32 -1.442695, %v3249_v52 }
 0x3bf   :  { %v3373_v11 = vadd.f32 1.0, %v4277_v15  ;;  %v3205_v6 = vpop.xlane.xlu0 %3204 }
 0x3c0   :  { %4290 = vpow2.f32 %v3769_v41  ;;  %v3250_v50 = vadd.f32 %v5236_v40, %v3205_v6 }
 0x3c1   :  { %v4279_v47 = vpop.eup %4278  ;;  %4292 = vrcp.f32 %v3373_v11 }
 0x3c2   :  { %v4281_v26 = vpop.eup %4280  ;;  %v3374_v17 = vadd.f32 1.0, %v4279_v47  ;;  %v3770_v44 = vmul.f32 -1.442695, %v3250_v50 }
 0x3c3   :  { %3467 = vst.msk [vmem:[%s5405_s7 + $0xa0] sm:$0xff] %vm3446_vm0, %v4281_v26  ;;  %v3208_v36 = vpop.xlane.xlu1 %3207 }
 0x3c4   :  { %4294 = vrcp.f32 %v3374_v17  ;;  %v3251_v63 = vadd.f32 %v5236_v40, %v3208_v36 }
 0x3c5   :  { %v4283_v9 = vpop.eup %4282  ;;  %4296 = vpow2.f32 %v3770_v44 }
 0x3c6   :  { %v4285_v2 = vpop.eup %4284  ;;  %v3375_v33 = vadd.f32 1.0, %v4283_v9  ;;  %v3771_v42 = vmul.f32 -1.442695, %v3251_v63 }
 0x3c7   :  { %3468 = vst.msk [vmem:[%s5405_s7 + $0xa8] sm:$0xff] %vm3446_vm0, %v4285_v2  ;;  %v3211_v19 = vpop.xlane.xlu0 %3210 }
 0x3c8   :  { %4298 = vrcp.f32 %v3375_v33  ;;  %v3252_v20 = vadd.f32 %v5236_v40, %v3211_v19 }
 0x3c9   :  { %v4287_v31 = vpop.eup %4286  ;;  %4300 = vpow2.f32 %v3771_v42 }
 0x3ca   :  { %v4289_v27 = vpop.eup %4288  ;;  %v3376_v30 = vadd.f32 1.0, %v4287_v31  ;;  %v3772_v56 = vmul.f32 -1.442695, %v3252_v20 }
 0x3cb   :  { %3469 = vst.msk [vmem:[%s5405_s7 + $0xb0] sm:$0xff] %vm3446_vm0, %v4289_v27  ;;  %v3214_v49 = vpop.xlane.xlu1 %3213 }
 0x3cc   :  { %4302 = vrcp.f32 %v3376_v30  ;;  %v3253_v43 = vadd.f32 %v5236_v40, %v3214_v49 }
 0x3cd   :  { %v4291_v13 = vpop.eup %4290  ;;  %4304 = vpow2.f32 %v3772_v56 }
 0x3ce   :  { %v4293_v60 = vpop.eup %4292  ;;  %v3377_v61 = vadd.f32 1.0, %v4291_v13  ;;  %v3773_v59 = vmul.f32 -1.442695, %v3253_v43 }
 0x3cf   :  { %3470 = vst.msk [vmem:[%s5405_s7 + $0xb8] sm:$0xff] %vm3446_vm0, %v4293_v60 }
 0x3d0   :  { %4306 = vrcp.f32 %v3377_v61 }
 0x3d1   :  { %v4295_v1 = vpop.eup %4294  ;;  %4308 = vpow2.f32 %v3773_v59 }
 0x3d2   :  { %v4297_v18 = vpop.eup %4296  ;;  %3471 = vst.msk [vmem:[%s5405_s7 + $0xc0] sm:$0xff] %vm3446_vm0, %v4295_v1 }
 0x3d3   :  { %v3378_v40 = vadd.f32 1.0, %v4297_v18 }
 0x3d5   :  { %v4299_v48 = vpop.eup %4298  ;;  %4310 = vrcp.f32 %v3378_v40 }
 0x3d6   :  { %v4301_v39 = vpop.eup %4300  ;;  %3472 = vst.msk [vmem:[%s5405_s7 + $0xc8] sm:$0xff] %vm3446_vm0, %v4299_v48 }
 0x3d7   :  { %v3379_v32 = vadd.f32 1.0, %v4301_v39 }
 0x3d9   :  { %v4303_v35 = vpop.eup %4302  ;;  %4312 = vrcp.f32 %v3379_v32 }
 0x3da   :  { %v4305_v57 = vpop.eup %4304  ;;  %3473 = vst.msk [vmem:[%s5405_s7 + $0xd0] sm:$0xff] %vm3446_vm0, %v4303_v35 }
 0x3db   :  { %v3380_v4 = vadd.f32 1.0, %v4305_v57 }
 0x3dd   :  { %v4307_v25 = vpop.eup %4306  ;;  %4314 = vrcp.f32 %v3380_v4 }
 0x3de   :  { %v4309_v10 = vpop.eup %4308  ;;  %3474 = vst.msk [vmem:[%s5405_s7 + $0xd8] sm:$0xff] %vm3446_vm0, %v4307_v25 }
 0x3df   :  { %v3381_v45 = vadd.f32 1.0, %v4309_v10 }
 0x3e1   :  { %4316 = vrcp.f32 %v3381_v45 }
 0x3e2   :  { %v4311_v23 = vpop.eup %4310 }
 0x3e3   :  { %3475 = vst.msk [vmem:[%s5405_s7 + $0xe0] sm:$0xff] %vm3446_vm0, %v4311_v23 }
 0x3e6   :  { %v4313_v55 = vpop.eup %4312 }
 0x3e7   :  { %3476 = vst.msk [vmem:[%s5405_s7 + $0xe8] sm:$0xff] %vm3446_vm0, %v4313_v55 }
 0x3ea   :  { %v4315_v5 = vpop.eup %4314 }
 0x3eb   :  { %3477 = vst.msk [vmem:[%s5405_s7 + $0xf0] sm:$0xff] %vm3446_vm0, %v4315_v5 }
 0x3ee   :  { %v4317_v58 = vpop.eup %4316 }
 0x3ef   :  { %3478 = vst.msk [vmem:[%s5405_s7 + $0xf8] sm:$0xff] %vm3446_vm0, %v4317_v58 }
 0x3f0   :  { %3483 = vsyncpa [#allocation4], 1 }
 0x3f1   :  { %3484 = vsyncpa [#allocation6], 1 }

</bundles_post_ra>
